<compile_context>
chip_gen: v6e
topology: v6e:2x2x1
jax: 0.10.0
libtpu: 0.0.40
codegen_flags: <defaults>
</compile_context>

<pallas_src>
import functools

import jax
import jax.numpy as jnp
from jax.experimental import pallas as pl
from jax.experimental.pallas import tpu as pltpu


# (out_dim, relu?) per layer; in_dim of fc1 is input_dim.
_LAYER_DEFS = (
    (15, False),    # fc1
    (1024, True),   # fc2 + relu2
    (1024, True),   # fc3 + relu3
    (512, True),    # fc4 + relu4
    (256, True),    # fc5 + relu5
    (128, True),    # fc6 + relu6
    (1, False),     # fc7
)
_RELU_FLAGS = tuple(relu for _, relu in _LAYER_DEFS)
_PAD15 = 128  # fc1's 15-wide hidden zero-padded to 128 lanes for the MXU path


def _fused_mlp_kernel(x_ref, *refs, relu_flags):
    """Fused MLP. refs = (w1, b1, ..., w7, b7, out).

    Weights are bf16 (MXU-native), biases f32 (1, n). Matmuls accumulate in
    f32; bias-add / ReLU run in f32. Intermediates never leave the chip.
    """
    o_ref = refs[-1]
    wb_refs = refs[:-1]

    h = x_ref[...].astype(jnp.float32)
    for li, relu in enumerate(relu_flags):
        w = wb_refs[2 * li][...]        # (k, n) bf16
        b = wb_refs[2 * li + 1][...]    # (1, n) f32
        h = jnp.dot(h.astype(jnp.bfloat16), w,
                    preferred_element_type=jnp.float32)
        h = h + b                        # broadcasts over batch rows
        if relu:
            h = jnp.maximum(h, 0.0)
    o_ref[...] = h.astype(o_ref.dtype)


def pad_params_for_kernel(params_f32):
    """Zero-pad fc1's 15-wide output (and fc2's matching input rows) to 128,
    cast weights to bf16; biases stay f32 with shape (1, n)."""
    padded = []
    for li, (w, b) in enumerate(params_f32):
        if li == 0:                      # (d_in, 15) -> (d_in, 128)
            w = jnp.pad(w, ((0, 0), (0, _PAD15 - w.shape[1])))
            b = jnp.pad(b, ((0, 0), (0, _PAD15 - b.shape[1])))
        elif li == 1:                    # (15, 1024) -> (128, 1024)
            w = jnp.pad(w, ((0, _PAD15 - w.shape[0]), (0, 0)))
        padded.append((w.astype(jnp.bfloat16), b.astype(jnp.float32)))
    return padded


def fused_mlp_forward(x, params, *, tm_max=256):
    """One Pallas kernel for the whole MLP.

    params: list of (w_bf16 (k, n), b_f32 (1, n)) — already padded for the
    kernel (use pad_params_for_kernel). Batch is tiled along a "parallel"
    grid axis; weight/bias BlockSpecs return block (0, 0) so they stay
    resident across batch tiles.
    """
    assert len(params) == len(_RELU_FLAGS)
    batch, d_in = x.shape

    tm = batch if batch <= tm_max else tm_max
    padded_batch = pl.cdiv(batch, tm) * tm
    x_p = x if padded_batch == batch else jnp.pad(
        x, ((0, padded_batch - batch), (0, 0)))
    grid = (padded_batch // tm,)

    inputs = [x_p]
    in_specs = [pl.BlockSpec((tm, d_in), lambda i: (i, 0))]
    flops = 0
    param_bytes = 0
    for (w, b) in params:
        k, n = w.shape
        assert b.shape == (1, n), (b.shape, n)
        inputs += [w, b]
        # Full-array blocks (exempt from the (8,128) rule for odd dims like 1);
        # constant block index -> fetched once, resident across batch tiles.
        in_specs += [
            pl.BlockSpec((k, n), lambda i: (0, 0)),
            pl.BlockSpec((1, n), lambda i: (0, 0)),
        ]
        flops += 2 * padded_batch * k * n
        param_bytes += w.size * w.dtype.itemsize + b.size * b.dtype.itemsize

    out_dim = params[-1][0].shape[1]
    kernel = functools.partial(_fused_mlp_kernel, relu_flags=_RELU_FLAGS)

    out = pl.pallas_call(
        kernel,
        out_shape=jax.ShapeDtypeStruct((padded_batch, out_dim), jnp.float32),
        grid=grid,
        in_specs=in_specs,
        out_specs=pl.BlockSpec((tm, out_dim), lambda i: (i, 0)),
        compiler_params=pltpu.CompilerParams(
            dimension_semantics=("parallel",),      # megacore / v7x 2-TC shard
            vmem_limit_bytes=32 * 1024 * 1024,      # safe on v5e/v6e/v7x
        ),
        cost_estimate=pl.CostEstimate(
            flops=flops,
            transcendentals=0,
            bytes_accessed=(param_bytes
                            + x_p.size * x_p.dtype.itemsize
                            + padded_batch * out_dim * 4),
        ),
    )(*inputs)
    return out[:batch]


def init_params(key, input_dim):
    """Deterministic init matching nn.Linear's uniform(-1/sqrt(fan_in), ...).
    Weights stored as (in, out) so y = x @ W + b == torch's x @ W_t.T + b."""
    params = []
    d_in = input_dim
    for d_out, _ in _LAYER_DEFS:
        key, kw, kb = jax.random.split(key, 3)
        bound = 1.0 / jnp.sqrt(jnp.float32(d_in))
        w = jax.random.uniform(kw, (d_in, d_out), jnp.float32, -bound, bound)
        b = jax.random.uniform(kb, (1, d_out), jnp.float32, -bound, bound)
        params.append((w, b))
        d_in = d_out
    return params


def reference_forward(params_bf16, x):
    """Pure-JAX reference with the same numerics (bf16 MXU inputs, f32 accum),
    using the UNpadded weights."""
    h = x.astype(jnp.float32)
    for (w, b), relu in zip(params_bf16, _RELU_FLAGS):
        h = jnp.dot(h.astype(jnp.bfloat16), w,
                    preferred_element_type=jnp.float32) + b
        if relu:
            h = jnp.maximum(h, 0.0)
    return h


if __name__ == "__main__":
    key = jax.random.PRNGKey(0)
    k_params, k_x = jax.random.split(key)

    batch = 2
    input_dim = 32
    params_f32 = init_params(k_params, input_dim)
    kernel_params = pad_params_for_kernel(params_f32)            # padded bf16
    ref_params = [(w.astype(jnp.bfloat16), b) for (w, b) in params_f32]
    x = jax.random.normal(k_x, (batch, input_dim), jnp.float32)

    out = jax.block_until_ready(fused_mlp_forward(x, kernel_params))
    ref = jax.block_until_ready(reference_forward(ref_params, x))

    assert out.shape == (batch, 1), out.shape
    assert jnp.allclose(out, ref, atol=1e-2, rtol=1e-2), (out, ref)
    # TODO(synk): round_sigmoid() exists on the module but is not used in
    # forward(), so it is intentionally not part of the kernel path.
    print("KERNEL_OK")
</pallas_src>

<mosaic_0001>
module attributes {stable_mosaic.version = 11 : i64} {
  func.func @_fused_mlp_kernel(%arg0: i32, %arg1: memref<2x32xf32, #tpu.memory_space<vmem>>, %arg2: memref<32x128xbf16, #tpu.memory_space<vmem>>, %arg3: memref<1x128xf32, #tpu.memory_space<vmem>>, %arg4: memref<128x1024xbf16, #tpu.memory_space<vmem>>, %arg5: memref<1x1024xf32, #tpu.memory_space<vmem>>, %arg6: memref<1024x1024xbf16, #tpu.memory_space<vmem>>, %arg7: memref<1x1024xf32, #tpu.memory_space<vmem>>, %arg8: memref<1024x512xbf16, #tpu.memory_space<vmem>>, %arg9: memref<1x512xf32, #tpu.memory_space<vmem>>, %arg10: memref<512x256xbf16, #tpu.memory_space<vmem>>, %arg11: memref<1x256xf32, #tpu.memory_space<vmem>>, %arg12: memref<256x128xbf16, #tpu.memory_space<vmem>>, %arg13: memref<1x128xf32, #tpu.memory_space<vmem>>, %arg14: memref<128x1xbf16, #tpu.memory_space<vmem>>, %arg15: memref<1x1xf32, #tpu.memory_space<vmem>>, %arg16: memref<2x1xf32, #tpu.memory_space<vmem>>) attributes {dimension_semantics = [#tpu.dimension_semantics<parallel>], iteration_bounds = array<i64: 1>, scalar_prefetch = 0 : i64, scratch_operands = 0 : i64, tpu.core_type = #tpu.core_type<tc>, window_params = [{transform_indices = @transform_0, window_bounds = array<i64: 2, 32>}, {pipeline_mode = #tpu.pipeline_mode<synchronous>, transform_indices = @transform_1, window_bounds = array<i64: 32, 128>}, {pipeline_mode = #tpu.pipeline_mode<synchronous>, transform_indices = @transform_2, window_bounds = array<i64: 1, 128>}, {pipeline_mode = #tpu.pipeline_mode<synchronous>, transform_indices = @transform_3, window_bounds = array<i64: 128, 1024>}, {pipeline_mode = #tpu.pipeline_mode<synchronous>, transform_indices = @transform_4, window_bounds = array<i64: 1, 1024>}, {pipeline_mode = #tpu.pipeline_mode<synchronous>, transform_indices = @transform_5, window_bounds = array<i64: 1024, 1024>}, {pipeline_mode = #tpu.pipeline_mode<synchronous>, transform_indices = @transform_6, window_bounds = array<i64: 1, 1024>}, {pipeline_mode = #tpu.pipeline_mode<synchronous>, transform_indices = @transform_7, window_bounds = array<i64: 1024, 512>}, {pipeline_mode = #tpu.pipeline_mode<synchronous>, transform_indices = @transform_8, window_bounds = array<i64: 1, 512>}, {pipeline_mode = #tpu.pipeline_mode<synchronous>, transform_indices = @transform_9, window_bounds = array<i64: 512, 256>}, {pipeline_mode = #tpu.pipeline_mode<synchronous>, transform_indices = @transform_10, window_bounds = array<i64: 1, 256>}, {pipeline_mode = #tpu.pipeline_mode<synchronous>, transform_indices = @transform_11, window_bounds = array<i64: 256, 128>}, {pipeline_mode = #tpu.pipeline_mode<synchronous>, transform_indices = @transform_12, window_bounds = array<i64: 1, 128>}, {pipeline_mode = #tpu.pipeline_mode<synchronous>, transform_indices = @transform_13, window_bounds = array<i64: 128, 1>}, {pipeline_mode = #tpu.pipeline_mode<synchronous>, transform_indices = @transform_14, window_bounds = array<i64: 1, 1>}, {transform_indices = @transform_15, window_bounds = array<i64: 2, 1>}]} {
    %c0 = arith.constant 0 : index
    %c0_0 = arith.constant 0 : index
    %0 = vector.load %arg1[%c0, %c0_0] : memref<2x32xf32, #tpu.memory_space<vmem>>, vector<2x32xf32>
    %c0_1 = arith.constant 0 : index
    %c0_2 = arith.constant 0 : index
    %1 = vector.load %arg2[%c0_1, %c0_2] : memref<32x128xbf16, #tpu.memory_space<vmem>>, vector<32x128xbf16>
    %c0_3 = arith.constant 0 : index
    %c0_4 = arith.constant 0 : index
    %2 = vector.load %arg3[%c0_3, %c0_4] : memref<1x128xf32, #tpu.memory_space<vmem>>, vector<1x128xf32>
    %3 = arith.truncf %0 : vector<2x32xf32> to vector<2x32xbf16>
    %cst = arith.constant dense<0.000000e+00> : vector<2x128xf32>
    %4 = tpu.matmul %3, %1, %cst {dimension_numbers = #tpu.dot_dimension_numbers<[1], [0], [0], [1], [0, 0, 1, 1], [], []>} : vector<2x32xbf16>, vector<32x128xbf16>, vector<2x128xf32> -> vector<2x128xf32>
    %5 = vector.broadcast %2 : vector<1x128xf32> to vector<2x128xf32>
    %6 = arith.addf %4, %5 : vector<2x128xf32>
    %c0_5 = arith.constant 0 : index
    %c0_6 = arith.constant 0 : index
    %7 = vector.load %arg4[%c0_5, %c0_6] : memref<128x1024xbf16, #tpu.memory_space<vmem>>, vector<128x1024xbf16>
    %c0_7 = arith.constant 0 : index
    %c0_8 = arith.constant 0 : index
    %8 = vector.load %arg5[%c0_7, %c0_8] : memref<1x1024xf32, #tpu.memory_space<vmem>>, vector<1x1024xf32>
    %9 = arith.truncf %6 : vector<2x128xf32> to vector<2x128xbf16>
    %cst_9 = arith.constant dense<0.000000e+00> : vector<2x1024xf32>
    %10 = tpu.matmul %9, %7, %cst_9 {dimension_numbers = #tpu.dot_dimension_numbers<[1], [0], [0], [1], [0, 0, 1, 1], [], []>} : vector<2x128xbf16>, vector<128x1024xbf16>, vector<2x1024xf32> -> vector<2x1024xf32>
    %11 = vector.broadcast %8 : vector<1x1024xf32> to vector<2x1024xf32>
    %12 = arith.addf %10, %11 : vector<2x1024xf32>
    %cst_10 = arith.constant 0.000000e+00 : f32
    %13 = vector.broadcast %cst_10 : f32 to vector<2x1024xf32>
    %14 = arith.maximumf %12, %13 : vector<2x1024xf32>
    %c0_11 = arith.constant 0 : index
    %c0_12 = arith.constant 0 : index
    %15 = vector.load %arg6[%c0_11, %c0_12] : memref<1024x1024xbf16, #tpu.memory_space<vmem>>, vector<1024x1024xbf16>
    %c0_13 = arith.constant 0 : index
    %c0_14 = arith.constant 0 : index
    %16 = vector.load %arg7[%c0_13, %c0_14] : memref<1x1024xf32, #tpu.memory_space<vmem>>, vector<1x1024xf32>
    %17 = arith.truncf %14 : vector<2x1024xf32> to vector<2x1024xbf16>
    %cst_15 = arith.constant dense<0.000000e+00> : vector<2x1024xf32>
    %18 = tpu.matmul %17, %15, %cst_15 {dimension_numbers = #tpu.dot_dimension_numbers<[1], [0], [0], [1], [0, 0, 1, 1], [], []>} : vector<2x1024xbf16>, vector<1024x1024xbf16>, vector<2x1024xf32> -> vector<2x1024xf32>
    %19 = vector.broadcast %16 : vector<1x1024xf32> to vector<2x1024xf32>
    %20 = arith.addf %18, %19 : vector<2x1024xf32>
    %cst_16 = arith.constant 0.000000e+00 : f32
    %21 = vector.broadcast %cst_16 : f32 to vector<2x1024xf32>
    %22 = arith.maximumf %20, %21 : vector<2x1024xf32>
    %c0_17 = arith.constant 0 : index
    %c0_18 = arith.constant 0 : index
    %23 = vector.load %arg8[%c0_17, %c0_18] : memref<1024x512xbf16, #tpu.memory_space<vmem>>, vector<1024x512xbf16>
    %c0_19 = arith.constant 0 : index
    %c0_20 = arith.constant 0 : index
    %24 = vector.load %arg9[%c0_19, %c0_20] : memref<1x512xf32, #tpu.memory_space<vmem>>, vector<1x512xf32>
    %25 = arith.truncf %22 : vector<2x1024xf32> to vector<2x1024xbf16>
    %cst_21 = arith.constant dense<0.000000e+00> : vector<2x512xf32>
    %26 = tpu.matmul %25, %23, %cst_21 {dimension_numbers = #tpu.dot_dimension_numbers<[1], [0], [0], [1], [0, 0, 1, 1], [], []>} : vector<2x1024xbf16>, vector<1024x512xbf16>, vector<2x512xf32> -> vector<2x512xf32>
    %27 = vector.broadcast %24 : vector<1x512xf32> to vector<2x512xf32>
    %28 = arith.addf %26, %27 : vector<2x512xf32>
    %cst_22 = arith.constant 0.000000e+00 : f32
    %29 = vector.broadcast %cst_22 : f32 to vector<2x512xf32>
    %30 = arith.maximumf %28, %29 : vector<2x512xf32>
    %c0_23 = arith.constant 0 : index
    %c0_24 = arith.constant 0 : index
    %31 = vector.load %arg10[%c0_23, %c0_24] : memref<512x256xbf16, #tpu.memory_space<vmem>>, vector<512x256xbf16>
    %c0_25 = arith.constant 0 : index
    %c0_26 = arith.constant 0 : index
    %32 = vector.load %arg11[%c0_25, %c0_26] : memref<1x256xf32, #tpu.memory_space<vmem>>, vector<1x256xf32>
    %33 = arith.truncf %30 : vector<2x512xf32> to vector<2x512xbf16>
    %cst_27 = arith.constant dense<0.000000e+00> : vector<2x256xf32>
    %34 = tpu.matmul %33, %31, %cst_27 {dimension_numbers = #tpu.dot_dimension_numbers<[1], [0], [0], [1], [0, 0, 1, 1], [], []>} : vector<2x512xbf16>, vector<512x256xbf16>, vector<2x256xf32> -> vector<2x256xf32>
    %35 = vector.broadcast %32 : vector<1x256xf32> to vector<2x256xf32>
    %36 = arith.addf %34, %35 : vector<2x256xf32>
    %cst_28 = arith.constant 0.000000e+00 : f32
    %37 = vector.broadcast %cst_28 : f32 to vector<2x256xf32>
    %38 = arith.maximumf %36, %37 : vector<2x256xf32>
    %c0_29 = arith.constant 0 : index
    %c0_30 = arith.constant 0 : index
    %39 = vector.load %arg12[%c0_29, %c0_30] : memref<256x128xbf16, #tpu.memory_space<vmem>>, vector<256x128xbf16>
    %c0_31 = arith.constant 0 : index
    %c0_32 = arith.constant 0 : index
    %40 = vector.load %arg13[%c0_31, %c0_32] : memref<1x128xf32, #tpu.memory_space<vmem>>, vector<1x128xf32>
    %41 = arith.truncf %38 : vector<2x256xf32> to vector<2x256xbf16>
    %cst_33 = arith.constant dense<0.000000e+00> : vector<2x128xf32>
    %42 = tpu.matmul %41, %39, %cst_33 {dimension_numbers = #tpu.dot_dimension_numbers<[1], [0], [0], [1], [0, 0, 1, 1], [], []>} : vector<2x256xbf16>, vector<256x128xbf16>, vector<2x128xf32> -> vector<2x128xf32>
    %43 = vector.broadcast %40 : vector<1x128xf32> to vector<2x128xf32>
    %44 = arith.addf %42, %43 : vector<2x128xf32>
    %cst_34 = arith.constant 0.000000e+00 : f32
    %45 = vector.broadcast %cst_34 : f32 to vector<2x128xf32>
    %46 = arith.maximumf %44, %45 : vector<2x128xf32>
    %c0_35 = arith.constant 0 : index
    %c0_36 = arith.constant 0 : index
    %47 = vector.load %arg14[%c0_35, %c0_36] : memref<128x1xbf16, #tpu.memory_space<vmem>>, vector<128x1xbf16>
    %c0_37 = arith.constant 0 : index
    %c0_38 = arith.constant 0 : index
    %48 = vector.load %arg15[%c0_37, %c0_38] : memref<1x1xf32, #tpu.memory_space<vmem>>, vector<1x1xf32>
    %49 = arith.truncf %46 : vector<2x128xf32> to vector<2x128xbf16>
    %cst_39 = arith.constant dense<0.000000e+00> : vector<2x1xf32>
    %50 = tpu.matmul %49, %47, %cst_39 {dimension_numbers = #tpu.dot_dimension_numbers<[1], [0], [0], [1], [0, 0, 1, 1], [], []>} : vector<2x128xbf16>, vector<128x1xbf16>, vector<2x1xf32> -> vector<2x1xf32>
    %51 = vector.broadcast %48 : vector<1x1xf32> to vector<2x1xf32>
    %52 = arith.addf %50, %51 : vector<2x1xf32>
    %c0_40 = arith.constant 0 : index
    %c0_41 = arith.constant 0 : index
    %53 = vector.load %arg16[%c0_40, %c0_41] : memref<2x1xf32, #tpu.memory_space<vmem>>, vector<2x1xf32>
    tpu.vector_store %arg16[%c0_40, %c0_41], %52 {strides = array<i32>} : memref<2x1xf32, #tpu.memory_space<vmem>>, vector<2x1xf32>,
    return
  }
  func.func @transform_0(%arg0: i32) -> (i32, i32) {
    %c0_i32 = arith.constant 0 : i32
    %c0_i32_0 = arith.constant 0 : i32
    return %arg0, %c0_i32 : i32, i32
  }
  func.func @transform_1(%arg0: i32) -> (i32, i32) {
    %c0_i32 = arith.constant 0 : i32
    %c0_i32_0 = arith.constant 0 : i32
    %c0_i32_1 = arith.constant 0 : i32
    return %c0_i32, %c0_i32_0 : i32, i32
  }
  func.func @transform_2(%arg0: i32) -> (i32, i32) {
    %c0_i32 = arith.constant 0 : i32
    %c0_i32_0 = arith.constant 0 : i32
    %c0_i32_1 = arith.constant 0 : i32
    return %c0_i32, %c0_i32_0 : i32, i32
  }
  func.func @transform_3(%arg0: i32) -> (i32, i32) {
    %c0_i32 = arith.constant 0 : i32
    %c0_i32_0 = arith.constant 0 : i32
    %c0_i32_1 = arith.constant 0 : i32
    return %c0_i32, %c0_i32_0 : i32, i32
  }
  func.func @transform_4(%arg0: i32) -> (i32, i32) {
    %c0_i32 = arith.constant 0 : i32
    %c0_i32_0 = arith.constant 0 : i32
    %c0_i32_1 = arith.constant 0 : i32
    return %c0_i32, %c0_i32_0 : i32, i32
  }
  func.func @transform_5(%arg0: i32) -> (i32, i32) {
    %c0_i32 = arith.constant 0 : i32
    %c0_i32_0 = arith.constant 0 : i32
    %c0_i32_1 = arith.constant 0 : i32
    return %c0_i32, %c0_i32_0 : i32, i32
  }
  func.func @transform_6(%arg0: i32) -> (i32, i32) {
    %c0_i32 = arith.constant 0 : i32
    %c0_i32_0 = arith.constant 0 : i32
    %c0_i32_1 = arith.constant 0 : i32
    return %c0_i32, %c0_i32_0 : i32, i32
  }
  func.func @transform_7(%arg0: i32) -> (i32, i32) {
    %c0_i32 = arith.constant 0 : i32
    %c0_i32_0 = arith.constant 0 : i32
    %c0_i32_1 = arith.constant 0 : i32
    return %c0_i32, %c0_i32_0 : i32, i32
  }
  func.func @transform_8(%arg0: i32) -> (i32, i32) {
    %c0_i32 = arith.constant 0 : i32
    %c0_i32_0 = arith.constant 0 : i32
    %c0_i32_1 = arith.constant 0 : i32
    return %c0_i32, %c0_i32_0 : i32, i32
  }
  func.func @transform_9(%arg0: i32) -> (i32, i32) {
    %c0_i32 = arith.constant 0 : i32
    %c0_i32_0 = arith.constant 0 : i32
    %c0_i32_1 = arith.constant 0 : i32
    return %c0_i32, %c0_i32_0 : i32, i32
  }
  func.func @transform_10(%arg0: i32) -> (i32, i32) {
    %c0_i32 = arith.constant 0 : i32
    %c0_i32_0 = arith.constant 0 : i32
    %c0_i32_1 = arith.constant 0 : i32
    return %c0_i32, %c0_i32_0 : i32, i32
  }
  func.func @transform_11(%arg0: i32) -> (i32, i32) {
    %c0_i32 = arith.constant 0 : i32
    %c0_i32_0 = arith.constant 0 : i32
    %c0_i32_1 = arith.constant 0 : i32
    return %c0_i32, %c0_i32_0 : i32, i32
  }
  func.func @transform_12(%arg0: i32) -> (i32, i32) {
    %c0_i32 = arith.constant 0 : i32
    %c0_i32_0 = arith.constant 0 : i32
    %c0_i32_1 = arith.constant 0 : i32
    return %c0_i32, %c0_i32_0 : i32, i32
  }
  func.func @transform_13(%arg0: i32) -> (i32, i32) {
    %c0_i32 = arith.constant 0 : i32
    %c0_i32_0 = arith.constant 0 : i32
    %c0_i32_1 = arith.constant 0 : i32
    return %c0_i32, %c0_i32_0 : i32, i32
  }
  func.func @transform_14(%arg0: i32) -> (i32, i32) {
    %c0_i32 = arith.constant 0 : i32
    %c0_i32_0 = arith.constant 0 : i32
    %c0_i32_1 = arith.constant 0 : i32
    return %c0_i32, %c0_i32_0 : i32, i32
  }
  func.func @transform_15(%arg0: i32) -> (i32, i32) {
    %c0_i32 = arith.constant 0 : i32
    %c0_i32_0 = arith.constant 0 : i32
    return %arg0, %c0_i32 : i32, i32
  }
}

</mosaic_0001>

<bundles_post_ra>
// kernel: tpu_custom_call.1
= control target key start
LH: loop header
LB: loop body
LE: loop exit
PB: predicated region body
PF: predicated region fallthrough
CT: control target
= control target key end

     0   :  { %s9596_s0 = inlined_call_operand.hbm [shape: f32[2,32], index: 0, kind: input, shape index: {}]   ;;  %s9597_s1 = inlined_call_operand.hbm [shape: bf16[32,128], index: 1, kind: input, shape index: {}]   ;;  %s9598_s2 = inlined_call_operand.hbm [shape: f32[1,128], index: 2, kind: input, shape index: {}]   ;;  %s9599_s3 = inlined_call_operand.hbm [shape: bf16[128,1024], index: 3, kind: input, shape index: {}]   ;;  %s9600_s4 = inlined_call_operand.hbm [shape: f32[1,1024], index: 4, kind: input, shape index: {}]   ;;  %s9601_s5 = inlined_call_operand.hbm [shape: bf16[1024,1024], index: 5, kind: input, shape index: {}]   ;;  %s9602_s6 = inlined_call_operand.hbm [shape: f32[1,1024], index: 6, kind: input, shape index: {}]   ;;  %s9603_s7 = inlined_call_operand.hbm [shape: bf16[1024,512], index: 7, kind: input, shape index: {}]   ;;  %s9604_s8 = inlined_call_operand.hbm [shape: f32[1,512], index: 8, kind: input, shape index: {}]   ;;  %s9605_s9 = inlined_call_operand.hbm [shape: bf16[512,256], index: 9, kind: input, shape index: {}]   ;;  %s9606_s10 = inlined_call_operand.hbm [shape: f32[1,256], index: 10, kind: input, shape index: {}]   ;;  %s9607_s11 = inlined_call_operand.hbm [shape: bf16[256,128], index: 11, kind: input, shape index: {}]   ;;  %s9608_s12 = inlined_call_operand.hbm [shape: f32[1,128], index: 12, kind: input, shape index: {}]   ;;  %s9609_s13 = inlined_call_operand.vmem [shape: bf16[128,1], index: 13, kind: input, shape index: {}]   ;;  %s9610_s14 = inlined_call_operand.<no memory space> [shape: f32[1,1], index: 14, kind: input, shape index: {}]   ;;  %s9611_s15 = inlined_call_operand.vmem [shape: f32[2,1], index: 15, kind: output, shape index: {}]  }
   0x1   :  { %v20_v0 = vstv %s9610_s14 }
   0x2   :  { %21 = vst [vmem:[#allocation2] sm:$0x1] %v20_v0 }
   0x3   :  { %22 = vsyncpa [#allocation4], 0 }
   0x4   :  { %23 = vsyncpa [#allocation6], 0 }
   0x5   :  { %24 = vsyncpa [#allocation9], 0 }
   0x6   :  { %25 = vsyncpa [#allocation12], 0 }
   0x7   :  { %26 = vsyncpa [#allocation15], 0 }
   0x8   :  { %27 = vsyncpa [#allocation18], 0 }
   0x9   :  { %28 = vsyncpa [#allocation21], 0  ;;  %s9147_s20 = smov [#allocation5]  }
   0xa   :  { %s44_s21 = sshll.u32 %s9147_s20, 4  ;;  %s45_s21 = int_to_ptr.vmem [resolvable:$true] %s44_s21 }
   0xb   :  { %s8881_s22 = scalar_lea.vmem %s45_s21, 256  ;;  %p8886_p1 = scmp.lt.s32.totalorder %s45_s21, %s45_s21 }
   0xc   :  { %p8882_p0 = scmp.ne.s32.totalorder %s45_s21, %s8881_s22  ;;  %p8887_p2 = scmp.lt.s32.totalorder %s8881_s22, %s8881_s22 }
   0xe   :  { %p8888_p3 = por %p8887_p2, %p8886_p1 }
  0x10   :  { %p8889_p4 = pnand %p8888_p3, %p8882_p0 }
  0x12   :  { %8892 = shalt.err (!%p8889_p4)
}
  0x13   :  { %s9148_s23 = smov 64   ;;  %s9149_s14 = smov 4  }
  0x14   :  { %50 = dma.hbm_to_vmem [thread:$0]  %s9597_s1, 256, %s45_s21, [#allocation6], %s9148_s23, %s9148_s23, %s9149_s14  }
  0x15   :  { %s9150_s26 = smov [#allocation8]  }
  0x16   :  { %s66_s27 = sshll.u32 %s9150_s26, 4  ;;  %s67_s27 = int_to_ptr.vmem [resolvable:$true] %s66_s27 }
  0x17   :  { %s8901_s28 = scalar_lea.vmem %s67_s27, 8192  ;;  %p8906_p6 = scmp.lt.s32.totalorder %s67_s27, %s67_s27 }
  0x18   :  { %p8902_p5 = scmp.ne.s32.totalorder %s67_s27, %s8901_s28  ;;  %p8907_p7 = scmp.lt.s32.totalorder %s8901_s28, %s8901_s28 }
  0x1a   :  { %p8908_p8 = por %p8907_p7, %p8906_p6 }
  0x1c   :  { %p8909_p9 = pnand %p8908_p8, %p8902_p5 }
  0x1e   :  { %8912 = shalt.err (!%p8909_p9)
}
  0x1f   :  { %s9151_s29 = smov 512   ;;  %s9152_s30 = smov 32  }
  0x20   :  { %72 = dma.hbm_to_vmem [thread:$0]  %s9599_s3, 8192, %s67_s27, [#allocation9], %s9151_s29, %s9151_s29, %s9152_s30  }
  0x21   :  { %s9153_s18 = smov [#allocation11]   ;;  %s9154_s20 = smov [#allocation14]  }
  0x22   :  { %s88_s19 = sshll.u32 %s9153_s18, 4  ;;  %s110_s1 = sshll.u32 %s9154_s20, 4  ;;  %s89_s19 = int_to_ptr.vmem [resolvable:$true] %s88_s19  ;;  %s111_s1 = int_to_ptr.vmem [resolvable:$true] %s110_s1 }
  0x23   :  { %s8921_s21 = scalar_lea.vmem %s89_s19, 65536  ;;  %p8926_p11 = scmp.lt.s32.totalorder %s89_s19, %s89_s19 }
  0x24   :  { %p8922_p10 = scmp.ne.s32.totalorder %s89_s19, %s8921_s21  ;;  %p8927_p12 = scmp.lt.s32.totalorder %s8921_s21, %s8921_s21 }
  0x26   :  { %p8928_p13 = por %p8927_p12, %p8926_p11 }
  0x28   :  { %p8929_p0 = pnand %p8928_p13, %p8922_p10 }
  0x2a   :  { %8932 = shalt.err (!%p8929_p0)
}
  0x2b   :  { %94 = dma.hbm_to_vmem [thread:$0]  %s9601_s5, 65536, %s89_s19, [#allocation12], %s9151_s29, %s9151_s29, %s9152_s30  }
  0x2c   :  { %s8941_s25 = scalar_lea.vmem %s111_s1, 32768  ;;  %p8946_p2 = scmp.lt.s32.totalorder %s111_s1, %s111_s1 }
  0x2d   :  { %p8942_p1 = scmp.ne.s32.totalorder %s111_s1, %s8941_s25  ;;  %p8947_p3 = scmp.lt.s32.totalorder %s8941_s25, %s8941_s25 }
  0x2f   :  { %p8948_p4 = por %p8947_p3, %p8946_p2 }
  0x31   :  { %p8949_p5 = pnand %p8948_p4, %p8942_p1 }
  0x33   :  { %8952 = shalt.err (!%p8949_p5)
}
  0x34   :  { %s9155_s3 = smov 256   ;;  %s9156_s26 = smov 16  }
  0x35   :  { %116 = dma.hbm_to_vmem [thread:$0]  %s9603_s7, 32768, %s111_s1, [#allocation15], %s9155_s3, %s9155_s3, %s9156_s26  }
  0x36   :  { %s9157_s16 = smov [#allocation17]  }
  0x37   :  { %s132_s17 = sshll.u32 %s9157_s16, 4  ;;  %s133_s17 = int_to_ptr.vmem [resolvable:$true] %s132_s17 }
  0x38   :  { %s8961_s18 = scalar_lea.vmem %s133_s17, 8192  ;;  %p8966_p7 = scmp.lt.s32.totalorder %s133_s17, %s133_s17 }
  0x39   :  { %p8962_p6 = scmp.ne.s32.totalorder %s133_s17, %s8961_s18  ;;  %p8967_p8 = scmp.lt.s32.totalorder %s8961_s18, %s8961_s18 }
  0x3b   :  { %p8968_p9 = por %p8967_p8, %p8966_p7 }
  0x3d   :  { %p8969_p10 = pnand %p8968_p9, %p8962_p6 }
  0x3f   :  { %8972 = shalt.err (!%p8969_p10)
}
  0x40   :  { %s9158_s5 = smov 128   ;;  %s9159_s29 = smov 8  }
  0x41   :  { %138 = dma.hbm_to_vmem [thread:$0]  %s9605_s9, 8192, %s133_s17, [#allocation18], %s9158_s5, %s9158_s5, %s9159_s29  }
  0x42   :  { %s9160_s20 = smov [#allocation20]   ;;  %s9161_s7 = smov [#allocation3]  }
  0x43   :  { %s154_s21 = sshll.u32 %s9160_s20, 4  ;;  %s35_s1 = sshll.u32 %s9161_s7, 4  ;;  %s155_s21 = int_to_ptr.vmem [resolvable:$true] %s154_s21  ;;  %s36_s1 = int_to_ptr.vmem [resolvable:$true] %s35_s1 }
  0x44   :  { %s8981_s22 = scalar_lea.vmem %s155_s21, 2048  ;;  %p8986_p12 = scmp.lt.s32.totalorder %s155_s21, %s155_s21 }
  0x45   :  { %p8982_p11 = scmp.ne.s32.totalorder %s155_s21, %s8981_s22  ;;  %p8987_p13 = scmp.lt.s32.totalorder %s8981_s22, %s8981_s22 }
  0x47   :  { %p8988_p0 = por %p8987_p13, %p8986_p12 }
  0x49   :  { %p8989_p1 = pnand %p8988_p0, %p8982_p11 }
  0x4b   :  { %8992 = shalt.err (!%p8989_p1)
}
  0x4c   :  { %160 = dma.hbm_to_vmem [thread:$0]  %s9607_s11, 2048, %s155_s21, [#allocation21], %s9148_s23, %s9148_s23, %s9149_s14  }
  0x4d   :  { %s9001_s9 = scalar_lea.vmem %s36_s1, 32  ;;  %p9006_p3 = scmp.lt.s32.totalorder %s36_s1, %s36_s1 }
  0x4e   :  { %p9002_p2 = scmp.ne.s32.totalorder %s36_s1, %s9001_s9  ;;  %p9007_p4 = scmp.lt.s32.totalorder %s9001_s9, %s9001_s9 }
  0x50   :  { %p9008_p5 = por %p9007_p4, %p9006_p3 }
  0x52   :  { %p9009_p6 = pnand %p9008_p5, %p9002_p2 }
  0x54   :  { %9012 = shalt.err (!%p9009_p6)
}
  0x55   :  { %38 = dma.hbm_to_vmem [thread:$0]  %s9596_s0, 32, %s36_s1, [#allocation4]  }
  0x56   :  { %s9162_s27 = smov [#allocation7]   ;;  %s9163_s16 = smov [#allocation10]  }
  0x57   :  { %s57_s28 = sshll.u32 %s9162_s27, 4  ;;  %s79_s17 = sshll.u32 %s9163_s16, 4  ;;  %s58_s28 = int_to_ptr.vmem [resolvable:$true] %s57_s28  ;;  %s80_s17 = int_to_ptr.vmem [resolvable:$true] %s79_s17 }
  0x58   :  { %s9021_s18 = scalar_lea.vmem %s58_s28, 16  ;;  %s9025_s11 = scalar_lea.vmem %s58_s28, 32 }
  0x59   :  { %p9022_p7 = scmp.ne.s32.totalorder %s58_s28, %s9021_s18  ;;  %p9026_p8 = scmp.lt.s32.totalorder %s58_s28, %s58_s28 }
  0x5a   :  { %p9027_p9 = scmp.lt.s32.totalorder %s9025_s11, %s9021_s18 }
  0x5c   :  { %p9028_p10 = por %p9027_p9, %p9026_p8 }
  0x5e   :  { %p9029_p11 = pnand %p9028_p10, %p9022_p7 }
  0x60   :  { %9032 = shalt.err (!%p9029_p11)
}
  0x61   :  { %60 = dma.hbm_to_vmem [thread:$0]  %s9598_s2, 16, %s58_s28, [#allocation6]  }
  0x62   :  { %s9041_s5 = scalar_lea.vmem %s80_s17, 128  ;;  %p9046_p13 = scmp.lt.s32.totalorder %s80_s17, %s80_s17 }
  0x63   :  { %p9042_p12 = scmp.ne.s32.totalorder %s80_s17, %s9041_s5  ;;  %p9047_p0 = scmp.lt.s32.totalorder %s9041_s5, %s9041_s5 }
  0x65   :  { %p9048_p1 = por %p9047_p0, %p9046_p13 }
  0x67   :  { %p9049_p2 = pnand %p9048_p1, %p9042_p12 }
  0x69   :  { %9052 = shalt.err (!%p9049_p2)
}
  0x6a   :  { %82 = dma.hbm_to_vmem [thread:$0]  %s9600_s4, 128, %s80_s17, [#allocation9]  }
  0x6b   :  { %s9164_s30 = smov [#allocation13]   ;;  %s9165_s20 = smov [#allocation16]  }
  0x6c   :  { %s101_s19 = sshll.u32 %s9164_s30, 4  ;;  %s123_s21 = sshll.u32 %s9165_s20, 4  ;;  %s102_s19 = int_to_ptr.vmem [resolvable:$true] %s101_s19  ;;  %s124_s21 = int_to_ptr.vmem [resolvable:$true] %s123_s21 }
  0x6d   :  { %s9061_s7 = scalar_lea.vmem %s102_s19, 128  ;;  %p9066_p4 = scmp.lt.s32.totalorder %s102_s19, %s102_s19 }
  0x6e   :  { %p9062_p3 = scmp.ne.s32.totalorder %s102_s19, %s9061_s7  ;;  %p9067_p5 = scmp.lt.s32.totalorder %s9061_s7, %s9061_s7 }
  0x70   :  { %p9068_p6 = por %p9067_p5, %p9066_p4 }
  0x72   :  { %p9069_p7 = pnand %p9068_p6, %p9062_p3 }
  0x74   :  { %9072 = shalt.err (!%p9069_p7)
}
  0x75   :  { %104 = dma.hbm_to_vmem [thread:$0]  %s9602_s6, 128, %s102_s19, [#allocation12]  }
  0x76   :  { %s9081_s22 = scalar_lea.vmem %s124_s21, 64  ;;  %p9086_p9 = scmp.lt.s32.totalorder %s124_s21, %s124_s21 }
  0x77   :  { %p9082_p8 = scmp.ne.s32.totalorder %s124_s21, %s9081_s22  ;;  %p9087_p10 = scmp.lt.s32.totalorder %s9081_s22, %s9081_s22 }
  0x79   :  { %p9088_p11 = por %p9087_p10, %p9086_p9 }
  0x7b   :  { %p9089_p12 = pnand %p9088_p11, %p9082_p8 }
  0x7d   :  { %9092 = shalt.err (!%p9089_p12)
}
  0x7e   :  { %126 = dma.hbm_to_vmem [thread:$0]  %s9604_s8, 64, %s124_s21, [#allocation15]  }
  0x7f   :  { %s9166_s25 = smov [#allocation19]   ;;  %s9167_s3 = smov [#allocation22]  }
  0x80   :  { %s145_s9 = sshll.u32 %s9166_s25, 4  ;;  %s167_s26 = sshll.u32 %s9167_s3, 4  ;;  %s146_s9 = int_to_ptr.vmem [resolvable:$true] %s145_s9  ;;  %s168_s26 = int_to_ptr.vmem [resolvable:$true] %s167_s26 }
  0x81   :  { %s9101_s27 = scalar_lea.vmem %s146_s9, 32  ;;  %p9106_p0 = scmp.lt.s32.totalorder %s146_s9, %s146_s9 }
  0x82   :  { %p9102_p13 = scmp.ne.s32.totalorder %s146_s9, %s9101_s27  ;;  %p9107_p1 = scmp.lt.s32.totalorder %s9101_s27, %s9101_s27 }
  0x84   :  { %p9108_p2 = por %p9107_p1, %p9106_p0 }
  0x86   :  { %p9109_p3 = pnand %p9108_p2, %p9102_p13 }
  0x88   :  { %9112 = shalt.err (!%p9109_p3)
}
  0x89   :  { %148 = dma.hbm_to_vmem [thread:$0]  %s9606_s10, 32, %s146_s9, [#allocation18]  }
  0x8a   :  { %s9121_s16 = scalar_lea.vmem %s168_s26, 16  ;;  %s9125_s8 = scalar_lea.vmem %s168_s26, 32 }
  0x8b   :  { %p9122_p4 = scmp.ne.s32.totalorder %s168_s26, %s9121_s16  ;;  %p9126_p5 = scmp.lt.s32.totalorder %s168_s26, %s168_s26 }
  0x8c   :  { %p9127_p6 = scmp.lt.s32.totalorder %s9125_s8, %s9121_s16 }
  0x8e   :  { %p9128_p7 = por %p9127_p6, %p9126_p5 }
  0x90   :  { %p9129_p8 = pnand %p9128_p7, %p9122_p4 }
  0x92   :  { %9132 = shalt.err (!%p9129_p8)
}
  0x93   :  { %170 = dma.hbm_to_vmem [thread:$0]  %s9608_s12, 16, %s168_s26, [#allocation21]  }
  0x94   :  { %9133 = dma.done.wait [#allocation4], 32  }
  0x95   :  { %9134 = vsyncadd [#allocation4], 4294967264 }
  0x96   :  { %9135 = dma.done.wait [#allocation6], 272  }
  0x97   :  { %9136 = vsyncadd [#allocation6], 4294967024 }
  0x98   :  { %9137 = dma.done.wait [#allocation9], 8320  }
  0x99   :  { %9138 = vsyncadd [#allocation9], 4294958976 }
  0x9a   :  { %9139 = dma.done.wait [#allocation12], 65664  }
  0x9b   :  { %9140 = vsyncadd [#allocation12], 4294901632 }
  0x9c   :  { %9141 = dma.done.wait [#allocation15], 32832  }
  0x9d   :  { %9142 = vsyncadd [#allocation15], 4294934464 }
  0x9e   :  { %9143 = dma.done.wait [#allocation18], 8224  }
  0x9f   :  { %9144 = vsyncadd [#allocation18], 4294959072 }
  0xa0   :  { %9145 = dma.done.wait [#allocation21], 2064  }
  0xa1   :  { %9146 = vsyncadd [#allocation21], 4294965232  ;;  %v9168_v1 = vmov 0.0   ;;  %vm9169_vm0 = vmmov 0   ;;  %v8366_v2 = vld [vmem:[#allocation5 + $0x8] sm:$0xff]   ;;  %v8367_v3 = vld [vmem:[#allocation5] sm:$0xff]  }
  0xa2   :  { %8314 = vmatprep.subr.bf16.mxu0 %v9168_v1  ;;  %8318 = vmatprep.mubr.msk.bf16.mxu0 %vm9169_vm0, %v9168_v1  ;;  %v215_v4 = vld [vmem:[#allocation3] sm:$0x3]  ;;  %v340_v5 = vld [vmem:[#allocation8 + $0x1c0] sm:$0xff]  ;;  %vm240_vm1 = vcmask 261120   ;;  %vm7341_vm2 = vcmask 1024  }
  0xa3   :  { %8315 = vmatpush3.bf16.msra.mxu0 %v8366_v2  ;;  %v344_v6 = vld [vmem:[#allocation8 + $0x1e0] sm:$0xff]  ;;  %v341_v8 = vld [vmem:[#allocation8 + $0x1c8] sm:$0xff]  ;;  %v221_v16 = vpack.c.bf16 %v215_v4, %v215_v4 }
  0xa4   :  { %8316 = vmatprep.subr.bf16.mxu0 %v9168_v1  ;;  %v7415_v7 = vcombine.high %v340_v5, %v344_v6  ;;  %v345_v9 = vld [vmem:[#allocation8 + $0x1e8] sm:$0xff]  ;;  %v7414_v10 = vcombine.low %v340_v5, %v344_v6  ;;  %v332_v11 = vld [vmem:[#allocation8 + $0x180] sm:$0xff] }
  0xa5   :  { %v7417_v12 = vcombine.high %v341_v8, %v345_v9  ;;  %v336_v13 = vld [vmem:[#allocation8 + $0x1a0] sm:$0xff]  ;;  %v333_v14 = vld [vmem:[#allocation8 + $0x188] sm:$0xff]  ;;  %v7416_v20 = vcombine.low %v341_v8, %v345_v9  ;;  %v346_v8 = vld [vmem:[#allocation8 + $0x1f0] sm:$0xff] }
  0xa6   :  { %v337_v15 = vld [vmem:[#allocation8 + $0x1a8] sm:$0xff]  ;;  %711 = vmatprep.subr.bf16.mxu1 %v7415_v7  ;;  %v7407_v17 = vcombine.high %v332_v11, %v336_v13  ;;  %v324_v18 = vld [vmem:[#allocation8 + $0x140] sm:$0xff]  ;;  %v7406_v21 = vcombine.low %v332_v11, %v336_v13  ;;  %v342_v7 = vld [vmem:[#allocation8 + $0x1d0] sm:$0xff] }
  0xa7   :  { %v328_v19 = vld [vmem:[#allocation8 + $0x160] sm:$0xff]  ;;  %8317 = vmatpush3.bf16.msra.mxu0 %v8367_v3  ;;  %712 = vmatpush1.bf16.msra.mxu1 %v7414_v10  ;;  %v7409_v22 = vcombine.high %v333_v14, %v337_v15  ;;  %v325_v24 = vld [vmem:[#allocation8 + $0x148] sm:$0xff]  ;;  %v7408_v28 = vcombine.low %v333_v14, %v337_v15  ;;  %v343_v9 = vld [vmem:[#allocation8 + $0x1d8] sm:$0xff]  ;;  %v7419_v10 = vcombine.high %v342_v7, %v346_v8  ;;  %v9170_v15 = vmov 0  }
  0xa8   :  { %752 = vmatprep.subr.bf16.mxu0 %v7417_v12  ;;  %713 = vmatprep.subr.bf16.mxu1 %v7407_v17  ;;  %v7399_v23 = vcombine.high %v324_v18, %v328_v19  ;;  %v329_v25 = vld [vmem:[#allocation8 + $0x168] sm:$0xff]  ;;  %v316_v26 = vld [vmem:[#allocation8 + $0x100] sm:$0xff]  ;;  %v7398_v29 = vcombine.low %v324_v18, %v328_v19  ;;  %v347_v11 = vld [vmem:[#allocation8 + $0x1f8] sm:$0xff]  ;;  %v7418_v12 = vcombine.low %v342_v7, %v346_v8 }
  0xa9   :  { %v320_v27 = vld [vmem:[#allocation8 + $0x120] sm:$0xff]  ;;  %v317_v30 = vld [vmem:[#allocation8 + $0x108] sm:$0xff]  ;;  %v7401_v31 = vcombine.high %v325_v24, %v329_v25  ;;  %v7400_v36 = vcombine.low %v325_v24, %v329_v25  ;;  %v7420_v13 = vcombine.low %v343_v9, %v347_v11  ;;  %v7421_v14 = vcombine.high %v343_v9, %v347_v11  ;;  %743 = vmatprep.mubr.bf16.mxu1 %v9170_v15  ;;  %v334_v17 = vld [vmem:[#allocation8 + $0x190] sm:$0xff] }
  0xaa   :  { %8319 = vmatmul.mubr.msk.bf16.vlgmr.msra.gmra.mxu0 %vm240_vm1, %v221_v16  ;;  %v7391_v32 = vcombine.high %v316_v26, %v320_v27  ;;  %v321_v33 = vld [vmem:[#allocation8 + $0x128] sm:$0xff]  ;;  %v308_v34 = vld [vmem:[#allocation8 + $0xc0] sm:$0xff]  ;;  %v7390_v37 = vcombine.low %v316_v26, %v320_v27  ;;  %v7354_v16 = vld [vmem:[#allocation7] ss:$0 sm:$0xff] }
  0xab   :  { %753 = vmatpush1.bf16.msra.mxu0 %v7416_v20  ;;  %714 = vmatpush1.bf16.msra.mxu1 %v7406_v21  ;;  %v312_v35 = vld [vmem:[#allocation8 + $0xe0] sm:$0xff]  ;;  %v309_v38 = vld [vmem:[#allocation8 + $0xc8] sm:$0xff]  ;;  %v7393_v42 = vcombine.high %v317_v30, %v321_v33  ;;  %v7392_v44 = vcombine.low %v317_v30, %v321_v33  ;;  %v338_v19 = vld [vmem:[#allocation8 + $0x1b0] sm:$0xff] }
  0xac   :  { %754 = vmatprep.subr.bf16.mxu0 %v7409_v22  ;;  %715 = vmatprep.subr.bf16.mxu1 %v7399_v23  ;;  %v313_v39 = vld [vmem:[#allocation8 + $0xe8] sm:$0xff]  ;;  %v300_v40 = vld [vmem:[#allocation8 + $0x80] sm:$0xff]  ;;  %v7383_v43 = vcombine.high %v308_v34, %v312_v35  ;;  %v7382_v45 = vcombine.low %v308_v34, %v312_v35  ;;  %v335_v20 = vld [vmem:[#allocation8 + $0x198] sm:$0xff]  ;;  %v7411_v25 = vcombine.high %v334_v17, %v338_v19 }
  0xad   :  { %v304_v41 = vld [vmem:[#allocation8 + $0xa0] sm:$0xff]  ;;  %v301_v46 = vld [vmem:[#allocation8 + $0x88] sm:$0xff]  ;;  %v7385_v50 = vcombine.high %v309_v38, %v313_v39  ;;  %v7384_v52 = vcombine.low %v309_v38, %v313_v39  ;;  %784 = vmatprep.mubr.bf16.mxu0 %v9170_v15  ;;  %v339_v21 = vld [vmem:[#allocation8 + $0x1b8] sm:$0xff]  ;;  %v7410_v33 = vcombine.low %v334_v17, %v338_v19 }
  0xae   :  { %v305_v47 = vld [vmem:[#allocation8 + $0xa8] sm:$0xff]  ;;  %v292_v48 = vld [vmem:[#allocation8 + $0x40] sm:$0xff]  ;;  %v7375_v51 = vcombine.high %v300_v40, %v304_v41  ;;  %v7374_v53 = vcombine.low %v300_v40, %v304_v41  ;;  %v7413_v26 = vcombine.high %v335_v20, %v339_v21  ;;  %v326_v27 = vld [vmem:[#allocation8 + $0x150] sm:$0xff]  ;;  %v7412_v34 = vcombine.low %v335_v20, %v339_v21 }
  0xaf   :  { %755 = vmatpush1.bf16.msra.mxu0 %v7408_v28  ;;  %716 = vmatpush1.bf16.msra.mxu1 %v7398_v29  ;;  %v296_v49 = vld [vmem:[#allocation8 + $0x60] sm:$0xff]  ;;  %v293_v54 = vld [vmem:[#allocation8 + $0x48] sm:$0xff]  ;;  %v7377_v56 = vcombine.high %v301_v46, %v305_v47  ;;  %v7376_v58 = vcombine.low %v301_v46, %v305_v47  ;;  %v330_v29 = vld [vmem:[#allocation8 + $0x170] sm:$0xff] }
  0xb0   :  { %756 = vmatprep.subr.bf16.mxu0 %v7401_v31  ;;  %717 = vmatprep.subr.bf16.mxu1 %v7391_v32  ;;  %v297_v55 = vld [vmem:[#allocation8 + $0x68] sm:$0xff]  ;;  %v7367_v57 = vcombine.high %v292_v48, %v296_v49  ;;  %v7366_v59 = vcombine.low %v292_v48, %v296_v49  ;;  %v284_v62 = vld [vmem:[#allocation8] sm:$0xff]  ;;  %v327_v30 = vld [vmem:[#allocation8 + $0x158] sm:$0xff]  ;;  %v7403_v35 = vcombine.high %v326_v27, %v330_v29 }
  0xb1   :  { %v7369_v60 = vcombine.high %v293_v54, %v297_v55  ;;  %v7368_v61 = vcombine.low %v293_v54, %v297_v55  ;;  %v288_v63 = vld [vmem:[#allocation8 + $0x20] sm:$0xff]  ;;  %v285_v0 = vld [vmem:[#allocation8 + $0x8] sm:$0xff]  ;;  %v331_v31 = vld [vmem:[#allocation8 + $0x178] sm:$0xff]  ;;  %v7402_v41 = vcombine.low %v326_v27, %v330_v29 }
  0xb2   :  { %v7359_v2 = vcombine.high %v284_v62, %v288_v63  ;;  %v289_v3 = vld [vmem:[#allocation8 + $0x28] sm:$0xff]  ;;  %v7358_v6 = vcombine.low %v284_v62, %v288_v63  ;;  %v322_v38 = vld [vmem:[#allocation8 + $0x130] sm:$0xff]  ;;  %v319_v39 = vld [vmem:[#allocation8 + $0x118] sm:$0xff] }
  0xb3   :  { %757 = vmatpush1.bf16.msra.mxu0 %v7400_v36  ;;  %718 = vmatpush1.bf16.msra.mxu1 %v7390_v37  ;;  %v7360_v4 = vcombine.low %v285_v0, %v289_v3  ;;  %v7361_v5 = vcombine.high %v285_v0, %v289_v3  ;;  %v7405_v36 = vcombine.high %v327_v30, %v331_v31  ;;  %v318_v37 = vld [vmem:[#allocation8 + $0x110] sm:$0xff]  ;;  %v323_v40 = vld [vmem:[#allocation8 + $0x138] sm:$0xff]  ;;  %v1071_v17 = vld [vmem:[#allocation11 + $0x5e0] sm:$0xff] }
  0xb4   :  { %758 = vmatprep.subr.bf16.mxu0 %v7393_v42  ;;  %719 = vmatprep.subr.bf16.mxu1 %v7383_v43  ;;  %v7404_v42 = vcombine.low %v327_v30, %v331_v31  ;;  %v7395_v43 = vcombine.high %v318_v37, %v322_v38  ;;  %v314_v46 = vld [vmem:[#allocation8 + $0xf0] sm:$0xff]  ;;  %v311_v47 = vld [vmem:[#allocation8 + $0xd8] sm:$0xff]  ;;  %v7394_v49 = vcombine.low %v318_v37, %v322_v38  ;;  %v923_v31 = vld [vmem:[#allocation11 + $0x140] sm:$0xff] }
  0xb5   :  { %v315_v48 = vld [vmem:[#allocation8 + $0xf8] sm:$0xff]  ;;  %v306_v54 = vld [vmem:[#allocation8 + $0xb0] sm:$0xff] }
  0xb6   :  { %v303_v55 = vld [vmem:[#allocation8 + $0x98] sm:$0xff]  ;;  %v298_v62 = vld [vmem:[#allocation8 + $0x70] sm:$0xff] }
  0xb7   :  { %759 = vmatpush1.bf16.msra.mxu0 %v7392_v44  ;;  %720 = vmatpush1.bf16.msra.mxu1 %v7382_v45  ;;  %v7397_v44 = vcombine.high %v319_v39, %v323_v40  ;;  %v310_v45 = vld [vmem:[#allocation8 + $0xd0] sm:$0xff]  ;;  %v295_v63 = vld [vmem:[#allocation8 + $0x58] sm:$0xff] }
  0xb8   :  { %760 = vmatprep.subr.bf16.mxu0 %v7385_v50  ;;  %721 = vmatprep.subr.bf16.mxu1 %v7375_v51  ;;  %v7396_v50 = vcombine.low %v319_v39, %v323_v40  ;;  %v7387_v51 = vcombine.high %v310_v45, %v314_v46  ;;  %v299_v0 = vld [vmem:[#allocation8 + $0x78] sm:$0xff]  ;;  %v290_v7 = vld [vmem:[#allocation8 + $0x30] sm:$0xff]  ;;  %v915_v39 = vld [vmem:[#allocation11 + $0x100] sm:$0xff] }
  0xb9   :  { %v287_v8 = vld [vmem:[#allocation8 + $0x18] sm:$0xff]  ;;  %v7372_v11 = vcombine.low %v295_v63, %v299_v0  ;;  %v919_v40 = vld [vmem:[#allocation11 + $0x120] sm:$0xff] }
  0xba   :  { %v291_v9 = vld [vmem:[#allocation8 + $0x38] sm:$0xff] }
  0xbb   :  { %761 = vmatpush1.bf16.msra.mxu0 %v7384_v52  ;;  %722 = vmatpush1.bf16.msra.mxu1 %v7374_v53  ;;  %v7389_v52 = vcombine.high %v311_v47, %v315_v48  ;;  %v302_v53 = vld [vmem:[#allocation8 + $0x90] sm:$0xff]  ;;  %v7364_v19 = vcombine.low %v287_v8, %v291_v9 }
  0xbc   :  { %762 = vmatprep.subr.bf16.mxu0 %v7377_v56  ;;  %723 = vmatprep.subr.bf16.mxu1 %v7367_v57  ;;  %v307_v56 = vld [vmem:[#allocation8 + $0xb8] sm:$0xff]  ;;  %v7386_v57 = vcombine.low %v310_v45, %v314_v46  ;;  %v7455_v45 = vcombine.high %v915_v39, %v919_v40  ;;  %v907_v46 = vld [vmem:[#allocation11 + $0xc0] sm:$0xff] }
  0xbd   :  { %v7380_v3 = vcombine.low %v303_v55, %v307_v56 }
  0xbf   :  { %763 = vmatpush1.bf16.msra.mxu0 %v7376_v58  ;;  %724 = vmatpush1.bf16.msra.mxu1 %v7366_v59  ;;  %v7388_v58 = vcombine.low %v311_v47, %v315_v48  ;;  %v7379_v59 = vcombine.high %v302_v53, %v306_v54  ;;  %v911_v47 = vld [vmem:[#allocation11 + $0xe0] sm:$0xff] }
  0xc0   :  { %764 = vmatprep.subr.bf16.mxu0 %v7369_v60  ;;  %725 = vmatprep.subr.bf16.mxu1 %v7359_v2  ;;  %v7381_v60 = vcombine.high %v303_v55, %v307_v56  ;;  %v7378_v2 = vcombine.low %v302_v53, %v306_v54  ;;  %v1035_v48 = vld [vmem:[#allocation11 + $0x4c0] sm:$0xff] }
  0xc1   :  { %v899_v54 = vld [vmem:[#allocation11 + $0x80] sm:$0xff] }
  0xc2   :  { %v903_v55 = vld [vmem:[#allocation11 + $0xa0] sm:$0xff] }
  0xc3   :  { %765 = vmatpush1.bf16.msra.mxu0 %v7368_v61  ;;  %726 = vmatpush1.bf16.msra.mxu1 %v7358_v6  ;;  %v294_v61 = vld [vmem:[#allocation8 + $0x50] sm:$0xff]  ;;  %v1027_v56 = vld [vmem:[#allocation11 + $0x480] sm:$0xff] }
  0xc4   :  { %766 = vmatprep.subr.bf16.mxu0 %v7361_v5  ;;  %793 = vmatprep.subr.bf16.mxu1 %v7419_v10  ;;  %v7373_v5 = vcombine.high %v295_v63, %v299_v0  ;;  %v286_v6 = vld [vmem:[#allocation8 + $0x10] sm:$0xff]  ;;  %v7370_v10 = vcombine.low %v294_v61, %v298_v62  ;;  %v895_v63 = vld [vmem:[#allocation11 + $0x60] sm:$0xff] }
  0xc5   :  { %v1019_v0 = vld [vmem:[#allocation11 + $0x440] sm:$0xff] }
  0xc7   :  { %767 = vmatpush1.bf16.msra.mxu0 %v7360_v4  ;;  %v7371_v4 = vcombine.high %v294_v61, %v298_v62  ;;  %v891_v62 = vld [vmem:[#allocation11 + $0x40] sm:$0xff] }
  0xc8   :  { %834 = vmatprep.subr.bf16.mxu0 %v7421_v14  ;;  %v939_v14 = vld [vmem:[#allocation11 + $0x1c0] sm:$0xff] }
 0x16a   :  { %v278_v18 = vpop.f32.mrf.mxu0 }
 0x16b   :  { %v279_v22 = vadd.f32 %v7354_v16, %v278_v18  ;;  %v1067_v16 = vld [vmem:[#allocation11 + $0x5c0] sm:$0xff]  ;;  %v7362_v18 = vcombine.low %v286_v6, %v290_v7 }
 0x16c   :  { %v8320_v23 = vpop.f32.mrf.mxu0  ;;  %v7607_v21 = vcombine.high %v1067_v16, %v1071_v17 }
 0x16d   :  { %v9303_v24 = vpack.c.bf16 %v279_v22, %v279_v22  ;;  %v931_v22 = vld [vmem:[#allocation11 + $0x180] sm:$0xff] }
 0x16e   :  { %v281_v28 = vpop.f32.mrf.mxu0  ;;  %v935_v23 = vld [vmem:[#allocation11 + $0x1a0] sm:$0xff] }
 0x16f   :  { %744 = vmatmul.mubr.bf16.vlgmr.msra.gmra.mxu1 %v9303_v24  ;;  %785 = vmatmul.mubr.bf16.vlgmr.msra.gmra.mxu0 %v9303_v24  ;;  %v7606_v28 = vcombine.low %v1067_v16, %v1071_v17  ;;  %v7471_v29 = vcombine.high %v931_v22, %v935_v23  ;;  %v1007_v16 = vld [vmem:[#allocation11 + $0x3e0] sm:$0xff] }
 0x170   :  { %794 = vmatpush1.bf16.msra.mxu1 %v7418_v12  ;;  %835 = vmatpush1.bf16.msra.mxu0 %v7420_v13  ;;  %v8321_v32 = vpop.f32.mrf.mxu0  ;;  %v7363_v12 = vcombine.high %v286_v6, %v290_v7  ;;  %v7365_v13 = vcombine.high %v287_v8, %v291_v9  ;;  %v883_v7 = vld [vmem:[#allocation11] sm:$0xff] }
 0x171   :  { %795 = vmatprep.subr.bf16.mxu1 %v7411_v25  ;;  %836 = vmatprep.subr.bf16.mxu0 %v7413_v26  ;;  %v1059_v25 = vld [vmem:[#allocation11 + $0x580] sm:$0xff] }
 0x172   :  { %825 = vmatprep.mubr.bf16.mxu1 %v9170_v15  ;;  %866 = vmatprep.mubr.bf16.mxu0 %v9170_v15  ;;  %v943_v15 = vld [vmem:[#allocation11 + $0x1e0] sm:$0xff] }
 0x173   :  { %v7479_v20 = vcombine.high %v939_v14, %v943_v15  ;;  %v1063_v26 = vld [vmem:[#allocation11 + $0x5a0] sm:$0xff]  ;;  %v7478_v27 = vcombine.low %v939_v14, %v943_v15 }
 0x174   :  { %796 = vmatpush1.bf16.msra.mxu1 %v7410_v33  ;;  %837 = vmatpush1.bf16.msra.mxu0 %v7412_v34  ;;  %v7599_v30 = vcombine.high %v1059_v25, %v1063_v26  ;;  %v927_v32 = vld [vmem:[#allocation11 + $0x160] sm:$0xff] }
 0x175   :  { %797 = vmatprep.subr.bf16.mxu1 %v7403_v35  ;;  %838 = vmatprep.subr.bf16.mxu0 %v7405_v36  ;;  %v1051_v33 = vld [vmem:[#allocation11 + $0x540] sm:$0xff]  ;;  %v7470_v35 = vcombine.low %v931_v22, %v935_v23  ;;  %v7598_v36 = vcombine.low %v1059_v25, %v1063_v26  ;;  %v7463_v37 = vcombine.high %v923_v31, %v927_v32 }
 0x176   :  { %v1055_v34 = vld [vmem:[#allocation11 + $0x560] sm:$0xff] }
 0x177   :  { %v7591_v38 = vcombine.high %v1051_v33, %v1055_v34  ;;  %v887_v8 = vld [vmem:[#allocation11 + $0x20] sm:$0xff] }
 0x178   :  { %798 = vmatpush1.bf16.msra.mxu1 %v7402_v41  ;;  %839 = vmatpush1.bf16.msra.mxu0 %v7404_v42  ;;  %v1043_v41 = vld [vmem:[#allocation11 + $0x500] sm:$0xff] }
 0x179   :  { %799 = vmatprep.subr.bf16.mxu1 %v7395_v43  ;;  %840 = vmatprep.subr.bf16.mxu0 %v7397_v44  ;;  %v1047_v42 = vld [vmem:[#allocation11 + $0x520] sm:$0xff]  ;;  %v7462_v43 = vcombine.low %v923_v31, %v927_v32  ;;  %v7590_v44 = vcombine.low %v1051_v33, %v1055_v34 }
 0x17a   :  { %v1011_v9 = vld [vmem:[#allocation11 + $0x400] sm:$0xff] }
 0x17b   :  { %v1003_v15 = vld [vmem:[#allocation11 + $0x3c0] sm:$0xff] }
 0x17c   :  { %800 = vmatpush1.bf16.msra.mxu1 %v7394_v49  ;;  %841 = vmatpush1.bf16.msra.mxu0 %v7396_v50  ;;  %v1039_v49 = vld [vmem:[#allocation11 + $0x4e0] sm:$0xff]  ;;  %v7454_v50 = vcombine.low %v915_v39, %v919_v40 }
 0x17d   :  { %801 = vmatprep.subr.bf16.mxu1 %v7387_v51  ;;  %842 = vmatprep.subr.bf16.mxu0 %v7389_v52  ;;  %v7582_v51 = vcombine.low %v1043_v41, %v1047_v42  ;;  %v7447_v52 = vcombine.high %v907_v46, %v911_v47  ;;  %v7575_v53 = vcombine.high %v1035_v48, %v1039_v49  ;;  %v1131_v17 = vld [vmem:[#allocation11 + $0x7c0] sm:$0xff] }
 0x17e   :  { %v995_v23 = vld [vmem:[#allocation11 + $0x380] sm:$0xff] }
 0x17f   :  { %v999_v25 = vld [vmem:[#allocation11 + $0x3a0] sm:$0xff] }
 0x180   :  { %802 = vmatpush1.bf16.msra.mxu1 %v7386_v57  ;;  %843 = vmatpush1.bf16.msra.mxu0 %v7388_v58  ;;  %v1031_v57 = vld [vmem:[#allocation11 + $0x4a0] sm:$0xff]  ;;  %v7446_v58 = vcombine.low %v907_v46, %v911_v47 }
 0x181   :  { %803 = vmatprep.subr.bf16.mxu1 %v7379_v59  ;;  %844 = vmatprep.subr.bf16.mxu0 %v7381_v60  ;;  %v7574_v59 = vcombine.low %v1035_v48, %v1039_v49  ;;  %v7439_v60 = vcombine.high %v899_v54, %v903_v55  ;;  %v7567_v61 = vcombine.high %v1027_v56, %v1031_v57  ;;  %v1123_v26 = vld [vmem:[#allocation11 + $0x780] sm:$0xff] }
 0x182   :  { %v987_v32 = vld [vmem:[#allocation11 + $0x340] sm:$0xff] }
 0x183   :  { %v991_v33 = vld [vmem:[#allocation11 + $0x360] sm:$0xff] }
 0x184   :  { %804 = vmatpush1.bf16.msra.mxu1 %v7378_v2  ;;  %845 = vmatpush1.bf16.msra.mxu0 %v7380_v3  ;;  %v1023_v2 = vld [vmem:[#allocation11 + $0x460] sm:$0xff]  ;;  %v7438_v3 = vcombine.low %v899_v54, %v903_v55 }
 0x185   :  { %805 = vmatprep.subr.bf16.mxu1 %v7371_v4  ;;  %846 = vmatprep.subr.bf16.mxu0 %v7373_v5  ;;  %v7566_v4 = vcombine.low %v1027_v56, %v1031_v57  ;;  %v7431_v5 = vcombine.high %v891_v62, %v895_v63  ;;  %v7559_v6 = vcombine.high %v1019_v0, %v1023_v2  ;;  %v1115_v34 = vld [vmem:[#allocation11 + $0x740] sm:$0xff] }
 0x186   :  { %v979_v40 = vld [vmem:[#allocation11 + $0x300] sm:$0xff] }
 0x187   :  { %v975_v48 = vld [vmem:[#allocation11 + $0x2e0] sm:$0xff] }
 0x188   :  { %806 = vmatpush1.bf16.msra.mxu1 %v7370_v10  ;;  %847 = vmatpush1.bf16.msra.mxu0 %v7372_v11  ;;  %v1015_v10 = vld [vmem:[#allocation11 + $0x420] sm:$0xff]  ;;  %v7430_v11 = vcombine.low %v891_v62, %v895_v63 }
 0x189   :  { %807 = vmatprep.subr.bf16.mxu1 %v7363_v12  ;;  %848 = vmatprep.subr.bf16.mxu0 %v7365_v13  ;;  %v7558_v12 = vcombine.low %v1019_v0, %v1023_v2  ;;  %v7423_v13 = vcombine.high %v883_v7, %v887_v8  ;;  %v7551_v14 = vcombine.high %v1011_v9, %v1015_v10  ;;  %v1099_v49 = vld [vmem:[#allocation11 + $0x6c0] sm:$0xff] }
 0x18a   :  { %v9315_v55 = vld [vmem:[#allocation11 + $0xde0] sm:$0xff] }
 0x18b   :  { %v967_v62 = vld [vmem:[#allocation11 + $0x2a0] sm:$0xff] }
 0x18c   :  { %808 = vmatpush1.bf16.msra.mxu1 %v7362_v18  ;;  %849 = vmatpush1.bf16.msra.mxu0 %v7364_v19  ;;  %v1135_v18 = vld [vmem:[#allocation11 + $0x7e0] sm:$0xff]  ;;  %v7422_v19 = vcombine.low %v883_v7, %v887_v8 }
 0x18d   :  { %4005 = vmatprep.subr.bf16.mxu1 %v7479_v20  ;;  %4046 = vmatprep.subr.bf16.mxu0 %v7607_v21  ;;  %v7550_v20 = vcombine.low %v1011_v9, %v1015_v10  ;;  %v7543_v21 = vcombine.high %v1003_v15, %v1007_v16  ;;  %v7671_v22 = vcombine.high %v1131_v17, %v1135_v18  ;;  %v1091_v63 = vld [vmem:[#allocation11 + $0x680] sm:$0xff] }
 0x18e   :  { %v1095_v0 = vld [vmem:[#allocation11 + $0x6a0] sm:$0xff] }
 0x18f   :  { %826 = vmatmul.mubr.bf16.vlgmr.msra.gmra.mxu1 %v9303_v24  ;;  %867 = vmatmul.mubr.bf16.vlgmr.msra.gmra.mxu0 %v9303_v24  ;;  %v7583_v24 = vcombine.high %v1043_v41, %v1047_v42  ;;  %v983_v41 = vld [vmem:[#allocation11 + $0x320] sm:$0xff] }
 0x190   :  { %4006 = vmatpush1.bf16.msra.mxu1 %v7478_v27  ;;  %4047 = vmatpush1.bf16.msra.mxu0 %v7606_v28  ;;  %v1127_v27 = vld [vmem:[#allocation11 + $0x7a0] sm:$0xff]  ;;  %v7542_v28 = vcombine.low %v1003_v15, %v1007_v16  ;;  %v7519_v46 = vcombine.high %v979_v40, %v983_v41  ;;  %v7518_v54 = vcombine.low %v979_v40, %v983_v41 }
 0x191   :  { %4007 = vmatprep.subr.bf16.mxu1 %v7471_v29  ;;  %4048 = vmatprep.subr.bf16.mxu0 %v7599_v30  ;;  %v7670_v29 = vcombine.low %v1131_v17, %v1135_v18  ;;  %v7535_v30 = vcombine.high %v995_v23, %v999_v25  ;;  %v7663_v31 = vcombine.high %v1123_v26, %v1127_v27  ;;  %v1107_v42 = vld [vmem:[#allocation11 + $0x700] sm:$0xff] }
 0x192   :  { %v959_v7 = vld [vmem:[#allocation11 + $0x260] sm:$0xff] }
 0x193   :  { %v1083_v8 = vld [vmem:[#allocation11 + $0x640] sm:$0xff] }
 0x194   :  { %4008 = vmatpush1.bf16.msra.mxu1 %v7470_v35  ;;  %4049 = vmatpush1.bf16.msra.mxu0 %v7598_v36  ;;  %v1119_v35 = vld [vmem:[#allocation11 + $0x760] sm:$0xff]  ;;  %v7534_v36 = vcombine.low %v995_v23, %v999_v25 }
 0x195   :  { %4009 = vmatprep.subr.bf16.mxu1 %v7463_v37  ;;  %4050 = vmatprep.subr.bf16.mxu0 %v7591_v38  ;;  %v7662_v37 = vcombine.low %v1123_v26, %v1127_v27  ;;  %v7527_v38 = vcombine.high %v987_v32, %v991_v33  ;;  %v7655_v39 = vcombine.high %v1115_v34, %v1119_v35  ;;  %v1087_v9 = vld [vmem:[#allocation11 + $0x660] sm:$0xff]  ;;  %v351_v27 = vlaneseq }
 0x196   :  { %v951_v15 = vld [vmem:[#allocation11 + $0x220] sm:$0xff] }
 0x197   :  { %v1075_v16 = vld [vmem:[#allocation11 + $0x600] sm:$0xff] }
 0x198   :  { %4010 = vmatpush1.bf16.msra.mxu1 %v7462_v43  ;;  %4051 = vmatpush1.bf16.msra.mxu0 %v7590_v44  ;;  %v1111_v43 = vld [vmem:[#allocation11 + $0x720] sm:$0xff]  ;;  %v7526_v44 = vcombine.low %v987_v32, %v991_v33 }
 0x199   :  { %4011 = vmatprep.subr.bf16.mxu1 %v7455_v45  ;;  %4052 = vmatprep.subr.bf16.mxu0 %v7583_v24  ;;  %v7654_v45 = vcombine.low %v1115_v34, %v1119_v35  ;;  %v971_v24 = vld [vmem:[#allocation11 + $0x2c0] sm:$0xff]  ;;  %v7647_v47 = vcombine.high %v1107_v42, %v1111_v43  ;;  %v7646_v56 = vcombine.low %v1107_v42, %v1111_v43 }
 0x19a   :  { %v7510_v2 = vcombine.low %v971_v24, %v975_v48  ;;  %v1079_v17 = vld [vmem:[#allocation11 + $0x620] sm:$0xff] }
 0x19b   :  { %v7614_v23 = vcombine.low %v1075_v16, %v1079_v17 }
 0x19c   :  { %4012 = vmatpush1.bf16.msra.mxu1 %v7454_v50  ;;  %4053 = vmatpush1.bf16.msra.mxu0 %v7582_v51  ;;  %v1103_v50 = vld [vmem:[#allocation11 + $0x6e0] sm:$0xff] }
 0x19d   :  { %4013 = vmatprep.subr.bf16.mxu1 %v7447_v52  ;;  %4054 = vmatprep.subr.bf16.mxu0 %v7575_v53  ;;  %v9309_v51 = vld [vmem:[#allocation11 + $0x9c0] sm:$0xff] }
 0x19e   :  { %v9311_v52 = vld [vmem:[#allocation11 + $0x9e0] sm:$0xff] }
 0x19f   :  { %v9313_v53 = vld [vmem:[#allocation11 + $0xdc0] sm:$0xff]  ;;  %v7734_v57 = vcombine.low %v9309_v51, %v9311_v52  ;;  %v7735_v25 = vcombine.high %v9309_v51, %v9311_v52 }
 0x1a0   :  { %4014 = vmatpush1.bf16.msra.mxu1 %v7446_v58  ;;  %4055 = vmatpush1.bf16.msra.mxu0 %v7574_v59  ;;  %v7862_v58 = vcombine.low %v9313_v53, %v9315_v55  ;;  %v7511_v59 = vcombine.high %v971_v24, %v975_v48  ;;  %v7863_v26 = vcombine.high %v9313_v53, %v9315_v55  ;;  %v1163_v53 = vld [vmem:[#allocation11 + $0x8c0] sm:$0xff] }
 0x1a1   :  { %4015 = vmatprep.subr.bf16.mxu1 %v7439_v60  ;;  %4056 = vmatprep.subr.bf16.mxu0 %v7567_v61  ;;  %v7639_v60 = vcombine.high %v1099_v49, %v1103_v50  ;;  %v963_v61 = vld [vmem:[#allocation11 + $0x280] sm:$0xff] }
 0x1a2   :  { %v7502_v10 = vcombine.low %v963_v61, %v967_v62  ;;  %v1167_v55 = vld [vmem:[#allocation11 + $0x8e0] sm:$0xff] }
 0x1a4   :  { %4016 = vmatpush1.bf16.msra.mxu1 %v7438_v3  ;;  %4057 = vmatpush1.bf16.msra.mxu0 %v7566_v4  ;;  %v7638_v3 = vcombine.low %v1099_v49, %v1103_v50  ;;  %v7503_v4 = vcombine.high %v963_v61, %v967_v62  ;;  %v1187_v49 = vld [vmem:[#allocation11 + $0x980] sm:$0xff] }
 0x1a5   :  { %4017 = vmatprep.subr.bf16.mxu1 %v7431_v5  ;;  %4058 = vmatprep.subr.bf16.mxu0 %v7559_v6  ;;  %v7631_v5 = vcombine.high %v1091_v63, %v1095_v0  ;;  %v955_v6 = vld [vmem:[#allocation11 + $0x240] sm:$0xff] }
 0x1a6   :  { %v7494_v18 = vcombine.low %v955_v6, %v959_v7 }
 0x1a8   :  { %4018 = vmatpush1.bf16.msra.mxu1 %v7430_v11  ;;  %4059 = vmatpush1.bf16.msra.mxu0 %v7558_v12  ;;  %v7630_v11 = vcombine.low %v1091_v63, %v1095_v0  ;;  %v7495_v12 = vcombine.high %v955_v6, %v959_v7  ;;  %v1179_v6 = vld [vmem:[#allocation11 + $0x940] sm:$0xff] }
 0x1a9   :  { %4019 = vmatprep.subr.bf16.mxu1 %v7423_v13  ;;  %4060 = vmatprep.subr.bf16.mxu0 %v7551_v14  ;;  %v7623_v13 = vcombine.high %v1083_v8, %v1087_v9  ;;  %v947_v14 = vld [vmem:[#allocation11 + $0x200] sm:$0xff] }
 0x1aa   :  { %v1183_v7 = vld [vmem:[#allocation11 + $0x960] sm:$0xff] }
 0x1ac   :  { %4020 = vmatpush1.bf16.msra.mxu1 %v7422_v19  ;;  %4061 = vmatpush1.bf16.msra.mxu0 %v7550_v20  ;;  %v7622_v19 = vcombine.low %v1083_v8, %v1087_v9  ;;  %v7487_v20 = vcombine.high %v947_v14, %v951_v15  ;;  %v1307_v8 = vld [vmem:[#allocation11 + $0xd40] sm:$0xff] }
 0x1ad   :  { %4021 = vmatprep.subr.bf16.mxu1 %v7543_v21  ;;  %4062 = vmatprep.subr.bf16.mxu0 %v7671_v22  ;;  %v7615_v21 = vcombine.high %v1075_v16, %v1079_v17  ;;  %v7486_v22 = vcombine.low %v947_v14, %v951_v15  ;;  %v1311_v9 = vld [vmem:[#allocation11 + $0xd60] sm:$0xff] }
 0x1ae   :  { %v1171_v14 = vld [vmem:[#allocation11 + $0x900] sm:$0xff] }
 0x1af   :  { %v1175_v15 = vld [vmem:[#allocation11 + $0x920] sm:$0xff] }
 0x1b0   :  { %4022 = vmatpush2.bf16.msra.mxu1 %v7542_v28  ;;  %4063 = vmatpush2.bf16.msra.mxu0 %v7670_v29  ;;  %v9325_v28 = vshrl.u32 %v351_v27, 7  ;;  %v1299_v16 = vld [vmem:[#allocation11 + $0xd00] sm:$0xff]  ;;  %v7711_v51 = vcombine.high %v1171_v14, %v1175_v15 }
 0x1b1   :  { %4023 = vmatprep.subr.bf16.mxu1 %v7535_v30  ;;  %4064 = vmatprep.subr.bf16.mxu0 %v7663_v31  ;;  %v9333_v31 = vld [vmem:[#allocation10] sm:$0xff]  ;;  %v1303_v17 = vld [vmem:[#allocation11 + $0xd20] sm:$0xff] }
 0x1b2   :  { %v9328_v29 = vsub.s32 0, %v9325_v28  ;;  %v9331_v30 = vsub.s32 2, %v9325_v28  ;;  %v9336_v32 = vsub.s32 1, %v9325_v28  ;;  %v9339_v33 = vsub.s32 3, %v9325_v28  ;;  %v1283_v27 = vld [vmem:[#allocation11 + $0xc80] sm:$0xff] }
 0x1b3   :  { %v7839_v52 = vcombine.high %v1299_v16, %v1303_v17 }
 0x1b4   :  { %4024 = vmatpush2.bf16.msra.mxu1 %v7534_v36  ;;  %4065 = vmatpush2.bf16.msra.mxu0 %v7662_v37  ;;  %v354_v34 = vrot.slane %v9333_v31, %v9328_v29  ;;  %v362_v35 = vrot.slane %v9333_v31, %v9331_v30  ;;  %v358_v36 = vrot.slane %v9333_v31, %v9336_v32 }
 0x1b5   :  { %4025 = vmatprep.subr.bf16.mxu1 %v7527_v38  ;;  %4066 = vmatprep.subr.bf16.mxu0 %v7655_v39  ;;  %v366_v37 = vrot.slane %v9333_v31, %v9339_v33 }
 0x1b8   :  { %4026 = vmatpush2.bf16.msra.mxu1 %v7526_v44  ;;  %4067 = vmatpush2.bf16.msra.mxu0 %v7654_v45 }
 0x1b9   :  { %4027 = vmatprep.subr.bf16.mxu1 %v7519_v46  ;;  %4068 = vmatprep.subr.bf16.mxu0 %v7647_v47 }
 0x1bc   :  { %4028 = vmatpush2.bf16.msra.mxu1 %v7518_v54  ;;  %4069 = vmatpush2.bf16.msra.mxu0 %v7646_v56  ;;  %v1191_v56 = vld [vmem:[#allocation11 + $0x9a0] sm:$0xff] }
 0x1bd   :  { %4029 = vmatprep.subr.bf16.mxu1 %v7511_v59  ;;  %4070 = vmatprep.subr.bf16.mxu0 %v7639_v60  ;;  %v1315_v59 = vld [vmem:[#allocation11 + $0xd80] sm:$0xff] }
 0x1be   :  { %v1319_v60 = vld [vmem:[#allocation11 + $0xda0] sm:$0xff] }
 0x1c0   :  { %4030 = vmatpush2.bf16.msra.mxu1 %v7510_v2  ;;  %4071 = vmatpush2.bf16.msra.mxu0 %v7638_v3 }
 0x1c1   :  { %4031 = vmatprep.subr.bf16.mxu1 %v7503_v4  ;;  %4072 = vmatprep.subr.bf16.mxu0 %v7631_v5  ;;  %v7727_v4 = vcombine.high %v1187_v49, %v1191_v56  ;;  %v7855_v5 = vcombine.high %v1315_v59, %v1319_v60 }
 0x1c4   :  { %4032 = vmatpush2.bf16.msra.mxu1 %v7502_v10  ;;  %4073 = vmatpush2.bf16.msra.mxu0 %v7630_v11  ;;  %v7726_v10 = vcombine.low %v1187_v49, %v1191_v56  ;;  %v7854_v11 = vcombine.low %v1315_v59, %v1319_v60  ;;  %v1143_v49 = vld [vmem:[#allocation11 + $0x820] sm:$0xff] }
 0x1c5   :  { %4033 = vmatprep.subr.bf16.mxu1 %v7495_v12  ;;  %4074 = vmatprep.subr.bf16.mxu0 %v7623_v13  ;;  %v7719_v12 = vcombine.high %v1179_v6, %v1183_v7  ;;  %v7847_v13 = vcombine.high %v1307_v8, %v1311_v9 }
 0x1c8   :  { %4034 = vmatpush2.bf16.msra.mxu1 %v7494_v18  ;;  %4075 = vmatpush2.bf16.msra.mxu0 %v7622_v19  ;;  %v7718_v18 = vcombine.low %v1179_v6, %v1183_v7  ;;  %v7846_v19 = vcombine.low %v1307_v8, %v1311_v9  ;;  %v1259_v7 = vld [vmem:[#allocation11 + $0xbc0] sm:$0xff] }
 0x1c9   :  { %4035 = vmatprep.subr.bf16.mxu1 %v7487_v20  ;;  %4076 = vmatprep.subr.bf16.mxu0 %v7615_v21  ;;  %v7710_v20 = vcombine.low %v1171_v14, %v1175_v15  ;;  %v7838_v21 = vcombine.low %v1299_v16, %v1303_v17  ;;  %v1263_v8 = vld [vmem:[#allocation11 + $0xbe0] sm:$0xff] }
 0x1ca   :  { %v1387_v9 = vld [vmem:[#allocation11 + $0xfc0] sm:$0xff] }
 0x1cc   :  { %4036 = vmatpush2.bf16.msra.mxu1 %v7486_v22  ;;  %4077 = vmatpush2.bf16.msra.mxu0 %v7614_v23  ;;  %v7703_v22 = vcombine.high %v1163_v53, %v1167_v55 }
 0x1cd   :  { %4087 = vmatprep.subr.bf16.mxu1 %v7735_v25  ;;  %4128 = vmatprep.subr.bf16.mxu0 %v7863_v26  ;;  %v1155_v25 = vld [vmem:[#allocation11 + $0x880] sm:$0xff] }
 0x1ce   :  { %v1159_v26 = vld [vmem:[#allocation11 + $0x8a0] sm:$0xff] }
 0x22f   :  { %v745_v38 = vpop.f32.mrf.mxu1  ;;  %v786_v39 = vpop.f32.mrf.mxu0 }
 0x230   :  { %v746_v40 = vadd.f32 %v745_v38, %v354_v34  ;;  %v787_v41 = vadd.f32 %v786_v39, %v362_v35  ;;  %v1287_v34 = vld [vmem:[#allocation11 + $0xca0] sm:$0xff]  ;;  %v7702_v35 = vcombine.low %v1163_v53, %v1167_v55 }
 0x231   :  { %v747_v42 = vpop.f32.mrf.mxu1  ;;  %v788_v43 = vpop.f32.mrf.mxu0  ;;  %v7823_v38 = vcombine.high %v1283_v27, %v1287_v34  ;;  %v1147_v39 = vld [vmem:[#allocation11 + $0x840] sm:$0xff] }
 0x232   :  { %v748_v44 = vadd.f32 %v747_v42, %v358_v36  ;;  %v789_v45 = vadd.f32 %v788_v43, %v366_v37  ;;  %v875_v24 = vmax.f32 %v746_v40, 0.0  ;;  %v877_v46 = vmax.f32 %v787_v41, 0.0  ;;  %v1151_v40 = vld [vmem:[#allocation11 + $0x860] sm:$0xff] }
 0x233   :  { %v749_v47 = vpop.f32.mrf.mxu1  ;;  %v790_v48 = vpop.f32.mrf.mxu0  ;;  %v7695_v37 = vcombine.high %v1155_v25, %v1159_v26  ;;  %v1275_v41 = vld [vmem:[#allocation11 + $0xc40] sm:$0xff]  ;;  %v373_v43 = vsub.s32 5, %v9325_v28  ;;  %v7686_v60 = vcombine.low %v1147_v39, %v1151_v40 }
 0x234   :  { %v876_v50 = vmax.f32 %v748_v44, 0.0  ;;  %v878_v54 = vmax.f32 %v789_v45, 0.0  ;;  %v9353_v2 = vpack.c.bf16 %v875_v24, %v875_v24  ;;  %v9355_v3 = vpack.c.bf16 %v877_v46, %v877_v46  ;;  %v1279_v42 = vld [vmem:[#allocation11 + $0xc60] sm:$0xff] }
 0x235   :  { %v750_v61 = vpop.f32.mrf.mxu1  ;;  %v791_v62 = vpop.f32.mrf.mxu0  ;;  %v7694_v44 = vcombine.low %v1155_v25, %v1159_v26  ;;  %v7822_v45 = vcombine.low %v1283_v27, %v1287_v34  ;;  %v381_v24 = vsub.s32 7, %v9325_v28  ;;  %v7687_v46 = vcombine.high %v1147_v39, %v1151_v40  ;;  %v1139_v48 = vld [vmem:[#allocation11 + $0x800] sm:$0xff] }
 0x236   :  { %v9349_v63 = vpack.c.bf16 %v876_v50, %v876_v50  ;;  %v9351_v0 = vpack.c.bf16 %v878_v54, %v878_v54  ;;  %v7815_v47 = vcombine.high %v1275_v41, %v1279_v42  ;;  %v1267_v50 = vld [vmem:[#allocation11 + $0xc00] sm:$0xff]  ;;  %v374_v56 = vrot.slane %v9333_v31, %v373_v43 }
 0x237   :  { %v1271_v54 = vld [vmem:[#allocation11 + $0xc20] sm:$0xff]  ;;  %v382_v59 = vrot.slane %v9333_v31, %v381_v24  ;;  %v7814_v61 = vcombine.low %v1275_v41, %v1279_v42 }
 0x238   :  { %4037 = vmatprep.mubr.bf16.mxu1 %v9349_v63  ;;  %4078 = vmatprep.mubr.bf16.mxu0 %v9351_v0  ;;  %v7807_v6 = vcombine.high %v1267_v50, %v1271_v54  ;;  %v7806_v16 = vcombine.low %v1267_v50, %v1271_v54  ;;  %v1375_v39 = vld [vmem:[#allocation11 + $0xf60] sm:$0xff] }
 0x239   :  { %4038 = vmatmul.mubr.bf16.vlgmr.msra.gmra.mxu1 %v9353_v2  ;;  %4079 = vmatmul.mubr.bf16.vlgmr.msra.gmra.mxu0 %v9355_v3 }
 0x23a   :  { %4088 = vmatpush1.bf16.msra.mxu1 %v7734_v57  ;;  %4129 = vmatpush1.bf16.msra.mxu0 %v7862_v58  ;;  %v1291_v57 = vld [vmem:[#allocation11 + $0xcc0] sm:$0xff] }
 0x23b   :  { %4089 = vmatprep.subr.bf16.mxu1 %v7727_v4  ;;  %4130 = vmatprep.subr.bf16.mxu0 %v7855_v5  ;;  %v1295_v58 = vld [vmem:[#allocation11 + $0xce0] sm:$0xff]  ;;  %v7679_v5 = vcombine.high %v1139_v48, %v1143_v49 }
 0x23c   :  { %v7831_v23 = vcombine.high %v1291_v57, %v1295_v58  ;;  %v7830_v36 = vcombine.low %v1291_v57, %v1295_v58  ;;  %v1255_v57 = vld [vmem:[#allocation11 + $0xba0] sm:$0xff] }
 0x23d   :  { %v1379_v58 = vld [vmem:[#allocation11 + $0xf80] sm:$0xff] }
 0x23e   :  { %4090 = vmatpush1.bf16.msra.mxu1 %v7726_v10  ;;  %4131 = vmatpush1.bf16.msra.mxu0 %v7854_v11  ;;  %v1391_v10 = vld [vmem:[#allocation11 + $0xfe0] sm:$0xff] }
 0x23f   :  { %4091 = vmatprep.subr.bf16.mxu1 %v7719_v12  ;;  %4132 = vmatprep.subr.bf16.mxu0 %v7847_v13  ;;  %v7678_v13 = vcombine.low %v1139_v48, %v1143_v49  ;;  %v7926_v27 = vcombine.low %v1387_v9, %v1391_v10  ;;  %v1367_v48 = vld [vmem:[#allocation11 + $0xf20] sm:$0xff] }
 0x242   :  { %4092 = vmatpush1.bf16.msra.mxu1 %v7718_v18  ;;  %4133 = vmatpush1.bf16.msra.mxu0 %v7846_v19  ;;  %v7799_v19 = vcombine.high %v1259_v7, %v1263_v8 }
 0x243   :  { %4093 = vmatprep.subr.bf16.mxu1 %v7711_v51  ;;  %4134 = vmatprep.subr.bf16.mxu0 %v7839_v52  ;;  %v7927_v51 = vcombine.high %v1387_v9, %v1391_v10  ;;  %v1251_v52 = vld [vmem:[#allocation11 + $0xb80] sm:$0xff] }
 0x244   :  { %v7791_v34 = vcombine.high %v1251_v52, %v1255_v57  ;;  %v7790_v40 = vcombine.low %v1251_v52, %v1255_v57  ;;  %v1219_v10 = vld [vmem:[#allocation11 + $0xa80] sm:$0xff] }
 0x245   :  { %v1215_v52 = vld [vmem:[#allocation11 + $0xa60] sm:$0xff] }
 0x246   :  { %4094 = vmatpush1.bf16.msra.mxu1 %v7710_v20  ;;  %4135 = vmatpush1.bf16.msra.mxu0 %v7838_v21  ;;  %v1383_v20 = vld [vmem:[#allocation11 + $0xfa0] sm:$0xff] }
 0x247   :  { %4095 = vmatprep.subr.bf16.mxu1 %v7703_v22  ;;  %4136 = vmatprep.subr.bf16.mxu0 %v7831_v23  ;;  %v7798_v23 = vcombine.low %v1259_v7, %v1263_v8  ;;  %v7918_v41 = vcombine.low %v1379_v58, %v1383_v20 }
 0x24a   :  { %4096 = vmatpush1.bf16.msra.mxu1 %v7702_v35  ;;  %4137 = vmatpush1.bf16.msra.mxu0 %v7830_v36  ;;  %v7919_v35 = vcombine.high %v1379_v58, %v1383_v20  ;;  %v1243_v36 = vld [vmem:[#allocation11 + $0xb40] sm:$0xff] }
 0x24b   :  { %4097 = vmatprep.subr.bf16.mxu1 %v7695_v37  ;;  %4138 = vmatprep.subr.bf16.mxu0 %v7823_v38  ;;  %v1247_v37 = vld [vmem:[#allocation11 + $0xb60] sm:$0xff] }
 0x24c   :  { %v1371_v38 = vld [vmem:[#allocation11 + $0xf40] sm:$0xff]  ;;  %v7783_v42 = vcombine.high %v1243_v36, %v1247_v37  ;;  %v7782_v49 = vcombine.low %v1243_v36, %v1247_v37 }
 0x24d   :  { %v7910_v50 = vcombine.low %v1371_v38, %v1375_v39  ;;  %v1335_v36 = vld [vmem:[#allocation11 + $0xe20] sm:$0xff] }
 0x24e   :  { %4098 = vmatpush1.bf16.msra.mxu1 %v7694_v44  ;;  %4139 = vmatpush1.bf16.msra.mxu0 %v7822_v45  ;;  %v7911_v44 = vcombine.high %v1371_v38, %v1375_v39  ;;  %v1235_v45 = vld [vmem:[#allocation11 + $0xb00] sm:$0xff] }
 0x24f   :  { %v9375_v62 = vpop.f32.mrf.mxu1  ;;  %v9377_v4 = vpop.f32.mrf.mxu0  ;;  %4099 = vmatprep.subr.bf16.mxu1 %v7687_v46  ;;  %4140 = vmatprep.subr.bf16.mxu0 %v7815_v47  ;;  %v1239_v46 = vld [vmem:[#allocation11 + $0xb20] sm:$0xff] }
 0x250   :  { %v1363_v47 = vld [vmem:[#allocation11 + $0xf00] sm:$0xff]  ;;  %v7775_v54 = vcombine.high %v1235_v45, %v1239_v46 }
 0x251   :  { %v829_v11 = vpop.f32.mrf.mxu1  ;;  %v870_v12 = vpop.f32.mrf.mxu0  ;;  %v7902_v7 = vcombine.low %v1363_v47, %v1367_v48 }
 0x252   :  { %v830_v14 = vadd.f32 %v829_v11, %v374_v56  ;;  %v871_v15 = vadd.f32 %v870_v12, %v382_v59  ;;  %4100 = vmatpush1.bf16.msra.mxu1 %v7686_v60  ;;  %4141 = vmatpush1.bf16.msra.mxu0 %v7814_v61  ;;  %v7903_v56 = vcombine.high %v1363_v47, %v1367_v48  ;;  %v1227_v59 = vld [vmem:[#allocation11 + $0xac0] sm:$0xff] }
 0x253   :  { %v831_v17 = vpop.f32.mrf.mxu1  ;;  %v872_v18 = vpop.f32.mrf.mxu0  ;;  %4101 = vmatprep.subr.bf16.mxu1 %v7679_v5  ;;  %4142 = vmatprep.subr.bf16.mxu0 %v7807_v6  ;;  %v1231_v60 = vld [vmem:[#allocation11 + $0xae0] sm:$0xff]  ;;  %v7774_v6 = vcombine.low %v1235_v45, %v1239_v46  ;;  %v1068_v45 = vld [vmem:[#allocation11 + $0x5c8] sm:$0xff] }
 0x254   :  { %v880_v53 = vmax.f32 %v830_v14, 0.0  ;;  %v882_v55 = vmax.f32 %v871_v15, 0.0  ;;  %v1355_v61 = vld [vmem:[#allocation11 + $0xec0] sm:$0xff]  ;;  %v7767_v8 = vcombine.high %v1227_v59, %v1231_v60  ;;  %v369_v14 = vsub.s32 4, %v9325_v28  ;;  %v1072_v46 = vld [vmem:[#allocation11 + $0x5e8] sm:$0xff] }
 0x255   :  { %v832_v21 = vpop.f32.mrf.mxu1  ;;  %v873_v22 = vpop.f32.mrf.mxu0  ;;  %v1359_v5 = vld [vmem:[#allocation11 + $0xee0] sm:$0xff]  ;;  %v7766_v15 = vcombine.low %v1227_v59, %v1231_v60  ;;  %v377_v17 = vsub.s32 6, %v9325_v28  ;;  %v936_v59 = vld [vmem:[#allocation11 + $0x1a8] sm:$0xff] }
 0x256   :  { %v9379_v25 = vpack.c.bf16 %v880_v53, %v880_v53  ;;  %v9381_v26 = vpack.c.bf16 %v882_v55, %v882_v55  ;;  %4102 = vmatpush1.bf16.msra.mxu1 %v7678_v13  ;;  %4143 = vmatpush1.bf16.msra.mxu0 %v7806_v16  ;;  %v7895_v9 = vcombine.high %v1355_v61, %v1359_v5  ;;  %v1223_v11 = vld [vmem:[#allocation11 + $0xaa0] sm:$0xff]  ;;  %v1064_v60 = vld [vmem:[#allocation11 + $0x5a8] sm:$0xff] }
 0x257   :  { %4103 = vmatprep.subr.bf16.mxu1 %v7799_v19  ;;  %4144 = vmatprep.subr.bf16.mxu0 %v7927_v51  ;;  %v1347_v12 = vld [vmem:[#allocation11 + $0xe80] sm:$0xff]  ;;  %v7894_v16 = vcombine.low %v1355_v61, %v1359_v5  ;;  %v7759_v18 = vcombine.high %v1219_v10, %v1223_v11  ;;  %v370_v57 = vrot.slane %v9333_v31, %v369_v14 }
 0x258   :  { %4119 = vmatprep.mubr.bf16.mxu1 %v9379_v25  ;;  %4160 = vmatprep.mubr.bf16.mxu0 %v9381_v26  ;;  %v1351_v13 = vld [vmem:[#allocation11 + $0xea0] sm:$0xff]  ;;  %v7758_v58 = vcombine.low %v1219_v10, %v1223_v11  ;;  %v378_v21 = vrot.slane %v9333_v31, %v377_v17  ;;  %v924_v10 = vld [vmem:[#allocation11 + $0x148] sm:$0xff] }
 0x259   :  { %v7887_v19 = vcombine.high %v1347_v12, %v1351_v13  ;;  %v1211_v51 = vld [vmem:[#allocation11 + $0xa40] sm:$0xff]  ;;  %v7886_v20 = vcombine.low %v1347_v12, %v1351_v13  ;;  %v928_v11 = vld [vmem:[#allocation11 + $0x168] sm:$0xff] }
 0x25a   :  { %4104 = vmatpush2.bf16.msra.mxu1 %v7798_v23  ;;  %4145 = vmatpush2.bf16.msra.mxu0 %v7926_v27  ;;  %v1339_v53 = vld [vmem:[#allocation11 + $0xe40] sm:$0xff]  ;;  %v7751_v22 = vcombine.high %v1211_v51, %v1215_v52  ;;  %v7750_v37 = vcombine.low %v1211_v51, %v1215_v52  ;;  %v1052_v12 = vld [vmem:[#allocation11 + $0x548] sm:$0xff] }
 0x25b   :  { %4105 = vmatprep.subr.bf16.mxu1 %v7791_v34  ;;  %4146 = vmatprep.subr.bf16.mxu0 %v7919_v35  ;;  %v1343_v55 = vld [vmem:[#allocation11 + $0xe60] sm:$0xff]  ;;  %v1056_v13 = vld [vmem:[#allocation11 + $0x568] sm:$0xff] }
 0x25c   :  { %v7879_v23 = vcombine.high %v1339_v53, %v1343_v55  ;;  %v1203_v27 = vld [vmem:[#allocation11 + $0xa00] sm:$0xff]  ;;  %v7878_v38 = vcombine.low %v1339_v53, %v1343_v55  ;;  %v916_v51 = vld [vmem:[#allocation11 + $0x108] sm:$0xff] }
 0x25d   :  { %v1207_v34 = vld [vmem:[#allocation11 + $0xa20] sm:$0xff]  ;;  %v920_v52 = vld [vmem:[#allocation11 + $0x128] sm:$0xff] }
 0x25e   :  { %4106 = vmatpush2.bf16.msra.mxu1 %v7790_v40  ;;  %4147 = vmatpush2.bf16.msra.mxu0 %v7918_v41  ;;  %v1331_v35 = vld [vmem:[#allocation11 + $0xe00] sm:$0xff]  ;;  %v7743_v39 = vcombine.high %v1203_v27, %v1207_v34  ;;  %v828_v40 = vadd.f32 %v9375_v62, %v370_v57  ;;  %v869_v41 = vadd.f32 %v9377_v4, %v378_v21  ;;  %v932_v62 = vld [vmem:[#allocation11 + $0x188] sm:$0xff] }
 0x25f   :  { %4107 = vmatprep.subr.bf16.mxu1 %v7783_v42  ;;  %4148 = vmatprep.subr.bf16.mxu0 %v7911_v44  ;;  %v7871_v31 = vcombine.high %v1331_v35, %v1335_v36  ;;  %v940_v42 = vld [vmem:[#allocation11 + $0x1c8] sm:$0xff]  ;;  %v7742_v47 = vcombine.low %v1203_v27, %v1207_v34  ;;  %v7870_v48 = vcombine.low %v1331_v35, %v1335_v36 }
 0x260   :  { %v944_v44 = vld [vmem:[#allocation11 + $0x1e8] sm:$0xff]  ;;  %v7464_v57 = vcombine.low %v924_v10, %v928_v11  ;;  %v7456_v35 = vcombine.low %v916_v51, %v920_v52 }
 0x261   :  { %v1060_v4 = vld [vmem:[#allocation11 + $0x588] sm:$0xff]  ;;  %v7480_v61 = vcombine.low %v940_v42, %v944_v44 }
 0x262   :  { %4108 = vmatpush2.bf16.msra.mxu1 %v7782_v49  ;;  %4149 = vmatpush2.bf16.msra.mxu0 %v7910_v50  ;;  %v879_v49 = vmax.f32 %v828_v40, 0.0  ;;  %v881_v50 = vmax.f32 %v869_v41, 0.0  ;;  %v1044_v53 = vld [vmem:[#allocation11 + $0x508] sm:$0xff] }
 0x263   :  { %4109 = vmatprep.subr.bf16.mxu1 %v7775_v54  ;;  %4150 = vmatprep.subr.bf16.mxu0 %v7903_v56  ;;  %v7481_v54 = vcombine.high %v940_v42, %v944_v44  ;;  %v7609_v56 = vcombine.high %v1068_v45, %v1072_v46  ;;  %v1048_v55 = vld [vmem:[#allocation11 + $0x528] sm:$0xff] }
 0x264   :  { %v9395_v5 = vpack.c.bf16 %v879_v49, %v879_v49  ;;  %v7585_v21 = vcombine.high %v1044_v53, %v1048_v55  ;;  %v1036_v27 = vld [vmem:[#allocation11 + $0x4c8] sm:$0xff]  ;;  %v7584_v36 = vcombine.low %v1044_v53, %v1048_v55 }
 0x265   :  { %v1040_v34 = vld [vmem:[#allocation11 + $0x4e8] sm:$0xff] }
 0x266   :  { %4110 = vmatpush2.bf16.msra.mxu1 %v7774_v6  ;;  %4151 = vmatpush2.bf16.msra.mxu0 %v7902_v7  ;;  %v9397_v6 = vpack.c.bf16 %v881_v50, %v881_v50  ;;  %v7608_v7 = vcombine.low %v1068_v45, %v1072_v46  ;;  %v904_v40 = vld [vmem:[#allocation11 + $0xa8] sm:$0xff]  ;;  %v7576_v44 = vcombine.low %v1036_v27, %v1040_v34 }
 0x267   :  { %4111 = vmatprep.subr.bf16.mxu1 %v7767_v8  ;;  %4152 = vmatprep.subr.bf16.mxu0 %v7895_v9  ;;  %v7473_v8 = vcombine.high %v932_v62, %v936_v59  ;;  %v7601_v9 = vcombine.high %v1060_v4, %v1064_v60  ;;  %v1028_v41 = vld [vmem:[#allocation11 + $0x488] sm:$0xff] }
 0x268   :  { %v1020_v49 = vld [vmem:[#allocation11 + $0x448] sm:$0xff] }
 0x269   :  { %v1024_v50 = vld [vmem:[#allocation11 + $0x468] sm:$0xff] }
 0x26a   :  { %4112 = vmatpush2.bf16.msra.mxu1 %v7766_v15  ;;  %4153 = vmatpush2.bf16.msra.mxu0 %v7894_v16  ;;  %v7472_v15 = vcombine.low %v932_v62, %v936_v59  ;;  %v7600_v16 = vcombine.low %v1060_v4, %v1064_v60  ;;  %v7561_v59 = vcombine.high %v1020_v49, %v1024_v50  ;;  %v884_v4 = vld [vmem:[#allocation11 + $0x8] sm:$0xff] }
 0x26b   :  { %4113 = vmatprep.subr.bf16.mxu1 %v7759_v18  ;;  %4154 = vmatprep.subr.bf16.mxu0 %v7887_v19  ;;  %v7465_v18 = vcombine.high %v924_v10, %v928_v11  ;;  %v7593_v19 = vcombine.high %v1052_v12, %v1056_v13  ;;  %v888_v60 = vld [vmem:[#allocation11 + $0x28] sm:$0xff] }
 0x26c   :  { %v7425_v10 = vcombine.high %v884_v4, %v888_v60  ;;  %v996_v53 = vld [vmem:[#allocation11 + $0x388] sm:$0xff] }
 0x26d   :  { %v1000_v55 = vld [vmem:[#allocation11 + $0x3a8] sm:$0xff] }
 0x26e   :  { %4114 = vmatpush2.bf16.msra.mxu1 %v7758_v58  ;;  %4155 = vmatpush2.bf16.msra.mxu0 %v7886_v20  ;;  %v7592_v58 = vcombine.low %v1052_v12, %v1056_v13  ;;  %v7457_v20 = vcombine.high %v916_v51, %v920_v52  ;;  %v1004_v12 = vld [vmem:[#allocation11 + $0x3c8] sm:$0xff] }
 0x26f   :  { %4115 = vmatprep.subr.bf16.mxu1 %v7751_v22  ;;  %4156 = vmatprep.subr.bf16.mxu0 %v7879_v23  ;;  %v908_v22 = vld [vmem:[#allocation11 + $0xc8] sm:$0xff] }
 0x270   :  { %v912_v23 = vld [vmem:[#allocation11 + $0xe8] sm:$0xff] }
 0x271   :  { %v7448_v42 = vcombine.low %v908_v22, %v912_v23  ;;  %v1008_v13 = vld [vmem:[#allocation11 + $0x3e8] sm:$0xff] }
 0x272   :  { %4116 = vmatpush2.bf16.msra.mxu1 %v7750_v37  ;;  %4157 = vmatpush2.bf16.msra.mxu0 %v7878_v38  ;;  %v7449_v37 = vcombine.high %v908_v22, %v912_v23  ;;  %v7577_v38 = vcombine.high %v1036_v27, %v1040_v34  ;;  %v7545_v51 = vcombine.high %v1004_v12, %v1008_v13  ;;  %v988_v27 = vld [vmem:[#allocation11 + $0x348] sm:$0xff] }
 0x273   :  { %4117 = vmatprep.subr.bf16.mxu1 %v7743_v39  ;;  %4158 = vmatprep.subr.bf16.mxu0 %v7871_v31  ;;  %v900_v39 = vld [vmem:[#allocation11 + $0x88] sm:$0xff]  ;;  %v7537_v22 = vcombine.high %v996_v53, %v1000_v55 }
 0x274   :  { %v1032_v31 = vld [vmem:[#allocation11 + $0x4a8] sm:$0xff]  ;;  %v7441_v45 = vcombine.high %v900_v39, %v904_v40 }
 0x275   :  { %v7569_v46 = vcombine.high %v1028_v41, %v1032_v31  ;;  %v992_v34 = vld [vmem:[#allocation11 + $0x368] sm:$0xff] }
 0x276   :  { %4118 = vmatpush2.bf16.msra.mxu1 %v7742_v47  ;;  %4159 = vmatpush2.bf16.msra.mxu0 %v7870_v48  ;;  %v892_v47 = vld [vmem:[#allocation11 + $0x48] sm:$0xff] }
 0x277   :  { %4169 = vmatprep.subr.bf16.mxu1 %v7481_v54  ;;  %4210 = vmatprep.subr.bf16.mxu0 %v7609_v56  ;;  %v896_v48 = vld [vmem:[#allocation11 + $0x68] sm:$0xff]  ;;  %v7440_v54 = vcombine.low %v900_v39, %v904_v40  ;;  %v7568_v56 = vcombine.low %v1028_v41, %v1032_v31  ;;  %v7529_v39 = vcombine.high %v988_v27, %v992_v34 }
 0x278   :  { %v7433_v62 = vcombine.high %v892_v47, %v896_v48  ;;  %v980_v41 = vld [vmem:[#allocation11 + $0x308] sm:$0xff] }
 0x279   :  { %4120 = vmatmul.mubr.bf16.vlgmr.msra.gmra.mxu1 %v9395_v5  ;;  %4161 = vmatmul.mubr.bf16.vlgmr.msra.gmra.mxu0 %v9397_v6  ;;  %v984_v31 = vld [vmem:[#allocation11 + $0x328] sm:$0xff] }
 0x27a   :  { %4170 = vmatpush1.bf16.msra.mxu1 %v7480_v61  ;;  %4201 = vmatprep.mubr.bf16.mxu1 %v9349_v63  ;;  %v1012_v61 = vld [vmem:[#allocation11 + $0x408] sm:$0xff] }
 0x27b   :  { %4211 = vmatpush1.bf16.msra.mxu0 %v7608_v7  ;;  %4242 = vmatprep.mubr.bf16.mxu0 %v9351_v0  ;;  %v1016_v7 = vld [vmem:[#allocation11 + $0x428] sm:$0xff] }
 0x27c   :  { %4171 = vmatprep.subr.bf16.mxu1 %v7473_v8  ;;  %4212 = vmatprep.subr.bf16.mxu0 %v7601_v9  ;;  %v7432_v8 = vcombine.low %v892_v47, %v896_v48  ;;  %v7560_v9 = vcombine.low %v1020_v49, %v1024_v50  ;;  %v7553_v11 = vcombine.high %v1012_v61, %v1016_v7  ;;  %v972_v49 = vld [vmem:[#allocation11 + $0x2c8] sm:$0xff] }
 0x27d   :  { %v7521_v47 = vcombine.high %v980_v41, %v984_v31  ;;  %v976_v50 = vld [vmem:[#allocation11 + $0x2e8] sm:$0xff] }
 0x27e   :  { %4172 = vmatpush1.bf16.msra.mxu1 %v7472_v15  ;;  %v1132_v15 = vld [vmem:[#allocation11 + $0x7c8] sm:$0xff] }
 0x27f   :  { %4213 = vmatpush1.bf16.msra.mxu0 %v7600_v16  ;;  %4173 = vmatprep.subr.bf16.mxu1 %v7465_v18  ;;  %v1136_v16 = vld [vmem:[#allocation11 + $0x7e8] sm:$0xff]  ;;  %v7424_v18 = vcombine.low %v884_v4, %v888_v60  ;;  %v7513_v4 = vcombine.high %v972_v49, %v976_v50 }
 0x280   :  { %4214 = vmatprep.subr.bf16.mxu0 %v7593_v19  ;;  %v7552_v19 = vcombine.low %v1012_v61, %v1016_v7  ;;  %v7673_v52 = vcombine.high %v1132_v15, %v1136_v16  ;;  %v964_v61 = vld [vmem:[#allocation11 + $0x288] sm:$0xff] }
 0x281   :  { %v968_v7 = vld [vmem:[#allocation11 + $0x2a8] sm:$0xff] }
 0x282   :  { %4174 = vmatpush1.bf16.msra.mxu1 %v7464_v57  ;;  %v1124_v57 = vld [vmem:[#allocation11 + $0x788] sm:$0xff] }
 0x283   :  { %4215 = vmatpush1.bf16.msra.mxu0 %v7592_v58  ;;  %4175 = vmatprep.subr.bf16.mxu1 %v7457_v20  ;;  %v1128_v58 = vld [vmem:[#allocation11 + $0x7a8] sm:$0xff]  ;;  %v7544_v20 = vcombine.low %v1004_v12, %v1008_v13  ;;  %v7505_v12 = vcombine.high %v964_v61, %v968_v7 }
 0x284   :  { %4216 = vmatprep.subr.bf16.mxu0 %v7585_v21  ;;  %v7672_v21 = vcombine.low %v1132_v15, %v1136_v16  ;;  %v7665_v23 = vcombine.high %v1124_v57, %v1128_v58  ;;  %v956_v15 = vld [vmem:[#allocation11 + $0x248] sm:$0xff] }
 0x285   :  { %v960_v16 = vld [vmem:[#allocation11 + $0x268] sm:$0xff] }
 0x286   :  { %4176 = vmatpush1.bf16.msra.mxu1 %v7456_v35  ;;  %v1116_v35 = vld [vmem:[#allocation11 + $0x748] sm:$0xff] }
 0x287   :  { %4217 = vmatpush1.bf16.msra.mxu0 %v7584_v36  ;;  %4177 = vmatprep.subr.bf16.mxu1 %v7449_v37  ;;  %v1120_v36 = vld [vmem:[#allocation11 + $0x768] sm:$0xff]  ;;  %v7536_v37 = vcombine.low %v996_v53, %v1000_v55  ;;  %v7497_v53 = vcombine.high %v956_v15, %v960_v16 }
 0x288   :  { %4218 = vmatprep.subr.bf16.mxu0 %v7577_v38  ;;  %v7664_v38 = vcombine.low %v1124_v57, %v1128_v58  ;;  %v7657_v40 = vcombine.high %v1116_v35, %v1120_v36  ;;  %v948_v57 = vld [vmem:[#allocation11 + $0x208] sm:$0xff] }
 0x289   :  { %v952_v58 = vld [vmem:[#allocation11 + $0x228] sm:$0xff] }
 0x28a   :  { %4178 = vmatpush1.bf16.msra.mxu1 %v7448_v42  ;;  %v1108_v42 = vld [vmem:[#allocation11 + $0x708] sm:$0xff] }
 0x28b   :  { %4219 = vmatpush1.bf16.msra.mxu0 %v7576_v44  ;;  %4179 = vmatprep.subr.bf16.mxu1 %v7441_v45  ;;  %v1112_v44 = vld [vmem:[#allocation11 + $0x728] sm:$0xff]  ;;  %v7528_v45 = vcombine.low %v988_v27, %v992_v34  ;;  %v7489_v27 = vcombine.high %v948_v57, %v952_v58 }
 0x28c   :  { %4220 = vmatprep.subr.bf16.mxu0 %v7569_v46  ;;  %v7656_v46 = vcombine.low %v1116_v35, %v1120_v36  ;;  %v7649_v48 = vcombine.high %v1108_v42, %v1112_v44  ;;  %v1196_v35 = vld [vmem:[#allocation11 + $0x9c8] sm:$0xff] }
 0x28d   :  { %v1200_v36 = vld [vmem:[#allocation11 + $0x9e8] sm:$0xff] }
 0x28e   :  { %4180 = vmatpush1.bf16.msra.mxu1 %v7440_v54  ;;  %v1100_v54 = vld [vmem:[#allocation11 + $0x6c8] sm:$0xff] }
 0x28f   :  { %4221 = vmatpush1.bf16.msra.mxu0 %v7568_v56  ;;  %4181 = vmatprep.subr.bf16.mxu1 %v7433_v62  ;;  %v1104_v56 = vld [vmem:[#allocation11 + $0x6e8] sm:$0xff]  ;;  %v7520_v62 = vcombine.low %v980_v41, %v984_v31  ;;  %v7737_v41 = vcombine.high %v1196_v35, %v1200_v36 }
 0x290   :  { %4222 = vmatprep.subr.bf16.mxu0 %v7561_v59  ;;  %v7648_v59 = vcombine.low %v1108_v42, %v1112_v44  ;;  %v7641_v60 = vcombine.high %v1100_v54, %v1104_v56  ;;  %v1188_v42 = vld [vmem:[#allocation11 + $0x988] sm:$0xff] }
 0x291   :  { %v1192_v44 = vld [vmem:[#allocation11 + $0x9a8] sm:$0xff] }
 0x292   :  { %4182 = vmatpush1.bf16.msra.mxu1 %v7432_v8  ;;  %v1092_v8 = vld [vmem:[#allocation11 + $0x688] sm:$0xff] }
 0x293   :  { %4223 = vmatpush1.bf16.msra.mxu0 %v7560_v9  ;;  %4183 = vmatprep.subr.bf16.mxu1 %v7425_v10  ;;  %v1096_v9 = vld [vmem:[#allocation11 + $0x6a8] sm:$0xff]  ;;  %v7512_v10 = vcombine.low %v972_v49, %v976_v50  ;;  %v7729_v49 = vcombine.high %v1188_v42, %v1192_v44 }
 0x294   :  { %4224 = vmatprep.subr.bf16.mxu0 %v7553_v11  ;;  %v7640_v11 = vcombine.low %v1100_v54, %v1104_v56  ;;  %v7633_v13 = vcombine.high %v1092_v8, %v1096_v9  ;;  %v1180_v50 = vld [vmem:[#allocation11 + $0x948] sm:$0xff] }
 0x295   :  { %v1184_v54 = vld [vmem:[#allocation11 + $0x968] sm:$0xff] }
 0x296   :  { %4184 = vmatpush1.bf16.msra.mxu1 %v7424_v18  ;;  %v1084_v18 = vld [vmem:[#allocation11 + $0x648] sm:$0xff] }
 0x297   :  { %4225 = vmatpush1.bf16.msra.mxu0 %v7552_v19  ;;  %4185 = vmatprep.subr.bf16.mxu1 %v7545_v51  ;;  %v1088_v19 = vld [vmem:[#allocation11 + $0x668] sm:$0xff]  ;;  %v7504_v51 = vcombine.low %v964_v61, %v968_v7  ;;  %v7721_v61 = vcombine.high %v1180_v50, %v1184_v54 }
 0x298   :  { %4226 = vmatprep.subr.bf16.mxu0 %v7673_v52  ;;  %v7632_v52 = vcombine.low %v1092_v8, %v1096_v9  ;;  %v7625_v55 = vcombine.high %v1084_v18, %v1088_v19  ;;  %v1172_v8 = vld [vmem:[#allocation11 + $0x908] sm:$0xff] }
 0x299   :  { %v1176_v9 = vld [vmem:[#allocation11 + $0x928] sm:$0xff] }
 0x29a   :  { %4186 = vmatpush2.bf16.msra.mxu1 %v7544_v20  ;;  %v1076_v20 = vld [vmem:[#allocation11 + $0x608] sm:$0xff] }
 0x29b   :  { %4227 = vmatpush2.bf16.msra.mxu0 %v7672_v21  ;;  %4187 = vmatprep.subr.bf16.mxu1 %v7537_v22  ;;  %v1080_v21 = vld [vmem:[#allocation11 + $0x628] sm:$0xff]  ;;  %v7496_v22 = vcombine.low %v956_v15, %v960_v16  ;;  %v7713_v15 = vcombine.high %v1172_v8, %v1176_v9 }
 0x29c   :  { %4228 = vmatprep.subr.bf16.mxu0 %v7665_v23  ;;  %v7624_v23 = vcombine.low %v1084_v18, %v1088_v19  ;;  %v7617_v34 = vcombine.high %v1076_v20, %v1080_v21  ;;  %v1164_v18 = vld [vmem:[#allocation11 + $0x8c8] sm:$0xff] }
 0x29d   :  { %v1168_v19 = vld [vmem:[#allocation11 + $0x8e8] sm:$0xff] }
 0x29e   :  { %4188 = vmatpush2.bf16.msra.mxu1 %v7536_v37  ;;  %v1324_v37 = vld [vmem:[#allocation11 + $0xdc8] sm:$0xff] }
 0x29f   :  { %4229 = vmatpush2.bf16.msra.mxu0 %v7664_v38  ;;  %4189 = vmatprep.subr.bf16.mxu1 %v7529_v39  ;;  %v1328_v38 = vld [vmem:[#allocation11 + $0xde8] sm:$0xff]  ;;  %v7488_v39 = vcombine.low %v948_v57, %v952_v58  ;;  %v7705_v57 = vcombine.high %v1164_v18, %v1168_v19 }
 0x2a0   :  { %4230 = vmatprep.subr.bf16.mxu0 %v7657_v40  ;;  %v7616_v40 = vcombine.low %v1076_v20, %v1080_v21  ;;  %v7865_v31 = vcombine.high %v1324_v37, %v1328_v38  ;;  %v1156_v20 = vld [vmem:[#allocation11 + $0x888] sm:$0xff] }
 0x2a1   :  { %v1160_v21 = vld [vmem:[#allocation11 + $0x8a8] sm:$0xff] }
 0x2a2   :  { %4190 = vmatpush2.bf16.msra.mxu1 %v7528_v45  ;;  %v7736_v45 = vcombine.low %v1196_v35, %v1200_v36  ;;  %v7697_v35 = vcombine.high %v1156_v20, %v1160_v21 }
 0x2a3   :  { %4231 = vmatpush2.bf16.msra.mxu0 %v7656_v46  ;;  %4191 = vmatprep.subr.bf16.mxu1 %v7521_v47  ;;  %v1316_v46 = vld [vmem:[#allocation11 + $0xd88] sm:$0xff] }
 0x2a4   :  { %4232 = vmatprep.subr.bf16.mxu0 %v7649_v48  ;;  %v1320_v47 = vld [vmem:[#allocation11 + $0xda8] sm:$0xff]  ;;  %v7864_v48 = vcombine.low %v1324_v37, %v1328_v38 }
 0x2a5   :  { %v7857_v56 = vcombine.high %v1316_v46, %v1320_v47  ;;  %v1148_v37 = vld [vmem:[#allocation11 + $0x848] sm:$0xff] }
 0x2a6   :  { %4192 = vmatpush2.bf16.msra.mxu1 %v7520_v62  ;;  %v1308_v62 = vld [vmem:[#allocation11 + $0xd48] sm:$0xff] }
 0x2a7   :  { %4233 = vmatpush2.bf16.msra.mxu0 %v7648_v59  ;;  %4193 = vmatprep.subr.bf16.mxu1 %v7513_v4  ;;  %v1312_v59 = vld [vmem:[#allocation11 + $0xd68] sm:$0xff]  ;;  %v7728_v4 = vcombine.low %v1188_v42, %v1192_v44 }
 0x2a8   :  { %4234 = vmatprep.subr.bf16.mxu0 %v7641_v60  ;;  %v7856_v60 = vcombine.low %v1316_v46, %v1320_v47  ;;  %v7849_v7 = vcombine.high %v1308_v62, %v1312_v59  ;;  %v1152_v38 = vld [vmem:[#allocation11 + $0x868] sm:$0xff] }
 0x2a9   :  { %v7689_v42 = vcombine.high %v1148_v37, %v1152_v38  ;;  %v1144_v46 = vld [vmem:[#allocation11 + $0x828] sm:$0xff] }
 0x2aa   :  { %4194 = vmatpush2.bf16.msra.mxu1 %v7512_v10  ;;  %v1300_v10 = vld [vmem:[#allocation11 + $0xd08] sm:$0xff] }
 0x2ab   :  { %4235 = vmatpush2.bf16.msra.mxu0 %v7640_v11  ;;  %4195 = vmatprep.subr.bf16.mxu1 %v7505_v12  ;;  %v1304_v11 = vld [vmem:[#allocation11 + $0xd28] sm:$0xff]  ;;  %v7720_v12 = vcombine.low %v1180_v50, %v1184_v54 }
 0x2ac   :  { %4236 = vmatprep.subr.bf16.mxu0 %v7633_v13  ;;  %v7848_v13 = vcombine.low %v1308_v62, %v1312_v59  ;;  %v7841_v16 = vcombine.high %v1300_v10, %v1304_v11  ;;  %v1268_v47 = vld [vmem:[#allocation11 + $0xc08] sm:$0xff] }
 0x2ad   :  { %v1260_v62 = vld [vmem:[#allocation11 + $0xbc8] sm:$0xff] }
 0x2ae   :  { %4196 = vmatpush2.bf16.msra.mxu1 %v7504_v51  ;;  %v1292_v51 = vld [vmem:[#allocation11 + $0xcc8] sm:$0xff] }
 0x2af   :  { %4237 = vmatpush2.bf16.msra.mxu0 %v7632_v52  ;;  %4197 = vmatprep.subr.bf16.mxu1 %v7497_v53  ;;  %v1296_v52 = vld [vmem:[#allocation11 + $0xce8] sm:$0xff]  ;;  %v7712_v53 = vcombine.low %v1172_v8, %v1176_v9 }
 0x2b0   :  { %4238 = vmatprep.subr.bf16.mxu0 %v7625_v55  ;;  %v7840_v55 = vcombine.low %v1300_v10, %v1304_v11  ;;  %v7833_v58 = vcombine.high %v1292_v51, %v1296_v52  ;;  %v1264_v59 = vld [vmem:[#allocation11 + $0xbe8] sm:$0xff] }
 0x2b1   :  { %v7801_v8 = vcombine.high %v1260_v62, %v1264_v59  ;;  %v1252_v10 = vld [vmem:[#allocation11 + $0xb88] sm:$0xff] }
 0x2b2   :  { %4198 = vmatpush2.bf16.msra.mxu1 %v7496_v22  ;;  %v1284_v22 = vld [vmem:[#allocation11 + $0xc88] sm:$0xff] }
 0x2b3   :  { %4239 = vmatpush2.bf16.msra.mxu0 %v7624_v23  ;;  %4199 = vmatprep.subr.bf16.mxu1 %v7489_v27  ;;  %v1288_v23 = vld [vmem:[#allocation11 + $0xca8] sm:$0xff]  ;;  %v7704_v27 = vcombine.low %v1164_v18, %v1168_v19 }
 0x2b4   :  { %4240 = vmatprep.subr.bf16.mxu0 %v7617_v34  ;;  %v7832_v34 = vcombine.low %v1292_v51, %v1296_v52  ;;  %v7825_v36 = vcombine.high %v1284_v22, %v1288_v23  ;;  %v1256_v11 = vld [vmem:[#allocation11 + $0xba8] sm:$0xff] }
 0x2b5   :  { %v7793_v18 = vcombine.high %v1252_v10, %v1256_v11  ;;  %v1244_v51 = vld [vmem:[#allocation11 + $0xb48] sm:$0xff] }
 0x2b6   :  { %4200 = vmatpush2.bf16.msra.mxu1 %v7488_v39  ;;  %v1276_v39 = vld [vmem:[#allocation11 + $0xc48] sm:$0xff] }
 0x2b7   :  { %4241 = vmatpush2.bf16.msra.mxu0 %v7616_v40  ;;  %4251 = vmatprep.subr.bf16.mxu1 %v7737_v41  ;;  %v1280_v40 = vld [vmem:[#allocation11 + $0xc68] sm:$0xff]  ;;  %v7696_v41 = vcombine.low %v1156_v20, %v1160_v21 }
 0x2b8   :  { %4292 = vmatprep.subr.bf16.mxu0 %v7865_v31  ;;  %v7824_v31 = vcombine.low %v1284_v22, %v1288_v23  ;;  %v7817_v44 = vcombine.high %v1276_v39, %v1280_v40  ;;  %v7816_v50 = vcombine.low %v1276_v39, %v1280_v40  ;;  %v1248_v52 = vld [vmem:[#allocation11 + $0xb68] sm:$0xff] }
 0x2b9   :  { %4202 = vmatmul.mubr.bf16.vlgmr.msra.gmra.mxu1 %v9353_v2  ;;  %v7785_v20 = vcombine.high %v1244_v51, %v1248_v52  ;;  %v1236_v22 = vld [vmem:[#allocation11 + $0xb08] sm:$0xff] }
 0x2ba   :  { %4243 = vmatmul.mubr.bf16.vlgmr.msra.gmra.mxu0 %v9355_v3  ;;  %4252 = vmatpush1.bf16.msra.mxu1 %v7736_v45  ;;  %v1140_v45 = vld [vmem:[#allocation11 + $0x808] sm:$0xff] }
 0x2bb   :  { %4283 = vmatprep.mubr.bf16.mxu1 %v9379_v25  ;;  %4293 = vmatpush1.bf16.msra.mxu0 %v7864_v48  ;;  %v1272_v48 = vld [vmem:[#allocation11 + $0xc28] sm:$0xff]  ;;  %v7681_v54 = vcombine.high %v1140_v45, %v1144_v46 }
 0x2bc   :  { %4324 = vmatprep.mubr.bf16.mxu0 %v9381_v26  ;;  %4253 = vmatprep.subr.bf16.mxu1 %v7729_v49  ;;  %v7688_v49 = vcombine.low %v1148_v37, %v1152_v38  ;;  %v1240_v23 = vld [vmem:[#allocation11 + $0xb28] sm:$0xff] }
 0x2bd   :  { %4294 = vmatprep.subr.bf16.mxu0 %v7857_v56  ;;  %v7809_v56 = vcombine.high %v1268_v47, %v1272_v48  ;;  %v7777_v37 = vcombine.high %v1236_v22, %v1240_v23  ;;  %v1228_v39 = vld [vmem:[#allocation11 + $0xac8] sm:$0xff] }
 0x2be   :  { %4254 = vmatpush1.bf16.msra.mxu1 %v7728_v4  ;;  %v1388_v4 = vld [vmem:[#allocation11 + $0xfc8] sm:$0xff] }
 0x2bf   :  { %4295 = vmatpush1.bf16.msra.mxu0 %v7856_v60  ;;  %4255 = vmatprep.subr.bf16.mxu1 %v7721_v61  ;;  %v1392_v60 = vld [vmem:[#allocation11 + $0xfe8] sm:$0xff]  ;;  %v7680_v61 = vcombine.low %v1140_v45, %v1144_v46 }
 0x2c0   :  { %4296 = vmatprep.subr.bf16.mxu0 %v7849_v7  ;;  %v7808_v7 = vcombine.low %v1268_v47, %v1272_v48  ;;  %v7929_v9 = vcombine.high %v1388_v4, %v1392_v60  ;;  %v1232_v40 = vld [vmem:[#allocation11 + $0xae8] sm:$0xff] }
 0x2c1   :  { %v7769_v45 = vcombine.high %v1228_v39, %v1232_v40  ;;  %v1220_v47 = vld [vmem:[#allocation11 + $0xa88] sm:$0xff] }
 0x2c2   :  { %4256 = vmatpush1.bf16.msra.mxu1 %v7720_v12  ;;  %v1380_v12 = vld [vmem:[#allocation11 + $0xf88] sm:$0xff] }
 0x2c3   :  { %4297 = vmatpush1.bf16.msra.mxu0 %v7848_v13  ;;  %4257 = vmatprep.subr.bf16.mxu1 %v7713_v15  ;;  %v1384_v13 = vld [vmem:[#allocation11 + $0xfa8] sm:$0xff]  ;;  %v7800_v15 = vcombine.low %v1260_v62, %v1264_v59 }
 0x2c4   :  { %4298 = vmatprep.subr.bf16.mxu0 %v7841_v16  ;;  %v7928_v16 = vcombine.low %v1388_v4, %v1392_v60  ;;  %v7921_v19 = vcombine.high %v1380_v12, %v1384_v13  ;;  %v1224_v48 = vld [vmem:[#allocation11 + $0xaa8] sm:$0xff] }
 0x2c5   :  { %v7761_v62 = vcombine.high %v1220_v47, %v1224_v48  ;;  %v1212_v4 = vld [vmem:[#allocation11 + $0xa48] sm:$0xff] }
 0x2c6   :  { %4258 = vmatpush1.bf16.msra.mxu1 %v7712_v53  ;;  %v1372_v53 = vld [vmem:[#allocation11 + $0xf48] sm:$0xff] }
 0x2c7   :  { %4299 = vmatpush1.bf16.msra.mxu0 %v7840_v55  ;;  %4259 = vmatprep.subr.bf16.mxu1 %v7705_v57  ;;  %v1376_v55 = vld [vmem:[#allocation11 + $0xf68] sm:$0xff]  ;;  %v7792_v57 = vcombine.low %v1252_v10, %v1256_v11 }
 0x2c8   :  { %4300 = vmatprep.subr.bf16.mxu0 %v7833_v58  ;;  %v7920_v58 = vcombine.low %v1380_v12, %v1384_v13  ;;  %v7913_v21 = vcombine.high %v1372_v53, %v1376_v55  ;;  %v1216_v60 = vld [vmem:[#allocation11 + $0xa68] sm:$0xff] }
 0x2c9   :  { %v7753_v10 = vcombine.high %v1212_v4, %v1216_v60  ;;  %v1204_v12 = vld [vmem:[#allocation11 + $0xa08] sm:$0xff] }
 0x2ca   :  { %4260 = vmatpush1.bf16.msra.mxu1 %v7704_v27  ;;  %v1364_v27 = vld [vmem:[#allocation11 + $0xf08] sm:$0xff] }
 0x2cb   :  { %4301 = vmatpush1.bf16.msra.mxu0 %v7832_v34  ;;  %4261 = vmatprep.subr.bf16.mxu1 %v7697_v35  ;;  %v1368_v34 = vld [vmem:[#allocation11 + $0xf28] sm:$0xff]  ;;  %v7784_v35 = vcombine.low %v1244_v51, %v1248_v52 }
 0x2cc   :  { %4302 = vmatprep.subr.bf16.mxu0 %v7825_v36  ;;  %v7912_v36 = vcombine.low %v1372_v53, %v1376_v55  ;;  %v7905_v38 = vcombine.high %v1364_v27, %v1368_v34  ;;  %v1208_v13 = vld [vmem:[#allocation11 + $0xa28] sm:$0xff]  ;;  %v941_v53 = vld [vmem:[#allocation11 + $0x1d0] sm:$0xff] }
 0x2cd   :  { %v7745_v51 = vcombine.high %v1204_v12, %v1208_v13  ;;  %v945_v55 = vld [vmem:[#allocation11 + $0x1f0] sm:$0xff] }
 0x2ce   :  { %4262 = vmatpush1.bf16.msra.mxu1 %v7696_v41  ;;  %v1356_v41 = vld [vmem:[#allocation11 + $0xec8] sm:$0xff] }
 0x2cf   :  { %4303 = vmatpush1.bf16.msra.mxu0 %v7824_v31  ;;  %4263 = vmatprep.subr.bf16.mxu1 %v7689_v42  ;;  %v1360_v31 = vld [vmem:[#allocation11 + $0xee8] sm:$0xff]  ;;  %v7776_v42 = vcombine.low %v1236_v22, %v1240_v23  ;;  %v7483_v22 = vcombine.high %v941_v53, %v945_v55  ;;  %v9407_v23 = vld [vmem:[#allocation13] sm:$0xff] }
 0x2d0   :  { %4304 = vmatprep.subr.bf16.mxu0 %v7817_v44  ;;  %v7904_v44 = vcombine.low %v1364_v27, %v1368_v34  ;;  %v7897_v46 = vcombine.high %v1356_v41, %v1360_v31  ;;  %v933_v34 = vld [vmem:[#allocation11 + $0x190] sm:$0xff] }
 0x2d2   :  { %4264 = vmatpush1.bf16.msra.mxu1 %v7688_v49  ;;  %v1348_v49 = vld [vmem:[#allocation11 + $0xe88] sm:$0xff] }
 0x2d3   :  { %4305 = vmatpush1.bf16.msra.mxu0 %v7816_v50  ;;  %4265 = vmatprep.subr.bf16.mxu1 %v7681_v54  ;;  %v1352_v50 = vld [vmem:[#allocation11 + $0xea8] sm:$0xff]  ;;  %v7768_v54 = vcombine.low %v1228_v39, %v1232_v40  ;;  %v1065_v39 = vld [vmem:[#allocation11 + $0x5b0] sm:$0xff] }
 0x2d4   :  { %4306 = vmatprep.subr.bf16.mxu0 %v7809_v56  ;;  %v7896_v56 = vcombine.low %v1356_v41, %v1360_v31  ;;  %v7889_v59 = vcombine.high %v1348_v49, %v1352_v50  ;;  %v1412_v41 = vrot.slane %v9407_v23, %v9336_v32 }
 0x2d6   :  { %4266 = vmatpush1.bf16.msra.mxu1 %v7680_v61  ;;  %v1340_v61 = vld [vmem:[#allocation11 + $0xe48] sm:$0xff] }
 0x2d7   :  { %4307 = vmatpush1.bf16.msra.mxu0 %v7808_v7  ;;  %4267 = vmatprep.subr.bf16.mxu1 %v7801_v8  ;;  %v1344_v7 = vld [vmem:[#allocation11 + $0xe68] sm:$0xff]  ;;  %v7760_v8 = vcombine.low %v1220_v47, %v1224_v48  ;;  %v1053_v48 = vld [vmem:[#allocation11 + $0x550] sm:$0xff] }
 0x2d8   :  { %4308 = vmatprep.subr.bf16.mxu0 %v7929_v9  ;;  %v7888_v9 = vcombine.low %v1348_v49, %v1352_v50  ;;  %v7881_v11 = vcombine.high %v1340_v61, %v1344_v7  ;;  %v1057_v49 = vld [vmem:[#allocation11 + $0x570] sm:$0xff] }
 0x2da   :  { %4268 = vmatpush2.bf16.msra.mxu1 %v7800_v15  ;;  %v1332_v15 = vld [vmem:[#allocation11 + $0xe08] sm:$0xff] }
 0x2db   :  { %4309 = vmatpush2.bf16.msra.mxu0 %v7928_v16  ;;  %4269 = vmatprep.subr.bf16.mxu1 %v7793_v18  ;;  %v1336_v16 = vld [vmem:[#allocation11 + $0xe28] sm:$0xff]  ;;  %v7752_v18 = vcombine.low %v1212_v4, %v1216_v60 }
 0x2dc   :  { %4310 = vmatprep.subr.bf16.mxu0 %v7921_v19  ;;  %v7880_v19 = vcombine.low %v1340_v61, %v1344_v7  ;;  %v7873_v52 = vcombine.high %v1332_v15, %v1336_v16  ;;  %v7595_v7 = vcombine.high %v1053_v48, %v1057_v49 }
 0x2de   :  { %4270 = vmatpush2.bf16.msra.mxu1 %v7792_v57  ;;  %v1069_v57 = vld [vmem:[#allocation11 + $0x5d0] sm:$0xff] }
 0x2df   :  { %4311 = vmatpush2.bf16.msra.mxu0 %v7920_v58  ;;  %4271 = vmatprep.subr.bf16.mxu1 %v7785_v20  ;;  %v1073_v58 = vld [vmem:[#allocation11 + $0x5f0] sm:$0xff]  ;;  %v7744_v20 = vcombine.low %v1204_v12, %v1208_v13 }
 0x2e0   :  { %4312 = vmatprep.subr.bf16.mxu0 %v7913_v21  ;;  %v7872_v21 = vcombine.low %v1332_v15, %v1336_v16  ;;  %v7611_v27 = vcombine.high %v1069_v57, %v1073_v58  ;;  %v7610_v40 = vcombine.low %v1069_v57, %v1073_v58  ;;  %v1045_v12 = vld [vmem:[#allocation11 + $0x510] sm:$0xff] }
 0x2e1   :  { %v1049_v13 = vld [vmem:[#allocation11 + $0x530] sm:$0xff] }
 0x2e2   :  { %4272 = vmatpush2.bf16.msra.mxu1 %v7784_v35  ;;  %v937_v35 = vld [vmem:[#allocation11 + $0x1b0] sm:$0xff] }
 0x2e3   :  { %4313 = vmatpush2.bf16.msra.mxu0 %v7912_v36  ;;  %4273 = vmatprep.subr.bf16.mxu1 %v7777_v37  ;;  %v7482_v36 = vcombine.low %v941_v53, %v945_v55  ;;  %v1408_v37 = vrot.slane %v9407_v23, %v9328_v29  ;;  %v7475_v31 = vcombine.high %v933_v34, %v937_v35  ;;  %v909_v55 = vld [vmem:[#allocation11 + $0xd0] sm:$0xff] }
 0x2e4   :  { %4314 = vmatprep.subr.bf16.mxu0 %v7905_v38  ;;  %v1061_v38 = vld [vmem:[#allocation11 + $0x590] sm:$0xff]  ;;  %v7587_v53 = vcombine.high %v1045_v12, %v1049_v13 }
 0x2e5   :  { %v7603_v47 = vcombine.high %v1061_v38, %v1065_v39  ;;  %v913_v57 = vld [vmem:[#allocation11 + $0xf0] sm:$0xff] }
 0x2e6   :  { %4274 = vmatpush2.bf16.msra.mxu1 %v7776_v42  ;;  %v925_v42 = vld [vmem:[#allocation11 + $0x150] sm:$0xff] }
 0x2e7   :  { %4315 = vmatpush2.bf16.msra.mxu0 %v7904_v44  ;;  %4275 = vmatprep.subr.bf16.mxu1 %v7769_v45  ;;  %v929_v44 = vld [vmem:[#allocation11 + $0x170] sm:$0xff] }
 0x2e8   :  { %4316 = vmatprep.subr.bf16.mxu0 %v7897_v46  ;;  %v7467_v4 = vcombine.high %v925_v42, %v929_v44  ;;  %v7466_v16 = vcombine.low %v925_v42, %v929_v44  ;;  %v1037_v58 = vld [vmem:[#allocation11 + $0x4d0] sm:$0xff] }
 0x2e9   :  { %v893_v42 = vld [vmem:[#allocation11 + $0x50] sm:$0xff] }
 0x2ea   :  { %4276 = vmatpush2.bf16.msra.mxu1 %v7768_v54  ;;  %v7474_v54 = vcombine.low %v933_v34, %v937_v35  ;;  %v901_v35 = vld [vmem:[#allocation11 + $0x90] sm:$0xff] }
 0x2eb   :  { %4317 = vmatpush2.bf16.msra.mxu0 %v7896_v56  ;;  %4277 = vmatprep.subr.bf16.mxu1 %v7761_v62  ;;  %v897_v44 = vld [vmem:[#allocation11 + $0x70] sm:$0xff] }
 0x2ec   :  { %4318 = vmatprep.subr.bf16.mxu0 %v7889_v59  ;;  %v7602_v59 = vcombine.low %v1061_v38, %v1065_v39  ;;  %v1033_v38 = vld [vmem:[#allocation11 + $0x4b0] sm:$0xff]  ;;  %v7450_v39 = vcombine.low %v909_v55, %v913_v57 }
 0x2ee   :  { %4278 = vmatpush2.bf16.msra.mxu1 %v7760_v8  ;;  %v917_v8 = vld [vmem:[#allocation11 + $0x110] sm:$0xff] }
 0x2ef   :  { %4319 = vmatpush2.bf16.msra.mxu0 %v7888_v9  ;;  %4279 = vmatprep.subr.bf16.mxu1 %v7753_v10  ;;  %v921_v9 = vld [vmem:[#allocation11 + $0x130] sm:$0xff] }
 0x2f0   :  { %4320 = vmatprep.subr.bf16.mxu0 %v7881_v11 }
 0x2f2   :  { %4280 = vmatpush2.bf16.msra.mxu1 %v7752_v18 }
 0x2f3   :  { %4321 = vmatpush2.bf16.msra.mxu0 %v7880_v19  ;;  %4281 = vmatprep.subr.bf16.mxu1 %v7745_v51  ;;  %v7594_v51 = vcombine.low %v1053_v48, %v1057_v49  ;;  %v7435_v49 = vcombine.high %v893_v42, %v897_v44 }
 0x2f4   :  { %4322 = vmatprep.subr.bf16.mxu0 %v7873_v52  ;;  %v7459_v52 = vcombine.high %v917_v8, %v921_v9 }
 0x2f6   :  { %4282 = vmatpush2.bf16.msra.mxu1 %v7744_v20  ;;  %v1041_v20 = vld [vmem:[#allocation11 + $0x4f0] sm:$0xff] }
 0x2f7   :  { %4323 = vmatpush2.bf16.msra.mxu0 %v7872_v21  ;;  %4333 = vmatprep.subr.bf16.mxu1 %v7483_v22  ;;  %v7458_v21 = vcombine.low %v917_v8, %v921_v9  ;;  %v7586_v22 = vcombine.low %v1045_v12, %v1049_v13  ;;  %v7579_v34 = vcombine.high %v1037_v58, %v1041_v20  ;;  %v1005_v9 = vld [vmem:[#allocation11 + $0x3d0] sm:$0xff] }
 0x2f8   :  { %4374 = vmatprep.subr.bf16.mxu0 %v7611_v27  ;;  %v7451_v27 = vcombine.high %v909_v55, %v913_v57  ;;  %v1137_v12 = vld [vmem:[#allocation11 + $0x7f0] sm:$0xff] }
 0x2f9   :  { %4284 = vmatmul.mubr.bf16.vlgmr.msra.gmra.mxu1 %v9395_v5  ;;  %v4039_v45 = vpop.f32.mrf.mxu1  ;;  %v4080_v46 = vpop.f32.mrf.mxu0  ;;  %v1129_v55 = vld [vmem:[#allocation11 + $0x7b0] sm:$0xff] }
 0x2fa   :  { %4325 = vmatmul.mubr.bf16.vlgmr.msra.gmra.mxu0 %v9397_v6  ;;  %v4040_v50 = vadd.f32 %v4039_v45, %v1408_v37  ;;  %4334 = vmatpush1.bf16.msra.mxu1 %v7482_v36  ;;  %v905_v36 = vld [vmem:[#allocation11 + $0xb0] sm:$0xff] }
 0x2fb   :  { %4365 = vmatprep.mubr.bf16.mxu1 %v9349_v63  ;;  %4375 = vmatpush1.bf16.msra.mxu0 %v7610_v40  ;;  %v4041_v56 = vpop.f32.mrf.mxu1  ;;  %v4082_v62 = vpop.f32.mrf.mxu0  ;;  %v1029_v37 = vld [vmem:[#allocation11 + $0x490] sm:$0xff]  ;;  %v7578_v40 = vcombine.low %v1037_v58, %v1041_v20 }
 0x2fc   :  { %v9416_v60 = vadd.f32 %v4080_v46, %v4040_v50  ;;  %4406 = vmatprep.mubr.bf16.mxu0 %v9351_v0  ;;  %v4042_v61 = vadd.f32 %v4041_v56, %v1412_v41  ;;  %4335 = vmatprep.subr.bf16.mxu1 %v7475_v31  ;;  %v7443_v41 = vcombine.high %v901_v35, %v905_v36  ;;  %v1021_v45 = vld [vmem:[#allocation11 + $0x450] sm:$0xff] }
 0x2fd   :  { %4376 = vmatprep.subr.bf16.mxu0 %v7603_v47  ;;  %v4043_v10 = vpop.f32.mrf.mxu1  ;;  %v4084_v11 = vpop.f32.mrf.mxu0  ;;  %v7571_v31 = vcombine.high %v1029_v37, %v1033_v38  ;;  %v1025_v46 = vld [vmem:[#allocation11 + $0x470] sm:$0xff]  ;;  %v7442_v47 = vcombine.low %v901_v35, %v905_v36  ;;  %v7570_v48 = vcombine.low %v1029_v37, %v1033_v38 }
 0x2fe   :  { %v9419_v15 = vadd.f32 %v4082_v62, %v4042_v61  ;;  %4336 = vmatpush1.bf16.msra.mxu1 %v7474_v54  ;;  %v7563_v50 = vcombine.high %v1021_v45, %v1025_v46  ;;  %v885_v54 = vld [vmem:[#allocation11 + $0x10] sm:$0xff]  ;;  %v7562_v61 = vcombine.low %v1021_v45, %v1025_v46 }
 0x2ff   :  { %4377 = vmatpush1.bf16.msra.mxu0 %v7602_v59  ;;  %v4044_v18 = vpop.f32.mrf.mxu1  ;;  %v4085_v19 = vpop.f32.mrf.mxu0  ;;  %4337 = vmatprep.subr.bf16.mxu1 %v7467_v4  ;;  %v889_v56 = vld [vmem:[#allocation11 + $0x30] sm:$0xff]  ;;  %v7434_v4 = vcombine.low %v893_v42, %v897_v44 }
 0x300   :  { %4378 = vmatprep.subr.bf16.mxu0 %v7595_v7  ;;  %v1013_v62 = vld [vmem:[#allocation11 + $0x410] sm:$0xff]  ;;  %v7427_v7 = vcombine.high %v885_v54, %v889_v56  ;;  %v7426_v13 = vcombine.low %v885_v54, %v889_v56 }
 0x301   :  { %v1017_v59 = vld [vmem:[#allocation11 + $0x430] sm:$0xff] }
 0x302   :  { %4338 = vmatpush1.bf16.msra.mxu1 %v7466_v16  ;;  %v7555_v8 = vcombine.high %v1013_v62, %v1017_v59  ;;  %v1009_v10 = vld [vmem:[#allocation11 + $0x3f0] sm:$0xff]  ;;  %v7554_v16 = vcombine.low %v1013_v62, %v1017_v59 }
 0x303   :  { %4379 = vmatpush1.bf16.msra.mxu0 %v7594_v51  ;;  %4339 = vmatprep.subr.bf16.mxu1 %v7459_v52  ;;  %v1133_v11 = vld [vmem:[#allocation11 + $0x7d0] sm:$0xff]  ;;  %v7547_v18 = vcombine.high %v1005_v9, %v1009_v10  ;;  %v7546_v57 = vcombine.low %v1005_v9, %v1009_v10 }
 0x304   :  { %4380 = vmatprep.subr.bf16.mxu0 %v7587_v53  ;;  %v7675_v19 = vcombine.high %v1133_v11, %v1137_v12  ;;  %v997_v51 = vld [vmem:[#allocation11 + $0x390] sm:$0xff]  ;;  %v7674_v58 = vcombine.low %v1133_v11, %v1137_v12 }
 0x305   :  { %v1001_v52 = vld [vmem:[#allocation11 + $0x3b0] sm:$0xff] }
 0x306   :  { %4340 = vmatpush1.bf16.msra.mxu1 %v7458_v21  ;;  %v1125_v53 = vld [vmem:[#allocation11 + $0x790] sm:$0xff]  ;;  %v7539_v20 = vcombine.high %v997_v51, %v1001_v52  ;;  %v7538_v36 = vcombine.low %v997_v51, %v1001_v52 }
 0x307   :  { %4381 = vmatpush1.bf16.msra.mxu0 %v7586_v22  ;;  %4341 = vmatprep.subr.bf16.mxu1 %v7451_v27  ;;  %v7667_v21 = vcombine.high %v1125_v53, %v1129_v55  ;;  %v989_v22 = vld [vmem:[#allocation11 + $0x350] sm:$0xff]  ;;  %v7666_v37 = vcombine.low %v1125_v53, %v1129_v55 }
 0x308   :  { %4382 = vmatprep.subr.bf16.mxu0 %v7579_v34  ;;  %v993_v27 = vld [vmem:[#allocation11 + $0x370] sm:$0xff] }
 0x309   :  { %v1117_v34 = vld [vmem:[#allocation11 + $0x750] sm:$0xff]  ;;  %v7531_v38 = vcombine.high %v989_v22, %v993_v27  ;;  %v7530_v44 = vcombine.low %v989_v22, %v993_v27 }
 0x30a   :  { %4342 = vmatpush1.bf16.msra.mxu1 %v7450_v39  ;;  %v1121_v35 = vld [vmem:[#allocation11 + $0x770] sm:$0xff] }
 0x30b   :  { %4383 = vmatpush1.bf16.msra.mxu0 %v7578_v40  ;;  %4343 = vmatprep.subr.bf16.mxu1 %v7443_v41  ;;  %v7659_v39 = vcombine.high %v1117_v34, %v1121_v35  ;;  %v981_v40 = vld [vmem:[#allocation11 + $0x310] sm:$0xff]  ;;  %v7658_v45 = vcombine.low %v1117_v34, %v1121_v35 }
 0x30c   :  { %4384 = vmatprep.subr.bf16.mxu0 %v7571_v31  ;;  %v985_v41 = vld [vmem:[#allocation11 + $0x330] sm:$0xff] }
 0x30d   :  { %v1109_v31 = vld [vmem:[#allocation11 + $0x710] sm:$0xff]  ;;  %v7523_v46 = vcombine.high %v981_v40, %v985_v41  ;;  %v7522_v56 = vcombine.low %v981_v40, %v985_v41 }
 0x30e   :  { %4344 = vmatpush1.bf16.msra.mxu1 %v7442_v47  ;;  %v1113_v42 = vld [vmem:[#allocation11 + $0x730] sm:$0xff] }
 0x30f   :  { %4385 = vmatpush1.bf16.msra.mxu0 %v7570_v48  ;;  %4345 = vmatprep.subr.bf16.mxu1 %v7435_v49  ;;  %v7651_v47 = vcombine.high %v1109_v31, %v1113_v42  ;;  %v973_v48 = vld [vmem:[#allocation11 + $0x2d0] sm:$0xff]  ;;  %v7650_v62 = vcombine.low %v1109_v31, %v1113_v42 }
 0x310   :  { %4386 = vmatprep.subr.bf16.mxu0 %v7563_v50  ;;  %v977_v49 = vld [vmem:[#allocation11 + $0x2f0] sm:$0xff] }
 0x311   :  { %v1101_v50 = vld [vmem:[#allocation11 + $0x6d0] sm:$0xff]  ;;  %v7515_v59 = vcombine.high %v973_v48, %v977_v49  ;;  %v7514_v10 = vcombine.low %v973_v48, %v977_v49 }
 0x312   :  { %4346 = vmatpush1.bf16.msra.mxu1 %v7434_v4  ;;  %v1105_v54 = vld [vmem:[#allocation11 + $0x6f0] sm:$0xff] }
 0x313   :  { %4387 = vmatpush1.bf16.msra.mxu0 %v7562_v61  ;;  %4347 = vmatprep.subr.bf16.mxu1 %v7427_v7  ;;  %v7643_v4 = vcombine.high %v1101_v50, %v1105_v54  ;;  %v965_v61 = vld [vmem:[#allocation11 + $0x290] sm:$0xff]  ;;  %v7642_v11 = vcombine.low %v1101_v50, %v1105_v54 }
 0x314   :  { %4388 = vmatprep.subr.bf16.mxu0 %v7555_v8  ;;  %v969_v7 = vld [vmem:[#allocation11 + $0x2b0] sm:$0xff] }
 0x315   :  { %v1093_v8 = vld [vmem:[#allocation11 + $0x690] sm:$0xff]  ;;  %v7507_v12 = vcombine.high %v965_v61, %v969_v7  ;;  %v7506_v52 = vcombine.low %v965_v61, %v969_v7 }
 0x316   :  { %4348 = vmatpush1.bf16.msra.mxu1 %v7426_v13  ;;  %v1097_v9 = vld [vmem:[#allocation11 + $0x6b0] sm:$0xff] }
 0x317   :  { %4389 = vmatpush1.bf16.msra.mxu0 %v7554_v16  ;;  %4349 = vmatprep.subr.bf16.mxu1 %v7547_v18  ;;  %v7635_v13 = vcombine.high %v1093_v8, %v1097_v9  ;;  %v957_v16 = vld [vmem:[#allocation11 + $0x250] sm:$0xff]  ;;  %v7634_v53 = vcombine.low %v1093_v8, %v1097_v9 }
 0x318   :  { %4390 = vmatprep.subr.bf16.mxu0 %v7675_v19  ;;  %v961_v18 = vld [vmem:[#allocation11 + $0x270] sm:$0xff] }
 0x319   :  { %v1085_v19 = vld [vmem:[#allocation11 + $0x650] sm:$0xff]  ;;  %v7499_v55 = vcombine.high %v957_v16, %v961_v18  ;;  %v7498_v27 = vcombine.low %v957_v16, %v961_v18 }
 0x31a   :  { %4350 = vmatpush2.bf16.msra.mxu1 %v7546_v57  ;;  %v1089_v51 = vld [vmem:[#allocation11 + $0x670] sm:$0xff] }
 0x31b   :  { %4391 = vmatpush2.bf16.msra.mxu0 %v7674_v58  ;;  %4351 = vmatprep.subr.bf16.mxu1 %v7539_v20  ;;  %v7627_v57 = vcombine.high %v1085_v19, %v1089_v51  ;;  %v949_v58 = vld [vmem:[#allocation11 + $0x210] sm:$0xff]  ;;  %v7626_v34 = vcombine.low %v1085_v19, %v1089_v51 }
 0x31c   :  { %4392 = vmatprep.subr.bf16.mxu0 %v7667_v21  ;;  %v953_v20 = vld [vmem:[#allocation11 + $0x230] sm:$0xff] }
 0x31d   :  { %v1077_v21 = vld [vmem:[#allocation11 + $0x610] sm:$0xff]  ;;  %v7491_v35 = vcombine.high %v949_v58, %v953_v20  ;;  %v7490_v41 = vcombine.low %v949_v58, %v953_v20 }
 0x31e   :  { %4352 = vmatpush2.bf16.msra.mxu1 %v7538_v36  ;;  %v1081_v22 = vld [vmem:[#allocation11 + $0x630] sm:$0xff] }
 0x31f   :  { %4393 = vmatpush2.bf16.msra.mxu0 %v7666_v37  ;;  %4353 = vmatprep.subr.bf16.mxu1 %v7531_v38  ;;  %v7619_v36 = vcombine.high %v1077_v21, %v1081_v22  ;;  %v1197_v37 = vld [vmem:[#allocation11 + $0x9d0] sm:$0xff]  ;;  %v7618_v31 = vcombine.low %v1077_v21, %v1081_v22 }
 0x320   :  { %4394 = vmatprep.subr.bf16.mxu0 %v7659_v39  ;;  %v1201_v38 = vld [vmem:[#allocation11 + $0x9f0] sm:$0xff] }
 0x321   :  { %v1325_v39 = vld [vmem:[#allocation11 + $0xdd0] sm:$0xff]  ;;  %v7739_v42 = vcombine.high %v1197_v37, %v1201_v38 }
 0x322   :  { %4354 = vmatpush2.bf16.msra.mxu1 %v7530_v44  ;;  %v1329_v40 = vld [vmem:[#allocation11 + $0xdf0] sm:$0xff] }
 0x323   :  { %4395 = vmatpush2.bf16.msra.mxu0 %v7658_v45  ;;  %4355 = vmatprep.subr.bf16.mxu1 %v7523_v46  ;;  %v7867_v44 = vcombine.high %v1325_v39, %v1329_v40  ;;  %v1189_v45 = vld [vmem:[#allocation11 + $0x990] sm:$0xff]  ;;  %v7866_v50 = vcombine.low %v1325_v39, %v1329_v40 }
 0x324   :  { %4396 = vmatprep.subr.bf16.mxu0 %v7651_v47  ;;  %v1193_v46 = vld [vmem:[#allocation11 + $0x9b0] sm:$0xff]  ;;  %v7738_v47 = vcombine.low %v1197_v37, %v1201_v38 }
 0x325   :  { %v1317_v48 = vld [vmem:[#allocation11 + $0xd90] sm:$0xff]  ;;  %v7731_v54 = vcombine.high %v1189_v45, %v1193_v46 }
 0x326   :  { %4356 = vmatpush2.bf16.msra.mxu1 %v7522_v56  ;;  %v1321_v49 = vld [vmem:[#allocation11 + $0xdb0] sm:$0xff] }
 0x327   :  { %4397 = vmatpush2.bf16.msra.mxu0 %v7650_v62  ;;  %4357 = vmatprep.subr.bf16.mxu1 %v7515_v59  ;;  %v1181_v56 = vld [vmem:[#allocation11 + $0x950] sm:$0xff]  ;;  %v7859_v61 = vcombine.high %v1317_v48, %v1321_v49 }
 0x328   :  { %4398 = vmatprep.subr.bf16.mxu0 %v7643_v4  ;;  %v1185_v62 = vld [vmem:[#allocation11 + $0x970] sm:$0xff] }
 0x329   :  { %v1309_v7 = vld [vmem:[#allocation11 + $0xd50] sm:$0xff]  ;;  %v7723_v16 = vcombine.high %v1181_v56, %v1185_v62  ;;  %v7722_v21 = vcombine.low %v1181_v56, %v1185_v62 }
 0x32a   :  { %4358 = vmatpush2.bf16.msra.mxu1 %v7514_v10  ;;  %v1313_v8 = vld [vmem:[#allocation11 + $0xd70] sm:$0xff]  ;;  %v7730_v10 = vcombine.low %v1189_v45, %v1193_v46 }
 0x32b   :  { %4399 = vmatpush2.bf16.msra.mxu0 %v7642_v11  ;;  %4359 = vmatprep.subr.bf16.mxu1 %v7507_v12  ;;  %v7851_v51 = vcombine.high %v1309_v7, %v1313_v8  ;;  %v1305_v58 = vld [vmem:[#allocation11 + $0xd30] sm:$0xff] }
 0x32c   :  { %4400 = vmatprep.subr.bf16.mxu0 %v7635_v13  ;;  %v7858_v13 = vcombine.low %v1317_v48, %v1321_v49  ;;  %v1169_v37 = vld [vmem:[#allocation11 + $0x8f0] sm:$0xff] }
 0x32d   :  { %v1293_v38 = vld [vmem:[#allocation11 + $0xcd0] sm:$0xff] }
 0x32e   :  { %4360 = vmatpush2.bf16.msra.mxu1 %v7506_v52  ;;  %v1177_v52 = vld [vmem:[#allocation11 + $0x930] sm:$0xff] }
 0x32f   :  { %4401 = vmatpush2.bf16.msra.mxu0 %v7634_v53  ;;  %4361 = vmatprep.subr.bf16.mxu1 %v7499_v55  ;;  %v1297_v39 = vld [vmem:[#allocation11 + $0xcf0] sm:$0xff] }
 0x330   :  { %4402 = vmatprep.subr.bf16.mxu0 %v7627_v57  ;;  %v1301_v57 = vld [vmem:[#allocation11 + $0xd10] sm:$0xff]  ;;  %v7834_v49 = vcombine.low %v1293_v38, %v1297_v39 }
 0x331   :  { %v1161_v45 = vld [vmem:[#allocation11 + $0x8b0] sm:$0xff] }
 0x332   :  { %4362 = vmatpush2.bf16.msra.mxu1 %v7498_v27  ;;  %v1285_v46 = vld [vmem:[#allocation11 + $0xc90] sm:$0xff] }
 0x333   :  { %4403 = vmatpush2.bf16.msra.mxu0 %v7626_v34  ;;  %4363 = vmatprep.subr.bf16.mxu1 %v7491_v35  ;;  %v7850_v34 = vcombine.low %v1309_v7, %v1313_v8  ;;  %v1149_v56 = vld [vmem:[#allocation11 + $0x850] sm:$0xff] }
 0x334   :  { %4404 = vmatprep.subr.bf16.mxu0 %v7619_v36  ;;  %v1165_v36 = vld [vmem:[#allocation11 + $0x8d0] sm:$0xff] }
 0x335   :  { %v7706_v48 = vcombine.low %v1165_v36, %v1169_v37  ;;  %v1153_v62 = vld [vmem:[#allocation11 + $0x870] sm:$0xff] }
 0x336   :  { %4364 = vmatpush2.bf16.msra.mxu1 %v7490_v41  ;;  %v7842_v41 = vcombine.low %v1301_v57, %v1305_v58  ;;  %v7691_v8 = vcombine.high %v1149_v56, %v1153_v62 }
 0x337   :  { %4405 = vmatpush2.bf16.msra.mxu0 %v7618_v31  ;;  %4415 = vmatprep.subr.bf16.mxu1 %v7739_v42  ;;  %v7707_v31 = vcombine.high %v1165_v36, %v1169_v37  ;;  %v7835_v42 = vcombine.high %v1293_v38, %v1297_v39  ;;  %v1385_v36 = vld [vmem:[#allocation11 + $0xfb0] sm:$0xff] }
 0x338   :  { %4456 = vmatprep.subr.bf16.mxu0 %v7867_v44  ;;  %v1157_v44 = vld [vmem:[#allocation11 + $0x890] sm:$0xff] }
 0x339   :  { %v4121_v59 = vpop.f32.mrf.mxu1  ;;  %v4162_v4 = vpop.f32.mrf.mxu0  ;;  %4366 = vmatmul.mubr.bf16.vlgmr.msra.gmra.mxu1 %v9353_v2 }
 0x33a   :  { %v4122_v9 = vadd.f32 %v4121_v59, %v9416_v60  ;;  %4407 = vmatmul.mubr.bf16.vlgmr.msra.gmra.mxu0 %v9355_v3  ;;  %4416 = vmatpush1.bf16.msra.mxu1 %v7738_v47  ;;  %v1173_v60 = vld [vmem:[#allocation11 + $0x910] sm:$0xff] }
 0x33b   :  { %4447 = vmatprep.mubr.bf16.mxu1 %v9379_v25  ;;  %4457 = vmatpush1.bf16.msra.mxu0 %v7866_v50  ;;  %v4123_v11 = vpop.f32.mrf.mxu1  ;;  %v4164_v12 = vpop.f32.mrf.mxu0  ;;  %v7715_v35 = vcombine.high %v1173_v60, %v1177_v52  ;;  %v7714_v40 = vcombine.low %v1173_v60, %v1177_v52  ;;  %v1289_v47 = vld [vmem:[#allocation11 + $0xcb0] sm:$0xff]  ;;  %v7699_v50 = vcombine.high %v1157_v44, %v1161_v45 }
 0x33c   :  { %v9425_v18 = vadd.f32 %v4162_v4, %v4122_v9  ;;  %4488 = vmatprep.mubr.bf16.mxu0 %v9381_v26  ;;  %v4124_v19 = vadd.f32 %v4123_v11, %v9419_v15  ;;  %4417 = vmatprep.subr.bf16.mxu1 %v7731_v54  ;;  %v7843_v15 = vcombine.high %v1301_v57, %v1305_v58  ;;  %v1277_v59 = vld [vmem:[#allocation11 + $0xc50] sm:$0xff] }
 0x33d   :  { %v4125_v53 = vpop.f32.mrf.mxu1  ;;  %v4166_v55 = vpop.f32.mrf.mxu0  ;;  %4458 = vmatprep.subr.bf16.mxu0 %v7859_v61  ;;  %v7827_v54 = vcombine.high %v1285_v46, %v1289_v47  ;;  %v1281_v4 = vld [vmem:[#allocation11 + $0xc70] sm:$0xff]  ;;  %v7698_v61 = vcombine.low %v1157_v44, %v1161_v45  ;;  %v7826_v7 = vcombine.low %v1285_v46, %v1289_v47 }
 0x33e   :  { %v9429_v20 = vadd.f32 %v4164_v12, %v4124_v19  ;;  %4418 = vmatpush1.bf16.msra.mxu1 %v7730_v10  ;;  %v7819_v9 = vcombine.high %v1277_v59, %v1281_v4  ;;  %v1141_v10 = vld [vmem:[#allocation11 + $0x810] sm:$0xff]  ;;  %v7818_v19 = vcombine.low %v1277_v59, %v1281_v4 }
 0x33f   :  { %4459 = vmatpush1.bf16.msra.mxu0 %v7858_v13  ;;  %v4126_v22 = vpop.f32.mrf.mxu1  ;;  %v4167_v27 = vpop.f32.mrf.mxu0  ;;  %4419 = vmatprep.subr.bf16.mxu1 %v7723_v16  ;;  %v1145_v11 = vld [vmem:[#allocation11 + $0x830] sm:$0xff]  ;;  %v7690_v16 = vcombine.low %v1149_v56, %v1153_v62 }
 0x340   :  { %4460 = vmatprep.subr.bf16.mxu0 %v7851_v51  ;;  %v1269_v12 = vld [vmem:[#allocation11 + $0xc10] sm:$0xff]  ;;  %v7683_v51 = vcombine.high %v1141_v10, %v1145_v11  ;;  %v7682_v58 = vcombine.low %v1141_v10, %v1145_v11 }
 0x341   :  { %v1273_v13 = vld [vmem:[#allocation11 + $0xc30] sm:$0xff] }
 0x342   :  { %4420 = vmatpush1.bf16.msra.mxu1 %v7722_v21  ;;  %v7811_v60 = vcombine.high %v1269_v12, %v1273_v13  ;;  %v1261_v52 = vld [vmem:[#allocation11 + $0xbd0] sm:$0xff]  ;;  %v7810_v21 = vcombine.low %v1269_v12, %v1273_v13 }
 0x343   :  { %4461 = vmatpush1.bf16.msra.mxu0 %v7850_v34  ;;  %4421 = vmatprep.subr.bf16.mxu1 %v7715_v35  ;;  %v1265_v53 = vld [vmem:[#allocation11 + $0xbf0] sm:$0xff] }
 0x344   :  { %4462 = vmatprep.subr.bf16.mxu0 %v7843_v15  ;;  %v1389_v55 = vld [vmem:[#allocation11 + $0xfd0] sm:$0xff]  ;;  %v7803_v22 = vcombine.high %v1261_v52, %v1265_v53  ;;  %v7802_v37 = vcombine.low %v1261_v52, %v1265_v53 }
 0x345   :  { %v1393_v57 = vld [vmem:[#allocation11 + $0xff0] sm:$0xff] }
 0x346   :  { %4422 = vmatpush1.bf16.msra.mxu1 %v7714_v40  ;;  %v7931_v27 = vcombine.high %v1389_v55, %v1393_v57  ;;  %v1253_v34 = vld [vmem:[#allocation11 + $0xb90] sm:$0xff]  ;;  %v7930_v38 = vcombine.low %v1389_v55, %v1393_v57 }
 0x347   :  { %4463 = vmatpush1.bf16.msra.mxu0 %v7842_v41  ;;  %4423 = vmatprep.subr.bf16.mxu1 %v7707_v31  ;;  %v1257_v35 = vld [vmem:[#allocation11 + $0xbb0] sm:$0xff] }
 0x348   :  { %4464 = vmatprep.subr.bf16.mxu0 %v7835_v42  ;;  %v1381_v15 = vld [vmem:[#allocation11 + $0xf90] sm:$0xff]  ;;  %v7795_v39 = vcombine.high %v1253_v34, %v1257_v35  ;;  %v7794_v45 = vcombine.low %v1253_v34, %v1257_v35 }
 0x349   :  { %v7923_v40 = vcombine.high %v1381_v15, %v1385_v36  ;;  %v1245_v41 = vld [vmem:[#allocation11 + $0xb50] sm:$0xff]  ;;  %v7922_v46 = vcombine.low %v1381_v15, %v1385_v36 }
 0x34a   :  { %4424 = vmatpush1.bf16.msra.mxu1 %v7706_v48  ;;  %v1249_v31 = vld [vmem:[#allocation11 + $0xb70] sm:$0xff] }
 0x34b   :  { %4465 = vmatpush1.bf16.msra.mxu0 %v7834_v49  ;;  %4425 = vmatprep.subr.bf16.mxu1 %v7699_v50  ;;  %v1373_v42 = vld [vmem:[#allocation11 + $0xf50] sm:$0xff]  ;;  %v7787_v47 = vcombine.high %v1245_v41, %v1249_v31  ;;  %v7786_v62 = vcombine.low %v1245_v41, %v1249_v31 }
 0x34c   :  { %4466 = vmatprep.subr.bf16.mxu0 %v7827_v54  ;;  %v1377_v44 = vld [vmem:[#allocation11 + $0xf70] sm:$0xff] }
 0x34d   :  { %v7915_v48 = vcombine.high %v1373_v42, %v1377_v44  ;;  %v1237_v49 = vld [vmem:[#allocation11 + $0xb10] sm:$0xff]  ;;  %v7914_v59 = vcombine.low %v1373_v42, %v1377_v44 }
 0x34e   :  { %4426 = vmatpush1.bf16.msra.mxu1 %v7698_v61  ;;  %v1241_v50 = vld [vmem:[#allocation11 + $0xb30] sm:$0xff] }
 0x34f   :  { %4467 = vmatpush1.bf16.msra.mxu0 %v7826_v7  ;;  %4427 = vmatprep.subr.bf16.mxu1 %v7691_v8  ;;  %v1365_v54 = vld [vmem:[#allocation11 + $0xf10] sm:$0xff]  ;;  %v7779_v4 = vcombine.high %v1237_v49, %v1241_v50  ;;  %v7778_v11 = vcombine.low %v1237_v49, %v1241_v50  ;;  %v1074_v49 = vld [vmem:[#allocation11 + $0x5f8] sm:$0xff] }
 0x350   :  { %4468 = vmatprep.subr.bf16.mxu0 %v7819_v9  ;;  %v1369_v56 = vld [vmem:[#allocation11 + $0xf30] sm:$0xff] }
 0x351   :  { %v7907_v61 = vcombine.high %v1365_v54, %v1369_v56  ;;  %v1229_v7 = vld [vmem:[#allocation11 + $0xad0] sm:$0xff]  ;;  %v7906_v12 = vcombine.low %v1365_v54, %v1369_v56 }
 0x352   :  { %4428 = vmatpush1.bf16.msra.mxu1 %v7690_v16  ;;  %v1233_v8 = vld [vmem:[#allocation11 + $0xaf0] sm:$0xff] }
 0x353   :  { %4469 = vmatpush1.bf16.msra.mxu0 %v7818_v19  ;;  %4429 = vmatprep.subr.bf16.mxu1 %v7683_v51  ;;  %v1357_v9 = vld [vmem:[#allocation11 + $0xed0] sm:$0xff]  ;;  %v7771_v13 = vcombine.high %v1229_v7, %v1233_v8  ;;  %v7770_v53 = vcombine.low %v1229_v7, %v1233_v8  ;;  %v1062_v8 = vld [vmem:[#allocation11 + $0x598] sm:$0xff] }
 0x354   :  { %4470 = vmatprep.subr.bf16.mxu0 %v7811_v60  ;;  %v1361_v10 = vld [vmem:[#allocation11 + $0xef0] sm:$0xff] }
 0x355   :  { %v7899_v16 = vcombine.high %v1357_v9, %v1361_v10  ;;  %v1221_v19 = vld [vmem:[#allocation11 + $0xa90] sm:$0xff]  ;;  %v7898_v55 = vcombine.low %v1357_v9, %v1361_v10  ;;  %v1066_v9 = vld [vmem:[#allocation11 + $0x5b8] sm:$0xff] }
 0x356   :  { %4430 = vmatpush1.bf16.msra.mxu1 %v7682_v58  ;;  %v1225_v51 = vld [vmem:[#allocation11 + $0xab0] sm:$0xff] }
 0x357   :  { %4471 = vmatpush1.bf16.msra.mxu0 %v7810_v21  ;;  %4431 = vmatprep.subr.bf16.mxu1 %v7803_v22  ;;  %v1349_v60 = vld [vmem:[#allocation11 + $0xe90] sm:$0xff]  ;;  %v7763_v57 = vcombine.high %v1221_v19, %v1225_v51  ;;  %v7762_v35 = vcombine.low %v1221_v19, %v1225_v51  ;;  %v7605_v51 = vcombine.high %v1062_v8, %v1066_v9 }
 0x358   :  { %4472 = vmatprep.subr.bf16.mxu0 %v7931_v27  ;;  %v1353_v52 = vld [vmem:[#allocation11 + $0xeb0] sm:$0xff] }
 0x359   :  { %v7891_v58 = vcombine.high %v1349_v60, %v1353_v52  ;;  %v1213_v21 = vld [vmem:[#allocation11 + $0xa50] sm:$0xff]  ;;  %v7890_v15 = vcombine.low %v1349_v60, %v1353_v52  ;;  %v1054_v60 = vld [vmem:[#allocation11 + $0x558] sm:$0xff] }
 0x35a   :  { %4432 = vmatpush2.bf16.msra.mxu1 %v7802_v37  ;;  %v1217_v22 = vld [vmem:[#allocation11 + $0xa70] sm:$0xff]  ;;  %v1058_v52 = vld [vmem:[#allocation11 + $0x578] sm:$0xff] }
 0x35b   :  { %4473 = vmatpush2.bf16.msra.mxu0 %v7930_v38  ;;  %4433 = vmatprep.subr.bf16.mxu1 %v7795_v39  ;;  %v1341_v27 = vld [vmem:[#allocation11 + $0xe50] sm:$0xff]  ;;  %v7755_v36 = vcombine.high %v1213_v21, %v1217_v22  ;;  %v7754_v31 = vcombine.low %v1213_v21, %v1217_v22 }
 0x35c   :  { %4474 = vmatprep.subr.bf16.mxu0 %v7923_v40  ;;  %v1345_v34 = vld [vmem:[#allocation11 + $0xe70] sm:$0xff] }
 0x35d   :  { %v7883_v37 = vcombine.high %v1341_v27, %v1345_v34  ;;  %v1205_v38 = vld [vmem:[#allocation11 + $0xa10] sm:$0xff]  ;;  %v7882_v42 = vcombine.low %v1341_v27, %v1345_v34 }
 0x35e   :  { %4434 = vmatpush2.bf16.msra.mxu1 %v7794_v45  ;;  %v1209_v39 = vld [vmem:[#allocation11 + $0xa30] sm:$0xff] }
 0x35f   :  { %4475 = vmatpush2.bf16.msra.mxu0 %v7922_v46  ;;  %4435 = vmatprep.subr.bf16.mxu1 %v7787_v47  ;;  %v1333_v40 = vld [vmem:[#allocation11 + $0xe10] sm:$0xff]  ;;  %v7747_v44 = vcombine.high %v1205_v38, %v1209_v39  ;;  %v942_v46 = vld [vmem:[#allocation11 + $0x1d8] sm:$0xff]  ;;  %v7746_v50 = vcombine.low %v1205_v38, %v1209_v39 }
 0x360   :  { %4476 = vmatprep.subr.bf16.mxu0 %v7915_v48  ;;  %v1337_v41 = vld [vmem:[#allocation11 + $0xe30] sm:$0xff]  ;;  %v946_v47 = vld [vmem:[#allocation11 + $0x1f8] sm:$0xff] }
 0x361   :  { %v7875_v45 = vcombine.high %v1333_v40, %v1337_v41  ;;  %v1070_v48 = vld [vmem:[#allocation11 + $0x5d8] sm:$0xff]  ;;  %v7874_v54 = vcombine.low %v1333_v40, %v1337_v41  ;;  %v7485_v56 = vcombine.high %v942_v46, %v946_v47  ;;  %v7484_v7 = vcombine.low %v942_v46, %v946_v47 }
 0x362   :  { %4436 = vmatpush2.bf16.msra.mxu1 %v7786_v62  ;;  %v7613_v62 = vcombine.high %v1070_v48, %v1074_v49  ;;  %v7612_v10 = vcombine.low %v1070_v48, %v1074_v49  ;;  %v1046_v38 = vld [vmem:[#allocation11 + $0x518] sm:$0xff] }
 0x363   :  { %4477 = vmatpush2.bf16.msra.mxu0 %v7914_v59  ;;  %4437 = vmatprep.subr.bf16.mxu1 %v7779_v4  ;;  %v934_v59 = vld [vmem:[#allocation11 + $0x198] sm:$0xff] }
 0x364   :  { %4478 = vmatprep.subr.bf16.mxu0 %v7907_v61  ;;  %v938_v4 = vld [vmem:[#allocation11 + $0x1b8] sm:$0xff]  ;;  %v1416_v61 = vrot.slane %v9407_v23, %v9331_v30 }
 0x365   :  { %v1050_v39 = vld [vmem:[#allocation11 + $0x538] sm:$0xff] }
 0x366   :  { %4438 = vmatpush2.bf16.msra.mxu1 %v7778_v11  ;;  %v1420_v11 = vrot.slane %v9407_v23, %v9339_v33  ;;  %v7604_v23 = vcombine.low %v1062_v8, %v1066_v9  ;;  %v910_v46 = vld [vmem:[#allocation11 + $0xd8] sm:$0xff] }
 0x367   :  { %4479 = vmatpush2.bf16.msra.mxu0 %v7906_v12  ;;  %4439 = vmatprep.subr.bf16.mxu1 %v7771_v13  ;;  %v7477_v12 = vcombine.high %v934_v59, %v938_v4  ;;  %v926_v13 = vld [vmem:[#allocation11 + $0x158] sm:$0xff] }
 0x368   :  { %4480 = vmatprep.subr.bf16.mxu0 %v7899_v16  ;;  %v930_v16 = vld [vmem:[#allocation11 + $0x178] sm:$0xff] }
 0x369   :  { %v7469_v21 = vcombine.high %v926_v13, %v930_v16  ;;  %v7468_v41 = vcombine.low %v926_v13, %v930_v16  ;;  %v914_v47 = vld [vmem:[#allocation11 + $0xf8] sm:$0xff] }
 0x36a   :  { %4440 = vmatpush2.bf16.msra.mxu1 %v7770_v53  ;;  %v1038_v48 = vld [vmem:[#allocation11 + $0x4d8] sm:$0xff]  ;;  %v7452_v8 = vcombine.low %v910_v46, %v914_v47 }
 0x36b   :  { %4481 = vmatpush2.bf16.msra.mxu0 %v7898_v55  ;;  %4441 = vmatprep.subr.bf16.mxu1 %v7763_v57  ;;  %v7476_v57 = vcombine.low %v934_v59, %v938_v4  ;;  %v1042_v49 = vld [vmem:[#allocation11 + $0x4f8] sm:$0xff] }
 0x36c   :  { %4482 = vmatprep.subr.bf16.mxu0 %v7891_v58  ;;  %v902_v59 = vld [vmem:[#allocation11 + $0x98] sm:$0xff]  ;;  %v7580_v9 = vcombine.low %v1038_v48, %v1042_v49 }
 0x36d   :  { %v906_v4 = vld [vmem:[#allocation11 + $0xb8] sm:$0xff] }
 0x36e   :  { %4442 = vmatpush2.bf16.msra.mxu1 %v7762_v35  ;;  %v7597_v35 = vcombine.high %v1054_v60, %v1058_v52  ;;  %v898_v13 = vld [vmem:[#allocation11 + $0x78] sm:$0xff] }
 0x36f   :  { %4483 = vmatpush2.bf16.msra.mxu0 %v7890_v15  ;;  %4443 = vmatprep.subr.bf16.mxu1 %v7755_v36  ;;  %v918_v15 = vld [vmem:[#allocation11 + $0x118] sm:$0xff] }
 0x370   :  { %4484 = vmatprep.subr.bf16.mxu0 %v7883_v37  ;;  %v922_v36 = vld [vmem:[#allocation11 + $0x138] sm:$0xff] }
 0x371   :  { %v1022_v16 = vld [vmem:[#allocation11 + $0x458] sm:$0xff] }
 0x372   :  { %4444 = vmatpush2.bf16.msra.mxu1 %v7754_v31 }
 0x373   :  { %4485 = vmatpush2.bf16.msra.mxu0 %v7882_v42  ;;  %4445 = vmatprep.subr.bf16.mxu1 %v7747_v44  ;;  %v7596_v42 = vcombine.low %v1054_v60, %v1058_v52 }
 0x374   :  { %4486 = vmatprep.subr.bf16.mxu0 %v7875_v45  ;;  %v7589_v45 = vcombine.high %v1046_v38, %v1050_v39 }
 0x376   :  { %4446 = vmatpush2.bf16.msra.mxu1 %v7746_v50  ;;  %v7460_v50 = vcombine.low %v918_v15, %v922_v36 }
 0x377   :  { %4487 = vmatpush2.bf16.msra.mxu0 %v7874_v54  ;;  %4497 = vmatprep.subr.bf16.mxu1 %v7485_v56  ;;  %v7588_v54 = vcombine.low %v1046_v38, %v1050_v39  ;;  %v7453_v56 = vcombine.high %v910_v46, %v914_v47  ;;  %v1138_v38 = vld [vmem:[#allocation11 + $0x7f8] sm:$0xff] }
 0x378   :  { %4538 = vmatprep.subr.bf16.mxu0 %v7613_v62  ;;  %v7581_v62 = vcombine.high %v1038_v48, %v1042_v49 }
 0x379   :  { %v4203_v19 = vpop.f32.mrf.mxu1  ;;  %4448 = vmatmul.mubr.bf16.vlgmr.msra.gmra.mxu1 %v9395_v5 }
 0x37a   :  { %v4204_v53 = vadd.f32 %v4203_v19, %v1416_v61  ;;  %v4244_v55 = vpop.f32.mrf.mxu0  ;;  %4489 = vmatmul.mubr.bf16.vlgmr.msra.gmra.mxu0 %v9397_v6  ;;  %4498 = vmatpush1.bf16.msra.mxu1 %v7484_v7  ;;  %v1030_v61 = vld [vmem:[#allocation11 + $0x498] sm:$0xff] }
 0x37b   :  { %4529 = vmatprep.mubr.bf16.mxu1 %v9349_v63  ;;  %4539 = vmatpush1.bf16.msra.mxu0 %v7612_v10  ;;  %v4205_v58 = vpop.f32.mrf.mxu1  ;;  %v1034_v7 = vld [vmem:[#allocation11 + $0x4b8] sm:$0xff]  ;;  %v7445_v10 = vcombine.high %v902_v59, %v906_v4 }
 0x37c   :  { %v9438_v22 = vadd.f32 %v4244_v55, %v4204_v53  ;;  %4570 = vmatprep.mubr.bf16.mxu0 %v9351_v0  ;;  %v4206_v27 = vadd.f32 %v4205_v58, %v1420_v11  ;;  %v4246_v34 = vpop.f32.mrf.mxu0  ;;  %4499 = vmatprep.subr.bf16.mxu1 %v7477_v12  ;;  %v7461_v0 = vcombine.high %v918_v15, %v922_v36  ;;  %v894_v12 = vld [vmem:[#allocation11 + $0x58] sm:$0xff] }
 0x37d   :  { %v4207_v37 = vpop.f32.mrf.mxu1  ;;  %4540 = vmatprep.subr.bf16.mxu0 %v7605_v51  ;;  %v7573_v11 = vcombine.high %v1030_v61, %v1034_v7  ;;  %v1026_v19 = vld [vmem:[#allocation11 + $0x478] sm:$0xff]  ;;  %v7444_v51 = vcombine.low %v902_v59, %v906_v4  ;;  %v7572_v60 = vcombine.low %v1030_v61, %v1034_v7  ;;  %v7437_v52 = vcombine.high %v894_v12, %v898_v13 }
 0x37e   :  { %v9441_v40 = vadd.f32 %v4246_v34, %v4206_v27  ;;  %v4248_v63 = vpop.f32.mrf.mxu0  ;;  %4500 = vmatpush1.bf16.msra.mxu1 %v7476_v57  ;;  %v7565_v53 = vcombine.high %v1022_v16, %v1026_v19  ;;  %v886_v55 = vld [vmem:[#allocation11 + $0x18] sm:$0xff]  ;;  %v7564_v27 = vcombine.low %v1022_v16, %v1026_v19 }
 0x37f   :  { %4541 = vmatpush1.bf16.msra.mxu0 %v7604_v23  ;;  %v4208_v31 = vpop.f32.mrf.mxu1  ;;  %4501 = vmatprep.subr.bf16.mxu1 %v7469_v21  ;;  %v890_v57 = vld [vmem:[#allocation11 + $0x38] sm:$0xff]  ;;  %v7436_v21 = vcombine.low %v894_v12, %v898_v13 }
 0x380   :  { %v4249_v44 = vpop.f32.mrf.mxu0  ;;  %4542 = vmatprep.subr.bf16.mxu0 %v7597_v35  ;;  %v1014_v58 = vld [vmem:[#allocation11 + $0x418] sm:$0xff]  ;;  %v7429_v34 = vcombine.high %v886_v55, %v890_v57  ;;  %v7428_v39 = vcombine.low %v886_v55, %v890_v57 }
 0x381   :  { %v1018_v23 = vld [vmem:[#allocation11 + $0x438] sm:$0xff] }
 0x382   :  { %4502 = vmatpush1.bf16.msra.mxu1 %v7468_v41  ;;  %v7557_v35 = vcombine.high %v1014_v58, %v1018_v23  ;;  %v1006_v15 = vld [vmem:[#allocation11 + $0x3d8] sm:$0xff]  ;;  %v7556_v63 = vcombine.low %v1014_v58, %v1018_v23 }
 0x383   :  { %4543 = vmatpush1.bf16.msra.mxu0 %v7596_v42  ;;  %4503 = vmatprep.subr.bf16.mxu1 %v7461_v0  ;;  %v1010_v36 = vld [vmem:[#allocation11 + $0x3f8] sm:$0xff] }
 0x384   :  { %4544 = vmatprep.subr.bf16.mxu0 %v7589_v45  ;;  %v1134_v37 = vld [vmem:[#allocation11 + $0x7d8] sm:$0xff]  ;;  %v7549_v41 = vcombine.high %v1006_v15, %v1010_v36  ;;  %v7548_v46 = vcombine.low %v1006_v15, %v1010_v36 }
 0x385   :  { %v7677_v31 = vcombine.high %v1134_v37, %v1138_v38  ;;  %v998_v42 = vld [vmem:[#allocation11 + $0x398] sm:$0xff]  ;;  %v7676_v47 = vcombine.low %v1134_v37, %v1138_v38 }
 0x386   :  { %4504 = vmatpush1.bf16.msra.mxu1 %v7460_v50  ;;  %v1002_v0 = vld [vmem:[#allocation11 + $0x3b8] sm:$0xff] }
 0x387   :  { %4545 = vmatpush1.bf16.msra.mxu0 %v7588_v54  ;;  %4505 = vmatprep.subr.bf16.mxu1 %v7453_v56  ;;  %v1126_v44 = vld [vmem:[#allocation11 + $0x798] sm:$0xff]  ;;  %v7541_v48 = vcombine.high %v998_v42, %v1002_v0  ;;  %v7540_v59 = vcombine.low %v998_v42, %v1002_v0 }
 0x388   :  { %4546 = vmatprep.subr.bf16.mxu0 %v7581_v62  ;;  %v1130_v45 = vld [vmem:[#allocation11 + $0x7b8] sm:$0xff] }
 0x389   :  { %v7669_v49 = vcombine.high %v1126_v44, %v1130_v45  ;;  %v990_v50 = vld [vmem:[#allocation11 + $0x358] sm:$0xff]  ;;  %v7668_v4 = vcombine.low %v1126_v44, %v1130_v45 }
 0x38a   :  { %4506 = vmatpush1.bf16.msra.mxu1 %v7452_v8  ;;  %v994_v54 = vld [vmem:[#allocation11 + $0x378] sm:$0xff] }
 0x38b   :  { %4547 = vmatpush1.bf16.msra.mxu0 %v7580_v9  ;;  %4507 = vmatprep.subr.bf16.mxu1 %v7445_v10  ;;  %v1118_v56 = vld [vmem:[#allocation11 + $0x758] sm:$0xff]  ;;  %v7533_v61 = vcombine.high %v990_v50, %v994_v54  ;;  %v7532_v12 = vcombine.low %v990_v50, %v994_v54 }
 0x38c   :  { %4548 = vmatprep.subr.bf16.mxu0 %v7573_v11  ;;  %v1122_v62 = vld [vmem:[#allocation11 + $0x778] sm:$0xff] }
 0x38d   :  { %v7661_v7 = vcombine.high %v1118_v56, %v1122_v62  ;;  %v982_v8 = vld [vmem:[#allocation11 + $0x318] sm:$0xff]  ;;  %v7660_v13 = vcombine.low %v1118_v56, %v1122_v62 }
 0x38e   :  { %4508 = vmatpush1.bf16.msra.mxu1 %v7444_v51  ;;  %v986_v9 = vld [vmem:[#allocation11 + $0x338] sm:$0xff] }
 0x38f   :  { %4549 = vmatpush1.bf16.msra.mxu0 %v7572_v60  ;;  %4509 = vmatprep.subr.bf16.mxu1 %v7437_v52  ;;  %v1110_v10 = vld [vmem:[#allocation11 + $0x718] sm:$0xff]  ;;  %v7525_v16 = vcombine.high %v982_v8, %v986_v9  ;;  %v7524_v55 = vcombine.low %v982_v8, %v986_v9 }
 0x390   :  { %4550 = vmatprep.subr.bf16.mxu0 %v7565_v53  ;;  %v1114_v11 = vld [vmem:[#allocation11 + $0x738] sm:$0xff] }
 0x391   :  { %v7653_v19 = vcombine.high %v1110_v10, %v1114_v11  ;;  %v974_v51 = vld [vmem:[#allocation11 + $0x2d8] sm:$0xff]  ;;  %v7652_v57 = vcombine.low %v1110_v10, %v1114_v11 }
 0x392   :  { %4510 = vmatpush1.bf16.msra.mxu1 %v7436_v21  ;;  %v978_v60 = vld [vmem:[#allocation11 + $0x2f8] sm:$0xff] }
 0x393   :  { %4551 = vmatpush1.bf16.msra.mxu0 %v7564_v27  ;;  %4511 = vmatprep.subr.bf16.mxu1 %v7429_v34  ;;  %v1102_v52 = vld [vmem:[#allocation11 + $0x6d8] sm:$0xff]  ;;  %v7517_v58 = vcombine.high %v974_v51, %v978_v60  ;;  %v7516_v15 = vcombine.low %v974_v51, %v978_v60 }
 0x394   :  { %4552 = vmatprep.subr.bf16.mxu0 %v7557_v35  ;;  %v1106_v53 = vld [vmem:[#allocation11 + $0x6f8] sm:$0xff] }
 0x395   :  { %v7645_v23 = vcombine.high %v1102_v52, %v1106_v53  ;;  %v966_v21 = vld [vmem:[#allocation11 + $0x298] sm:$0xff]  ;;  %v7644_v36 = vcombine.low %v1102_v52, %v1106_v53 }
 0x396   :  { %4512 = vmatpush1.bf16.msra.mxu1 %v7428_v39  ;;  %v970_v27 = vld [vmem:[#allocation11 + $0x2b8] sm:$0xff] }
 0x397   :  { %4553 = vmatpush1.bf16.msra.mxu0 %v7556_v63  ;;  %4513 = vmatprep.subr.bf16.mxu1 %v7549_v41  ;;  %v1094_v34 = vld [vmem:[#allocation11 + $0x698] sm:$0xff]  ;;  %v7509_v37 = vcombine.high %v966_v21, %v970_v27  ;;  %v7508_v42 = vcombine.low %v966_v21, %v970_v27 }
 0x398   :  { %4554 = vmatprep.subr.bf16.mxu0 %v7677_v31  ;;  %v1098_v35 = vld [vmem:[#allocation11 + $0x6b8] sm:$0xff] }
 0x399   :  { %v7637_v38 = vcombine.high %v1094_v34, %v1098_v35  ;;  %v958_v39 = vld [vmem:[#allocation11 + $0x258] sm:$0xff]  ;;  %v7636_v0 = vcombine.low %v1094_v34, %v1098_v35 }
 0x39a   :  { %4514 = vmatpush2.bf16.msra.mxu1 %v7548_v46  ;;  %v962_v63 = vld [vmem:[#allocation11 + $0x278] sm:$0xff] }
 0x39b   :  { %4555 = vmatpush2.bf16.msra.mxu0 %v7676_v47  ;;  %4515 = vmatprep.subr.bf16.mxu1 %v7541_v48  ;;  %v1086_v41 = vld [vmem:[#allocation11 + $0x658] sm:$0xff]  ;;  %v7501_v44 = vcombine.high %v958_v39, %v962_v63  ;;  %v7500_v50 = vcombine.low %v958_v39, %v962_v63 }
 0x39c   :  { %4556 = vmatprep.subr.bf16.mxu0 %v7669_v49  ;;  %v1090_v31 = vld [vmem:[#allocation11 + $0x678] sm:$0xff] }
 0x39d   :  { %v7629_v45 = vcombine.high %v1086_v41, %v1090_v31  ;;  %v950_v46 = vld [vmem:[#allocation11 + $0x218] sm:$0xff]  ;;  %v7628_v54 = vcombine.low %v1086_v41, %v1090_v31 }
 0x39e   :  { %4516 = vmatpush2.bf16.msra.mxu1 %v7540_v59  ;;  %v954_v47 = vld [vmem:[#allocation11 + $0x238] sm:$0xff] }
 0x39f   :  { %4557 = vmatpush2.bf16.msra.mxu0 %v7668_v4  ;;  %4517 = vmatprep.subr.bf16.mxu1 %v7533_v61  ;;  %v1078_v48 = vld [vmem:[#allocation11 + $0x618] sm:$0xff]  ;;  %v7493_v56 = vcombine.high %v950_v46, %v954_v47  ;;  %v7492_v8 = vcombine.low %v950_v46, %v954_v47 }
 0x3a0   :  { %4558 = vmatprep.subr.bf16.mxu0 %v7661_v7  ;;  %v1082_v49 = vld [vmem:[#allocation11 + $0x638] sm:$0xff] }
 0x3a1   :  { %v7621_v62 = vcombine.high %v1078_v48, %v1082_v49  ;;  %v1198_v59 = vld [vmem:[#allocation11 + $0x9d8] sm:$0xff]  ;;  %v7620_v9 = vcombine.low %v1078_v48, %v1082_v49 }
 0x3a2   :  { %4518 = vmatpush2.bf16.msra.mxu1 %v7532_v12  ;;  %v1202_v4 = vld [vmem:[#allocation11 + $0x9f8] sm:$0xff] }
 0x3a3   :  { %4559 = vmatpush2.bf16.msra.mxu0 %v7660_v13  ;;  %4519 = vmatprep.subr.bf16.mxu1 %v7525_v16  ;;  %v1326_v61 = vld [vmem:[#allocation11 + $0xdd8] sm:$0xff]  ;;  %v7741_v10 = vcombine.high %v1198_v59, %v1202_v4  ;;  %v7740_v16 = vcombine.low %v1198_v59, %v1202_v4 }
 0x3a4   :  { %4560 = vmatprep.subr.bf16.mxu0 %v7653_v19  ;;  %v1330_v7 = vld [vmem:[#allocation11 + $0xdf8] sm:$0xff] }
 0x3a5   :  { %v7869_v11 = vcombine.high %v1326_v61, %v1330_v7  ;;  %v1190_v12 = vld [vmem:[#allocation11 + $0x998] sm:$0xff]  ;;  %v7868_v60 = vcombine.low %v1326_v61, %v1330_v7 }
 0x3a6   :  { %4520 = vmatpush2.bf16.msra.mxu1 %v7524_v55  ;;  %v1194_v13 = vld [vmem:[#allocation11 + $0x9b8] sm:$0xff] }
 0x3a7   :  { %4561 = vmatpush2.bf16.msra.mxu0 %v7652_v57  ;;  %4521 = vmatprep.subr.bf16.mxu1 %v7517_v58  ;;  %v1318_v19 = vld [vmem:[#allocation11 + $0xd98] sm:$0xff]  ;;  %v7733_v52 = vcombine.high %v1190_v12, %v1194_v13  ;;  %v7732_v35 = vcombine.low %v1190_v12, %v1194_v13 }
 0x3a8   :  { %4562 = vmatprep.subr.bf16.mxu0 %v7645_v23  ;;  %v1322_v51 = vld [vmem:[#allocation11 + $0xdb8] sm:$0xff] }
 0x3a9   :  { %v1182_v53 = vld [vmem:[#allocation11 + $0x958] sm:$0xff]  ;;  %v7861_v58 = vcombine.high %v1318_v19, %v1322_v51 }
 0x3aa   :  { %4522 = vmatpush2.bf16.msra.mxu1 %v7516_v15  ;;  %v1186_v55 = vld [vmem:[#allocation11 + $0x978] sm:$0xff] }
 0x3ab   :  { %4563 = vmatpush2.bf16.msra.mxu0 %v7644_v36  ;;  %4523 = vmatprep.subr.bf16.mxu1 %v7509_v37  ;;  %v1310_v23 = vld [vmem:[#allocation11 + $0xd58] sm:$0xff]  ;;  %v7860_v36 = vcombine.low %v1318_v19, %v1322_v51  ;;  %v7725_v37 = vcombine.high %v1182_v53, %v1186_v55 }
 0x3ac   :  { %4564 = vmatprep.subr.bf16.mxu0 %v7637_v38  ;;  %v1314_v21 = vld [vmem:[#allocation11 + $0xd78] sm:$0xff] }
 0x3ad   :  { %v1174_v39 = vld [vmem:[#allocation11 + $0x918] sm:$0xff] }
 0x3ae   :  { %4524 = vmatpush2.bf16.msra.mxu1 %v7508_v42  ;;  %v1178_v63 = vld [vmem:[#allocation11 + $0x938] sm:$0xff]  ;;  %v7724_v42 = vcombine.low %v1182_v53, %v1186_v55 }
 0x3af   :  { %4565 = vmatpush2.bf16.msra.mxu0 %v7636_v0  ;;  %4525 = vmatprep.subr.bf16.mxu1 %v7501_v44  ;;  %v1302_v41 = vld [vmem:[#allocation11 + $0xd18] sm:$0xff]  ;;  %v7852_v44 = vcombine.low %v1310_v23, %v1314_v21 }
 0x3b0   :  { %4566 = vmatprep.subr.bf16.mxu0 %v7629_v45  ;;  %v1306_v31 = vld [vmem:[#allocation11 + $0xd38] sm:$0xff]  ;;  %v7717_v45 = vcombine.high %v1174_v39, %v1178_v63 }
 0x3b1   :  { %v1166_v47 = vld [vmem:[#allocation11 + $0x8d8] sm:$0xff] }
 0x3b2   :  { %4526 = vmatpush2.bf16.msra.mxu1 %v7500_v50  ;;  %v1170_v48 = vld [vmem:[#allocation11 + $0x8f8] sm:$0xff] }
 0x3b3   :  { %4567 = vmatpush2.bf16.msra.mxu0 %v7628_v54  ;;  %4527 = vmatprep.subr.bf16.mxu1 %v7493_v56  ;;  %v1294_v49 = vld [vmem:[#allocation11 + $0xcd8] sm:$0xff]  ;;  %v7716_v54 = vcombine.low %v1174_v39, %v1178_v63  ;;  %v7844_v56 = vcombine.low %v1302_v41, %v1306_v31 }
 0x3b4   :  { %4568 = vmatprep.subr.bf16.mxu0 %v7621_v62  ;;  %v1298_v50 = vld [vmem:[#allocation11 + $0xcf8] sm:$0xff]  ;;  %v7709_v62 = vcombine.high %v1166_v47, %v1170_v48 }
 0x3b5   :  { %v7837_v59 = vcombine.high %v1294_v49, %v1298_v50  ;;  %v1158_v4 = vld [vmem:[#allocation11 + $0x898] sm:$0xff] }
 0x3b6   :  { %4528 = vmatpush2.bf16.msra.mxu1 %v7492_v8  ;;  %v1162_v61 = vld [vmem:[#allocation11 + $0x8b8] sm:$0xff] }
 0x3b7   :  { %4569 = vmatpush2.bf16.msra.mxu0 %v7620_v9  ;;  %4579 = vmatprep.subr.bf16.mxu1 %v7741_v10  ;;  %v1286_v7 = vld [vmem:[#allocation11 + $0xc98] sm:$0xff]  ;;  %v7708_v9 = vcombine.low %v1166_v47, %v1170_v48  ;;  %v7836_v10 = vcombine.low %v1294_v49, %v1298_v50 }
 0x3b8   :  { %4620 = vmatprep.subr.bf16.mxu0 %v7869_v11  ;;  %v1290_v8 = vld [vmem:[#allocation11 + $0xcb8] sm:$0xff]  ;;  %v7701_v11 = vcombine.high %v1158_v4, %v1162_v61 }
 0x3b9   :  { %v4285_v57 = vpop.f32.mrf.mxu1  ;;  %4530 = vmatmul.mubr.bf16.vlgmr.msra.gmra.mxu1 %v9353_v2  ;;  %v7829_v12 = vcombine.high %v1286_v7, %v1290_v8  ;;  %v1150_v13 = vld [vmem:[#allocation11 + $0x858] sm:$0xff] }
 0x3ba   :  { %v4286_v27 = vadd.f32 %v4285_v57, %v9438_v22  ;;  %v4326_v34 = vpop.f32.mrf.mxu0  ;;  %4571 = vmatmul.mubr.bf16.vlgmr.msra.gmra.mxu0 %v9355_v3  ;;  %4580 = vmatpush1.bf16.msra.mxu1 %v7740_v16  ;;  %v7853_v22 = vcombine.high %v1310_v23, %v1314_v21  ;;  %v1154_v16 = vld [vmem:[#allocation11 + $0x878] sm:$0xff] }
 0x3bb   :  { %4611 = vmatprep.mubr.bf16.mxu1 %v9379_v25  ;;  %4621 = vmatpush1.bf16.msra.mxu0 %v7868_v60  ;;  %v9447_v15 = vpop.f32.mrf.mxu1  ;;  %v1278_v19 = vld [vmem:[#allocation11 + $0xc58] sm:$0xff]  ;;  %v7700_v60 = vcombine.low %v1158_v4, %v1162_v61  ;;  %v7693_v53 = vcombine.high %v1150_v13, %v1154_v16 }
 0x3bc   :  { %v9449_v38 = vadd.f32 %v4326_v34, %v4286_v27  ;;  %4652 = vmatprep.mubr.bf16.mxu0 %v9381_v26  ;;  %v9452_v2 = vpop.f32.mrf.mxu0  ;;  %4581 = vmatprep.subr.bf16.mxu1 %v7733_v52  ;;  %v7845_v26 = vcombine.high %v1302_v41, %v1306_v31  ;;  %v1282_v51 = vld [vmem:[#allocation11 + $0xc78] sm:$0xff]  ;;  %v7828_v52 = vcombine.low %v1286_v7, %v1290_v8 }
 0x3bd   :  { %v4289_v3 = vpop.f32.mrf.mxu1  ;;  %4622 = vmatprep.subr.bf16.mxu0 %v7861_v58  ;;  %v7821_v55 = vcombine.high %v1278_v19, %v1282_v51  ;;  %v1142_v57 = vld [vmem:[#allocation11 + $0x818] sm:$0xff]  ;;  %v7692_v27 = vcombine.low %v1150_v13, %v1154_v16  ;;  %v7820_v34 = vcombine.low %v1278_v19, %v1282_v51 }
 0x3be   :  { %v4330_v25 = vpop.f32.mrf.mxu0  ;;  %4582 = vmatpush1.bf16.msra.mxu1 %v7732_v35  ;;  %v1146_v58 = vld [vmem:[#allocation11 + $0x838] sm:$0xff] }
 0x3bf   :  { %4623 = vmatpush1.bf16.msra.mxu0 %v7860_v36  ;;  %v4290_v0 = vpop.f32.mrf.mxu1  ;;  %4583 = vmatprep.subr.bf16.mxu1 %v7725_v37  ;;  %v1270_v23 = vld [vmem:[#allocation11 + $0xc18] sm:$0xff]  ;;  %v7685_v35 = vcombine.high %v1142_v57, %v1146_v58  ;;  %v7684_v3 = vcombine.low %v1142_v57, %v1146_v58 }
 0x3c0   :  { %v4331_v46 = vpop.f32.mrf.mxu0  ;;  %4624 = vmatprep.subr.bf16.mxu0 %v7853_v22  ;;  %v1274_v21 = vld [vmem:[#allocation11 + $0xc38] sm:$0xff] }
 0x3c1   :  { %v7813_v36 = vcombine.high %v1270_v23, %v1274_v21  ;;  %v1262_v37 = vld [vmem:[#allocation11 + $0xbd8] sm:$0xff]  ;;  %v7812_v41 = vcombine.low %v1270_v23, %v1274_v21 }
 0x3c2   :  { %4584 = vmatpush1.bf16.msra.mxu1 %v7724_v42  ;;  %v1266_v22 = vld [vmem:[#allocation11 + $0xbf8] sm:$0xff] }
 0x3c3   :  { %4625 = vmatpush1.bf16.msra.mxu0 %v7852_v44  ;;  %4585 = vmatprep.subr.bf16.mxu1 %v7717_v45  ;;  %v1390_v39 = vld [vmem:[#allocation11 + $0xfd8] sm:$0xff]  ;;  %v7805_v31 = vcombine.high %v1262_v37, %v1266_v22  ;;  %v7804_v46 = vcombine.low %v1262_v37, %v1266_v22 }
 0x3c4   :  { %4626 = vmatprep.subr.bf16.mxu0 %v7845_v26  ;;  %v1394_v63 = vld [vmem:[#allocation11 + $0xff8] sm:$0xff] }
 0x3c5   :  { %v7933_v25 = vcombine.high %v1390_v39, %v1394_v63  ;;  %v1254_v42 = vld [vmem:[#allocation11 + $0xb98] sm:$0xff]  ;;  %v7932_v26 = vcombine.low %v1390_v39, %v1394_v63 }
 0x3c6   :  { %4586 = vmatpush1.bf16.msra.mxu1 %v7716_v54  ;;  %v1258_v0 = vld [vmem:[#allocation11 + $0xbb8] sm:$0xff] }
 0x3c7   :  { %4627 = vmatpush1.bf16.msra.mxu0 %v7844_v56  ;;  %4587 = vmatprep.subr.bf16.mxu1 %v7709_v62  ;;  %v1382_v44 = vld [vmem:[#allocation11 + $0xf98] sm:$0xff]  ;;  %v7797_v47 = vcombine.high %v1254_v42, %v1258_v0  ;;  %v7796_v62 = vcombine.low %v1254_v42, %v1258_v0 }
 0x3c8   :  { %4628 = vmatprep.subr.bf16.mxu0 %v7837_v59  ;;  %v1386_v45 = vld [vmem:[#allocation11 + $0xfb8] sm:$0xff] }
 0x3c9   :  { %v7925_v48 = vcombine.high %v1382_v44, %v1386_v45  ;;  %v1246_v49 = vld [vmem:[#allocation11 + $0xb58] sm:$0xff]  ;;  %v7924_v59 = vcombine.low %v1382_v44, %v1386_v45 }
 0x3ca   :  { %4588 = vmatpush1.bf16.msra.mxu1 %v7708_v9  ;;  %v1250_v50 = vld [vmem:[#allocation11 + $0xb78] sm:$0xff] }
 0x3cb   :  { %4629 = vmatpush1.bf16.msra.mxu0 %v7836_v10  ;;  %4589 = vmatprep.subr.bf16.mxu1 %v7701_v11  ;;  %v1374_v54 = vld [vmem:[#allocation11 + $0xf58] sm:$0xff]  ;;  %v7789_v4 = vcombine.high %v1246_v49, %v1250_v50  ;;  %v7788_v11 = vcombine.low %v1246_v49, %v1250_v50 }
 0x3cc   :  { %4630 = vmatprep.subr.bf16.mxu0 %v7829_v12  ;;  %v1378_v56 = vld [vmem:[#allocation11 + $0xf78] sm:$0xff] }
 0x3cd   :  { %v7917_v61 = vcombine.high %v1374_v54, %v1378_v56  ;;  %v1238_v7 = vld [vmem:[#allocation11 + $0xb18] sm:$0xff]  ;;  %v7916_v12 = vcombine.low %v1374_v54, %v1378_v56 }
 0x3ce   :  { %4590 = vmatpush1.bf16.msra.mxu1 %v7700_v60  ;;  %v1242_v8 = vld [vmem:[#allocation11 + $0xb38] sm:$0xff] }
 0x3cf   :  { %4631 = vmatpush1.bf16.msra.mxu0 %v7828_v52  ;;  %4591 = vmatprep.subr.bf16.mxu1 %v7693_v53  ;;  %v1366_v9 = vld [vmem:[#allocation11 + $0xf18] sm:$0xff]  ;;  %v7781_v13 = vcombine.high %v1238_v7, %v1242_v8  ;;  %v7780_v53 = vcombine.low %v1238_v7, %v1242_v8  ;;  %v9458_v7 = vld [vmem:[#allocation13] sm:$0xff] }
 0x3d0   :  { %4632 = vmatprep.subr.bf16.mxu0 %v7821_v55  ;;  %v1370_v10 = vld [vmem:[#allocation11 + $0xf38] sm:$0xff]  ;;  %v1424_v8 = vrot.slane %v9458_v7, %v369_v14 }
 0x3d1   :  { %v7909_v16 = vcombine.high %v1366_v9, %v1370_v10  ;;  %v1230_v19 = vld [vmem:[#allocation11 + $0xad8] sm:$0xff]  ;;  %v7908_v55 = vcombine.low %v1366_v9, %v1370_v10 }
 0x3d2   :  { %4592 = vmatpush1.bf16.msra.mxu1 %v7692_v27  ;;  %v1234_v51 = vld [vmem:[#allocation11 + $0xaf8] sm:$0xff] }
 0x3d3   :  { %4633 = vmatpush1.bf16.msra.mxu0 %v7820_v34  ;;  %4593 = vmatprep.subr.bf16.mxu1 %v7685_v35  ;;  %v1358_v60 = vld [vmem:[#allocation11 + $0xed8] sm:$0xff]  ;;  %v7773_v57 = vcombine.high %v1230_v19, %v1234_v51  ;;  %v7772_v35 = vcombine.low %v1230_v19, %v1234_v51 }
 0x3d4   :  { %4634 = vmatprep.subr.bf16.mxu0 %v7813_v36  ;;  %v1362_v52 = vld [vmem:[#allocation11 + $0xef8] sm:$0xff] }
 0x3d5   :  { %v7901_v58 = vcombine.high %v1358_v60, %v1362_v52  ;;  %v1222_v23 = vld [vmem:[#allocation11 + $0xa98] sm:$0xff]  ;;  %v7900_v36 = vcombine.low %v1358_v60, %v1362_v52 }
 0x3d6   :  { %4594 = vmatpush1.bf16.msra.mxu1 %v7684_v3  ;;  %v1226_v21 = vld [vmem:[#allocation11 + $0xab8] sm:$0xff] }
 0x3d7   :  { %4635 = vmatpush1.bf16.msra.mxu0 %v7812_v41  ;;  %4595 = vmatprep.subr.bf16.mxu1 %v7805_v31  ;;  %v1350_v27 = vld [vmem:[#allocation11 + $0xe98] sm:$0xff]  ;;  %v7765_v37 = vcombine.high %v1222_v23, %v1226_v21  ;;  %v7764_v31 = vcombine.low %v1222_v23, %v1226_v21 }
 0x3d8   :  { %4636 = vmatprep.subr.bf16.mxu0 %v7933_v25  ;;  %v1354_v34 = vld [vmem:[#allocation11 + $0xeb8] sm:$0xff] }
 0x3d9   :  { %v7893_v22 = vcombine.high %v1350_v27, %v1354_v34  ;;  %v1214_v39 = vld [vmem:[#allocation11 + $0xa58] sm:$0xff]  ;;  %v7892_v25 = vcombine.low %v1350_v27, %v1354_v34 }
 0x3da   :  { %4596 = vmatpush2.bf16.msra.mxu1 %v7804_v46  ;;  %v1218_v63 = vld [vmem:[#allocation11 + $0xa78] sm:$0xff] }
 0x3db   :  { %4637 = vmatpush2.bf16.msra.mxu0 %v7932_v26  ;;  %4597 = vmatprep.subr.bf16.mxu1 %v7797_v47  ;;  %v1342_v3 = vld [vmem:[#allocation11 + $0xe58] sm:$0xff]  ;;  %v7757_v42 = vcombine.high %v1214_v39, %v1218_v63  ;;  %v4288_v47 = vadd.f32 %v9447_v15, %v9441_v40  ;;  %v4662_v40 = vmax.f32 %v9429_v20, 0.0 }
 0x3dc   :  { %4638 = vmatprep.subr.bf16.mxu0 %v7925_v48  ;;  %v1346_v41 = vld [vmem:[#allocation11 + $0xe78] sm:$0xff]  ;;  %v7756_v48 = vcombine.low %v1214_v39, %v1218_v63 }
 0x3dd   :  { %v7885_v0 = vcombine.high %v1342_v3, %v1346_v41  ;;  %v1206_v44 = vld [vmem:[#allocation11 + $0xa18] sm:$0xff]  ;;  %v7884_v49 = vcombine.low %v1342_v3, %v1346_v41  ;;  %v4329_v56 = vadd.f32 %v9452_v2, %v4288_v47 }
 0x3de   :  { %4598 = vmatpush2.bf16.msra.mxu1 %v7796_v62  ;;  %v1210_v45 = vld [vmem:[#allocation11 + $0xa38] sm:$0xff] }
 0x3df   :  { %4639 = vmatpush2.bf16.msra.mxu0 %v7924_v59  ;;  %4599 = vmatprep.subr.bf16.mxu1 %v7789_v4  ;;  %v1334_v46 = vld [vmem:[#allocation11 + $0xe18] sm:$0xff]  ;;  %v7749_v50 = vcombine.high %v1206_v44, %v1210_v45  ;;  %v7748_v62 = vcombine.low %v1206_v44, %v1210_v45  ;;  %v4664_v15 = vmax.f32 %v4329_v56, 0.0 }
 0x3e0   :  { %4640 = vmatprep.subr.bf16.mxu0 %v7917_v61  ;;  %v1338_v26 = vld [vmem:[#allocation11 + $0xe38] sm:$0xff] }
 0x3e1   :  { %v7877_v54 = vcombine.high %v1334_v46, %v1338_v26  ;;  %v7876_v59 = vcombine.low %v1334_v46, %v1338_v26  ;;  %v8370_v4 = vld [vmem:[#allocation14 + $0xe4] ss:$16 sps:$4 sm:$0xff]   ;;  %v8368_v9 = vld [vmem:[#allocation14 + $0xe0] ss:$16 sps:$4 sm:$0xff]  }
 0x3e2   :  { %4600 = vmatpush2.bf16.msra.mxu1 %v7788_v11  ;;  %v8373_v61 = vld [vmem:[#allocation14 + $0x2e4] ss:$16 sps:$4 sm:$0xff]   ;;  %v8371_v2 = vld [vmem:[#allocation14 + $0x2e0] ss:$16 sps:$4 sm:$0xff]   ;;  %v9463_v11 = vpack.c.bf16 %v4662_v40, %v4662_v40 }
 0x3e3   :  { %4641 = vmatpush2.bf16.msra.mxu0 %v7916_v12  ;;  %4601 = vmatprep.subr.bf16.mxu1 %v7781_v13  ;;  %v8376_v10 = vld [vmem:[#allocation14 + $0xc4] ss:$16 sps:$4 sm:$0xff]   ;;  %v9466_v13 = vpack.c.bf16 %v4664_v15, %v4664_v15  ;;  %v8374_v14 = vld [vmem:[#allocation14 + $0xc0] ss:$16 sps:$4 sm:$0xff]  }
 0x3e4   :  { %4642 = vmatprep.subr.bf16.mxu0 %v7909_v16  ;;  %v8379_v20 = vld [vmem:[#allocation14 + $0x2c4] ss:$16 sps:$4 sm:$0xff]   ;;  %v8377_v60 = vld [vmem:[#allocation14 + $0x2c0] ss:$16 sps:$4 sm:$0xff]  }
 0x3e5   :  { %v8382_v52 = vld [vmem:[#allocation14 + $0xa4] ss:$16 sps:$4 sm:$0xff]   ;;  %v8383_v21 = vld [vmem:[#allocation14 + $0x2a0] ss:$16 sps:$4 sm:$0xff]  }
 0x3e6   :  { %4602 = vmatpush2.bf16.msra.mxu1 %v7780_v53  ;;  %v8388_v27 = vld [vmem:[#allocation14 + $0x84] ss:$16 sps:$4 sm:$0xff]   ;;  %v8392_v63 = vld [vmem:[#allocation14 + $0x60] ss:$16 sps:$4 sm:$0xff]  }
 0x3e7   :  { %4643 = vmatpush2.bf16.msra.mxu0 %v7908_v55  ;;  %4603 = vmatprep.subr.bf16.mxu1 %v7773_v57  ;;  %v8385_v55 = vld [vmem:[#allocation14 + $0x2a4] ss:$16 sps:$4 sm:$0xff]   ;;  %v8395_v3 = vld [vmem:[#allocation14 + $0x260] ss:$16 sps:$4 sm:$0xff]  }
 0x3e8   :  { %4644 = vmatprep.subr.bf16.mxu0 %v7901_v58  ;;  %v8380_v58 = vld [vmem:[#allocation14 + $0xa0] ss:$16 sps:$4 sm:$0xff]   ;;  %v8397_v39 = vld [vmem:[#allocation14 + $0x264] ss:$16 sps:$4 sm:$0xff]  }
 0x3e9   :  { %v8400_v41 = vld [vmem:[#allocation14 + $0x44] ss:$16 sps:$4 sm:$0xff]   ;;  %v8404_v45 = vld [vmem:[#allocation14 + $0x20] ss:$16 sps:$4 sm:$0xff]  }
 0x3ea   :  { %4604 = vmatpush2.bf16.msra.mxu1 %v7772_v35  ;;  %v8391_v35 = vld [vmem:[#allocation14 + $0x284] ss:$16 sps:$4 sm:$0xff]   ;;  %v8407_v46 = vld [vmem:[#allocation14 + $0x220] ss:$16 sps:$4 sm:$0xff]  }
 0x3eb   :  { %4645 = vmatpush2.bf16.msra.mxu0 %v7900_v36  ;;  %4605 = vmatprep.subr.bf16.mxu1 %v7765_v37  ;;  %v8386_v36 = vld [vmem:[#allocation14 + $0x80] ss:$16 sps:$4 sm:$0xff]   ;;  %v8409_v44 = vld [vmem:[#allocation14 + $0x224] ss:$16 sps:$4 sm:$0xff]  }
 0x3ec   :  { %4646 = vmatprep.subr.bf16.mxu0 %v7893_v22  ;;  %v8389_v37 = vld [vmem:[#allocation14 + $0x280] ss:$16 sps:$4 sm:$0xff]   ;;  %v8394_v22 = vld [vmem:[#allocation14 + $0x64] ss:$16 sps:$4 sm:$0xff]  }
 0x3ed   :  { %v8412_v26 = vld [vmem:[#allocation14 + $0x4] ss:$16 sps:$4 sm:$0xff]   ;;  %v8416_v56 = vld [vmem:[#allocation14 + $0x1e0] ss:$16 sps:$4 sm:$0xff]  }
 0x3ee   :  { %4606 = vmatpush2.bf16.msra.mxu1 %v7764_v31  ;;  %v8403_v31 = vld [vmem:[#allocation14 + $0x244] ss:$16 sps:$4 sm:$0xff]   ;;  %v8425_v40 = vld [vmem:[#allocation14 + $0x3c0] ss:$16 sps:$4 sm:$0xff]  }
 0x3ef   :  { %4647 = vmatpush2.bf16.msra.mxu0 %v7892_v25  ;;  %4607 = vmatprep.subr.bf16.mxu1 %v7757_v42  ;;  %v8398_v25 = vld [vmem:[#allocation14 + $0x40] ss:$16 sps:$4 sm:$0xff]   ;;  %v8415_v47 = vld [vmem:[#allocation14 + $0x204] ss:$16 sps:$4 sm:$0xff]  }
 0x3f0   :  { %4648 = vmatprep.subr.bf16.mxu0 %v7885_v0  ;;  %v8401_v42 = vld [vmem:[#allocation14 + $0x240] ss:$16 sps:$4 sm:$0xff]   ;;  %v8406_v0 = vld [vmem:[#allocation14 + $0x24] ss:$16 sps:$4 sm:$0xff]  }
 0x3f1   :  { %v8430_v15 = vld [vmem:[#allocation14 + $0x1a4] ss:$16 sps:$4 sm:$0xff]  }
 0x3f2   :  { %4608 = vmatpush2.bf16.msra.mxu1 %v7756_v48  ;;  %v8410_v48 = vld [vmem:[#allocation14] ss:$16 sps:$4 sm:$0xff]  }
 0x3f3   :  { %4649 = vmatpush2.bf16.msra.mxu0 %v7884_v49  ;;  %4609 = vmatprep.subr.bf16.mxu1 %v7749_v50  ;;  %v8413_v49 = vld [vmem:[#allocation14 + $0x200] ss:$16 sps:$4 sm:$0xff]   ;;  %v8418_v50 = vld [vmem:[#allocation14 + $0x1e4] ss:$16 sps:$4 sm:$0xff]  }
 0x3f4   :  { %4650 = vmatprep.subr.bf16.mxu0 %v7877_v54  ;;  %v8421_v54 = vld [vmem:[#allocation14 + $0x3e4] ss:$16 sps:$4 sm:$0xff]  }
 0x3f6   :  { %4610 = vmatpush2.bf16.msra.mxu1 %v7748_v62  ;;  %v8419_v62 = vld [vmem:[#allocation14 + $0x3e0] ss:$16 sps:$4 sm:$0xff]  }
 0x3f7   :  { %4651 = vmatpush2.bf16.msra.mxu0 %v7876_v59  ;;  %6235 = vmatprep.subr.bf16.mxu1 %v8370_v4  ;;  %v8424_v59 = vld [vmem:[#allocation14 + $0x1c4] ss:$16 sps:$4 sm:$0xff]  }
 0x3f8   :  { %6276 = vmatprep.subr.bf16.mxu0 %v8373_v61  ;;  %v8427_v4 = vld [vmem:[#allocation14 + $0x3c4] ss:$16 sps:$4 sm:$0xff]   ;;  %v8422_v61 = vld [vmem:[#allocation14 + $0x1c0] ss:$16 sps:$4 sm:$0xff]  }
 0x3f9   :  { %v4367_v12 = vpop.f32.mrf.mxu1  ;;  %4612 = vmatmul.mubr.bf16.vlgmr.msra.gmra.mxu1 %v9395_v5 }
 0x3fa   :  { %v4368_v16 = vadd.f32 %v4367_v12, %v1424_v8  ;;  %v4408_v19 = vpop.f32.mrf.mxu0  ;;  %4653 = vmatmul.mubr.bf16.vlgmr.msra.gmra.mxu0 %v9397_v6  ;;  %6236 = vmatpush1.bf16.msra.mxu1 %v8368_v9  ;;  %v8433_v8 = vld [vmem:[#allocation14 + $0x3a4] ss:$16 sps:$4 sm:$0xff]   ;;  %v8428_v9 = vld [vmem:[#allocation14 + $0x1a0] ss:$16 sps:$4 sm:$0xff]  }
 0x3fb   :  { %6267 = vmatprep.mubr.bf16.mxu1 %v9463_v11  ;;  %6277 = vmatpush1.bf16.msra.mxu0 %v8371_v2  ;;  %v9470_v51 = vpop.f32.mrf.mxu1  ;;  %v8431_v2 = vld [vmem:[#allocation14 + $0x3a0] ss:$16 sps:$4 sm:$0xff]   ;;  %v8439_v12 = vld [vmem:[#allocation14 + $0x384] ss:$16 sps:$4 sm:$0xff]  }
 0x3fc   :  { %v9472_v53 = vadd.f32 %v4408_v19, %v4368_v16  ;;  %6308 = vmatprep.mubr.bf16.mxu0 %v9466_v13  ;;  %v9475_v5 = vpop.f32.mrf.mxu0  ;;  %6237 = vmatprep.subr.bf16.mxu1 %v8376_v10  ;;  %v8436_v10 = vld [vmem:[#allocation14 + $0x184] ss:$16 sps:$4 sm:$0xff]   ;;  %v8437_v16 = vld [vmem:[#allocation14 + $0x380] ss:$16 sps:$4 sm:$0xff]  }
 0x3fd   :  { %v4371_v57 = vpop.f32.mrf.mxu1  ;;  %6278 = vmatprep.subr.bf16.mxu0 %v8379_v20  ;;  %v8434_v20 = vld [vmem:[#allocation14 + $0x180] ss:$16 sps:$4 sm:$0xff]   ;;  %v8442_v19 = vld [vmem:[#allocation14 + $0x164] ss:$16 sps:$4 sm:$0xff]  }
 0x3fe   :  { %v4412_v6 = vpop.f32.mrf.mxu0  ;;  %6238 = vmatpush1.bf16.msra.mxu1 %v8374_v14  ;;  %v8445_v14 = vld [vmem:[#allocation14 + $0x364] ss:$16 sps:$4 sm:$0xff]  }
 0x3ff   :  { %6279 = vmatpush1.bf16.msra.mxu0 %v8377_v60  ;;  %v4372_v23 = vpop.f32.mrf.mxu1  ;;  %6239 = vmatprep.subr.bf16.mxu1 %v8382_v52  ;;  %v8440_v60 = vld [vmem:[#allocation14 + $0x160] ss:$16 sps:$4 sm:$0xff]   ;;  %v8451_v57 = vld [vmem:[#allocation14 + $0x344] ss:$16 sps:$4 sm:$0xff]  }
 0x400   :  { %v4413_v34 = vpop.f32.mrf.mxu0  ;;  %6280 = vmatprep.subr.bf16.mxu0 %v8385_v55  ;;  %v8443_v52 = vld [vmem:[#allocation14 + $0x360] ss:$16 sps:$4 sm:$0xff]   ;;  %v8448_v55 = vld [vmem:[#allocation14 + $0x144] ss:$16 sps:$4 sm:$0xff]  }
 0x401   :  { %v8446_v6 = vld [vmem:[#allocation14 + $0x140] ss:$16 sps:$4 sm:$0xff]   ;;  %v8454_v23 = vld [vmem:[#allocation14 + $0x124] ss:$16 sps:$4 sm:$0xff]  }
 0x402   :  { %6240 = vmatpush1.bf16.msra.mxu1 %v8380_v58  ;;  %v8449_v58 = vld [vmem:[#allocation14 + $0x340] ss:$16 sps:$4 sm:$0xff]  }
 0x403   :  { %6281 = vmatpush1.bf16.msra.mxu0 %v8383_v21  ;;  %6241 = vmatprep.subr.bf16.mxu1 %v8388_v27  ;;  %v8457_v21 = vld [vmem:[#allocation14 + $0x324] ss:$16 sps:$4 sm:$0xff]   ;;  %v8452_v27 = vld [vmem:[#allocation14 + $0x120] ss:$16 sps:$4 sm:$0xff]  }
 0x404   :  { %6282 = vmatprep.subr.bf16.mxu0 %v8391_v35  ;;  %v8455_v34 = vld [vmem:[#allocation14 + $0x320] ss:$16 sps:$4 sm:$0xff]   ;;  %v8460_v35 = vld [vmem:[#allocation14 + $0x104] ss:$16 sps:$4 sm:$0xff]  }
 0x406   :  { %6242 = vmatpush1.bf16.msra.mxu1 %v8386_v36  ;;  %v8463_v36 = vld [vmem:[#allocation14 + $0x304] ss:$16 sps:$4 sm:$0xff]  }
 0x407   :  { %6283 = vmatpush1.bf16.msra.mxu0 %v8389_v37  ;;  %6243 = vmatprep.subr.bf16.mxu1 %v8394_v22  ;;  %v1428_v37 = vrot.slane %v9458_v7, %v373_v43  ;;  %v8458_v22 = vld [vmem:[#allocation14 + $0x100] ss:$16 sps:$4 sm:$0xff]   ;;  %v8469_v43 = vld [vmem:[#allocation14 + $0x4c4] ss:$16 sps:$4 sm:$0xff]  }
 0x408   :  { %6284 = vmatprep.subr.bf16.mxu0 %v8397_v39  ;;  %v4661_v39 = vmax.f32 %v9425_v18, 0.0  ;;  %v8529_v18 = vld [vmem:[#allocation14 + $0x6c4] ss:$16 sps:$4 sm:$0xff]  }
 0x40a   :  { %6244 = vmatpush1.bf16.msra.mxu1 %v8392_v63  ;;  %v8461_v63 = vld [vmem:[#allocation14 + $0x300] ss:$16 sps:$4 sm:$0xff]  }
 0x40b   :  { %6285 = vmatpush1.bf16.msra.mxu0 %v8395_v3  ;;  %6245 = vmatprep.subr.bf16.mxu1 %v8400_v41  ;;  %v8466_v3 = vld [vmem:[#allocation14 + $0x4e4] ss:$16 sps:$4 sm:$0xff]   ;;  %v4663_v41 = vmax.f32 %v9449_v38, 0.0 }
 0x40c   :  { %6286 = vmatprep.subr.bf16.mxu0 %v8403_v31  ;;  %v8523_v31 = vld [vmem:[#allocation14 + $0x6e4] ss:$16 sps:$4 sm:$0xff]  }
 0x40e   :  { %6246 = vmatpush1.bf16.msra.mxu1 %v8398_v25  ;;  %v4370_v25 = vadd.f32 %v9470_v51, %v1428_v37  ;;  %v8467_v51 = vld [vmem:[#allocation14 + $0x4c0] ss:$16 sps:$4 sm:$0xff]   ;;  %v8490_v37 = vld [vmem:[#allocation14 + $0x5e4] ss:$16 sps:$4 sm:$0xff]  }
 0x40f   :  { %6287 = vmatpush1.bf16.msra.mxu0 %v8401_v42  ;;  %6247 = vmatprep.subr.bf16.mxu1 %v8406_v0  ;;  %v8464_v42 = vld [vmem:[#allocation14 + $0x4e0] ss:$16 sps:$4 sm:$0xff]   ;;  %v9483_v0 = vpack.c.bf16 %v4661_v39, %v4661_v39  ;;  %v8571_v39 = vld [vmem:[#allocation14 + $0x7e4] ss:$16 sps:$4 sm:$0xff]  }
 0x410   :  { %6288 = vmatprep.subr.bf16.mxu0 %v8409_v44  ;;  %v8521_v44 = vld [vmem:[#allocation14 + $0x6e0] ss:$16 sps:$4 sm:$0xff]   ;;  %v4411_v38 = vadd.f32 %v9475_v5, %v4370_v25 }
 0x411   :  { %v8470_v5 = vld [vmem:[#allocation14 + $0x4a0] ss:$16 sps:$4 sm:$0xff]  }
 0x412   :  { %6248 = vmatpush1.bf16.msra.mxu1 %v8404_v45  ;;  %v9485_v45 = vpack.c.bf16 %v4663_v41, %v4663_v41  ;;  %v8569_v41 = vld [vmem:[#allocation14 + $0x7e0] ss:$16 sps:$4 sm:$0xff]  }
 0x413   :  { %6289 = vmatpush1.bf16.msra.mxu0 %v8407_v46  ;;  %6249 = vmatprep.subr.bf16.mxu1 %v8412_v26  ;;  %v8491_v25 = vld [vmem:[#allocation14 + $0x5c0] ss:$16 sps:$4 sm:$0xff]  }
 0x414   :  { %6290 = vmatprep.subr.bf16.mxu0 %v8415_v47 }
 0x416   :  { %6250 = vmatpush1.bf16.msra.mxu1 %v8410_v48  ;;  %v8472_v48 = vld [vmem:[#allocation14 + $0x4a4] ss:$16 sps:$4 sm:$0xff]  }
 0x417   :  { %6291 = vmatpush1.bf16.msra.mxu0 %v8413_v49  ;;  %6251 = vmatprep.subr.bf16.mxu1 %v8418_v50  ;;  %v8527_v49 = vld [vmem:[#allocation14 + $0x6c0] ss:$16 sps:$4 sm:$0xff]  }
 0x418   :  { %6292 = vmatprep.subr.bf16.mxu0 %v8421_v54 }
 0x41a   :  { %6252 = vmatpush2.bf16.msra.mxu1 %v8416_v56  ;;  %v8535_v56 = vld [vmem:[#allocation14 + $0x6a4] ss:$16 sps:$4 sm:$0xff]  }
 0x41b   :  { %6293 = vmatpush2.bf16.msra.mxu0 %v8419_v62  ;;  %6253 = vmatprep.subr.bf16.mxu1 %v8424_v59 }
 0x41c   :  { %6294 = vmatprep.subr.bf16.mxu0 %v8427_v4 }
 0x41e   :  { %6254 = vmatpush2.bf16.msra.mxu1 %v8422_v61 }
 0x41f   :  { %6295 = vmatpush2.bf16.msra.mxu0 %v8425_v40  ;;  %6255 = vmatprep.subr.bf16.mxu1 %v8430_v15  ;;  %v8475_v40 = vld [vmem:[#allocation14 + $0x484] ss:$16 sps:$4 sm:$0xff]   ;;  %v8533_v15 = vld [vmem:[#allocation14 + $0x6a0] ss:$16 sps:$4 sm:$0xff]  }
 0x420   :  { %6296 = vmatprep.subr.bf16.mxu0 %v8433_v8 }
 0x422   :  { %6256 = vmatpush2.bf16.msra.mxu1 %v8428_v9 }
 0x423   :  { %6297 = vmatpush2.bf16.msra.mxu0 %v8431_v2  ;;  %6257 = vmatprep.subr.bf16.mxu1 %v8436_v10  ;;  %v8541_v2 = vld [vmem:[#allocation14 + $0x684] ss:$16 sps:$4 sm:$0xff]  }
 0x424   :  { %6298 = vmatprep.subr.bf16.mxu0 %v8439_v12  ;;  %v8473_v12 = vld [vmem:[#allocation14 + $0x480] ss:$16 sps:$4 sm:$0xff]  }
 0x426   :  { %6258 = vmatpush2.bf16.msra.mxu1 %v8434_v20  ;;  %v8478_v20 = vld [vmem:[#allocation14 + $0x464] ss:$16 sps:$4 sm:$0xff]  }
 0x427   :  { %6299 = vmatpush2.bf16.msra.mxu0 %v8437_v16  ;;  %6259 = vmatprep.subr.bf16.mxu1 %v8442_v19  ;;  %v8539_v16 = vld [vmem:[#allocation14 + $0x680] ss:$16 sps:$4 sm:$0xff]   ;;  %v8547_v19 = vld [vmem:[#allocation14 + $0x664] ss:$16 sps:$4 sm:$0xff]  }
 0x428   :  { %6300 = vmatprep.subr.bf16.mxu0 %v8445_v14  ;;  %v8476_v14 = vld [vmem:[#allocation14 + $0x460] ss:$16 sps:$4 sm:$0xff]  }
 0x42a   :  { %6260 = vmatpush2.bf16.msra.mxu1 %v8440_v60  ;;  %v8481_v60 = vld [vmem:[#allocation14 + $0x444] ss:$16 sps:$4 sm:$0xff]  }
 0x42b   :  { %6301 = vmatpush2.bf16.msra.mxu0 %v8443_v52  ;;  %6261 = vmatprep.subr.bf16.mxu1 %v8448_v55  ;;  %v8545_v52 = vld [vmem:[#allocation14 + $0x660] ss:$16 sps:$4 sm:$0xff]   ;;  %v8553_v55 = vld [vmem:[#allocation14 + $0x644] ss:$16 sps:$4 sm:$0xff]  }
 0x42c   :  { %6302 = vmatprep.subr.bf16.mxu0 %v8451_v57  ;;  %v8479_v57 = vld [vmem:[#allocation14 + $0x440] ss:$16 sps:$4 sm:$0xff]  }
 0x42e   :  { %6262 = vmatpush2.bf16.msra.mxu1 %v8446_v6  ;;  %v8484_v6 = vld [vmem:[#allocation14 + $0x424] ss:$16 sps:$4 sm:$0xff]  }
 0x42f   :  { %6303 = vmatpush2.bf16.msra.mxu0 %v8449_v58  ;;  %6263 = vmatprep.subr.bf16.mxu1 %v8454_v23  ;;  %v8551_v58 = vld [vmem:[#allocation14 + $0x640] ss:$16 sps:$4 sm:$0xff]   ;;  %v8559_v23 = vld [vmem:[#allocation14 + $0x624] ss:$16 sps:$4 sm:$0xff]  }
 0x430   :  { %6304 = vmatprep.subr.bf16.mxu0 %v8457_v21  ;;  %v8482_v21 = vld [vmem:[#allocation14 + $0x420] ss:$16 sps:$4 sm:$0xff]  }
 0x432   :  { %6264 = vmatpush2.bf16.msra.mxu1 %v8452_v27  ;;  %v8487_v27 = vld [vmem:[#allocation14 + $0x404] ss:$16 sps:$4 sm:$0xff]  }
 0x433   :  { %6305 = vmatpush2.bf16.msra.mxu0 %v8455_v34  ;;  %6265 = vmatprep.subr.bf16.mxu1 %v8460_v35  ;;  %v8557_v34 = vld [vmem:[#allocation14 + $0x620] ss:$16 sps:$4 sm:$0xff]   ;;  %v8565_v35 = vld [vmem:[#allocation14 + $0x604] ss:$16 sps:$4 sm:$0xff]  }
 0x434   :  { %6306 = vmatprep.subr.bf16.mxu0 %v8463_v36  ;;  %v8485_v36 = vld [vmem:[#allocation14 + $0x400] ss:$16 sps:$4 sm:$0xff]  }
 0x436   :  { %6266 = vmatpush2.bf16.msra.mxu1 %v8458_v22  ;;  %v8563_v22 = vld [vmem:[#allocation14 + $0x600] ss:$16 sps:$4 sm:$0xff]  }
 0x437   :  { %6307 = vmatpush2.bf16.msra.mxu0 %v8461_v63  ;;  %6317 = vmatprep.subr.bf16.mxu1 %v8466_v3  ;;  %v8488_v63 = vld [vmem:[#allocation14 + $0x5e0] ss:$16 sps:$4 sm:$0xff]   ;;  %v8493_v3 = vld [vmem:[#allocation14 + $0x5c4] ss:$16 sps:$4 sm:$0xff]  }
 0x438   :  { %6358 = vmatprep.subr.bf16.mxu0 %v8523_v31  ;;  %v8577_v31 = vld [vmem:[#allocation14 + $0x7c4] ss:$16 sps:$4 sm:$0xff]  }
 0x439   :  { %v9487_v46 = vpop.f32.mrf.mxu1  ;;  %6268 = vmatmul.mubr.bf16.vlgmr.msra.gmra.mxu1 %v9483_v0 }
 0x43a   :  { %v9491_v26 = vpop.f32.mrf.mxu0  ;;  %6309 = vmatmul.mubr.bf16.vlgmr.msra.gmra.mxu0 %v9485_v45  ;;  %6318 = vmatpush1.bf16.msra.mxu1 %v8464_v42  ;;  %v8496_v42 = vld [vmem:[#allocation14 + $0x5a4] ss:$16 sps:$4 sm:$0xff]  }
 0x43b   :  { %v4451_v47 = vpop.f32.mrf.mxu1  ;;  %6319 = vmatprep.subr.bf16.mxu1 %v8469_v43  ;;  %6359 = vmatpush1.bf16.msra.mxu0 %v8521_v44  ;;  %v8575_v43 = vld [vmem:[#allocation14 + $0x7c0] ss:$16 sps:$4 sm:$0xff]   ;;  %v8583_v44 = vld [vmem:[#allocation14 + $0x7a4] ss:$16 sps:$4 sm:$0xff]  }
 0x43c   :  { %v4452_v50 = vadd.f32 %v4451_v47, %v4411_v38  ;;  %v4492_v54 = vpop.f32.mrf.mxu0  ;;  %6360 = vmatprep.subr.bf16.mxu0 %v8529_v18  ;;  %v8494_v18 = vld [vmem:[#allocation14 + $0x5a0] ss:$16 sps:$4 sm:$0xff]   ;;  %v8499_v38 = vld [vmem:[#allocation14 + $0x584] ss:$16 sps:$4 sm:$0xff]  }
 0x43d   :  { %v4453_v62 = vpop.f32.mrf.mxu1  ;;  %v8589_v47 = vld [vmem:[#allocation14 + $0x784] ss:$16 sps:$4 sm:$0xff]  }
 0x43e   :  { %v4493_v59 = vadd.f32 %v4492_v54, %v4452_v50  ;;  %v4494_v4 = vpop.f32.mrf.mxu0  ;;  %6320 = vmatpush1.bf16.msra.mxu1 %v8467_v51  ;;  %v8581_v51 = vld [vmem:[#allocation14 + $0x7a0] ss:$16 sps:$4 sm:$0xff]   ;;  %v8595_v54 = vld [vmem:[#allocation14 + $0x764] ss:$16 sps:$4 sm:$0xff]  }
 0x43f   :  { %v4454_v61 = vpop.f32.mrf.mxu1  ;;  %6321 = vmatprep.subr.bf16.mxu1 %v8472_v48  ;;  %6361 = vmatpush1.bf16.msra.mxu0 %v8527_v49  ;;  %v8497_v48 = vld [vmem:[#allocation14 + $0x580] ss:$16 sps:$4 sm:$0xff]   ;;  %v8502_v49 = vld [vmem:[#allocation14 + $0x564] ss:$16 sps:$4 sm:$0xff]  }
 0x440   :  { %v4666_v8 = vmax.f32 %v4493_v59, 0.0  ;;  %v4495_v9 = vpop.f32.mrf.mxu0  ;;  %6362 = vmatprep.subr.bf16.mxu0 %v8535_v56  ;;  %v8587_v50 = vld [vmem:[#allocation14 + $0x780] ss:$16 sps:$4 sm:$0xff]   ;;  %v8505_v62 = vld [vmem:[#allocation14 + $0x544] ss:$16 sps:$4 sm:$0xff]   ;;  %v4450_v61 = vadd.f32 %v9487_v46, %v9472_v53 }
 0x441   :  { %v8500_v56 = vld [vmem:[#allocation14 + $0x560] ss:$16 sps:$4 sm:$0xff]   ;;  %v8601_v4 = vld [vmem:[#allocation14 + $0x744] ss:$16 sps:$4 sm:$0xff]   ;;  %v8514_v53 = vld [vmem:[#allocation14 + $0xec] ss:$16 sps:$4 sm:$0xff]  }
 0x442   :  { %v9494_v10 = vpack.c.bf16 %v4666_v8, %v4666_v8  ;;  %6322 = vmatpush1.bf16.msra.mxu1 %v8470_v5  ;;  %v8593_v59 = vld [vmem:[#allocation14 + $0x760] ss:$16 sps:$4 sm:$0xff]   ;;  %v8607_v8 = vld [vmem:[#allocation14 + $0x724] ss:$16 sps:$4 sm:$0xff]  }
 0x443   :  { %6323 = vmatprep.subr.bf16.mxu1 %v8475_v40  ;;  %6363 = vmatpush1.bf16.msra.mxu0 %v8533_v15  ;;  %v8503_v5 = vld [vmem:[#allocation14 + $0x540] ss:$16 sps:$4 sm:$0xff]   ;;  %v8508_v40 = vld [vmem:[#allocation14 + $0x524] ss:$16 sps:$4 sm:$0xff]  }
 0x444   :  { %6349 = vmatprep.mubr.bf16.mxu1 %v9494_v10  ;;  %6364 = vmatprep.subr.bf16.mxu0 %v8541_v2  ;;  %v8599_v15 = vld [vmem:[#allocation14 + $0x740] ss:$16 sps:$4 sm:$0xff]   ;;  %v4491_v2 = vadd.f32 %v9491_v26, %v4450_v61  ;;  %v8517_v26 = vld [vmem:[#allocation14 + $0xcc] ss:$16 sps:$4 sm:$0xff]   ;;  %v8590_v61 = vld [vmem:[#allocation14 + $0x128] ss:$16 sps:$4 sm:$0xff]  }
 0x445   :  { %v8506_v9 = vld [vmem:[#allocation14 + $0x520] ss:$16 sps:$4 sm:$0xff]  }
 0x446   :  { %6324 = vmatpush1.bf16.msra.mxu1 %v8473_v12  ;;  %v8511_v12 = vld [vmem:[#allocation14 + $0x504] ss:$16 sps:$4 sm:$0xff]   ;;  %v8611_v46 = vld [vmem:[#allocation14 + $0x700] ss:$16 sps:$4 sm:$0xff]  }
 0x447   :  { %6325 = vmatprep.subr.bf16.mxu1 %v8478_v20  ;;  %6365 = vmatpush1.bf16.msra.mxu0 %v8539_v16  ;;  %v8605_v20 = vld [vmem:[#allocation14 + $0x720] ss:$16 sps:$4 sm:$0xff]   ;;  %v8613_v16 = vld [vmem:[#allocation14 + $0x704] ss:$16 sps:$4 sm:$0xff]  }
 0x448   :  { %6366 = vmatprep.subr.bf16.mxu0 %v8547_v19  ;;  %v8509_v19 = vld [vmem:[#allocation14 + $0x500] ss:$16 sps:$4 sm:$0xff]  }
 0x44a   :  { %6326 = vmatpush1.bf16.msra.mxu1 %v8476_v14  ;;  %v4665_v14 = vmax.f32 %v4491_v2, 0.0  ;;  %v8604_v2 = vld [vmem:[#allocation14 + $0x4ec] ss:$16 sps:$4 sm:$0xff]  }
 0x44b   :  { %6327 = vmatprep.subr.bf16.mxu1 %v8481_v60  ;;  %6367 = vmatpush1.bf16.msra.mxu0 %v8545_v52  ;;  %v8619_v60 = vld [vmem:[#allocation14 + $0x2ec] ss:$16 sps:$4 sm:$0xff]   ;;  %v8512_v52 = vld [vmem:[#allocation14 + $0xe8] ss:$16 sps:$4 sm:$0xff]  }
 0x44c   :  { %6368 = vmatprep.subr.bf16.mxu0 %v8553_v55  ;;  %v9500_v55 = vpack.c.bf16 %v4665_v14, %v4665_v14 }
 0x44e   :  { %6328 = vmatpush1.bf16.msra.mxu1 %v8479_v57 }
 0x44f   :  { %6329 = vmatprep.subr.bf16.mxu1 %v8484_v6  ;;  %6369 = vmatpush1.bf16.msra.mxu0 %v8551_v58  ;;  %v8515_v58 = vld [vmem:[#allocation14 + $0xc8] ss:$16 sps:$4 sm:$0xff]  }
 0x450   :  { %6370 = vmatprep.subr.bf16.mxu0 %v8559_v23 }
 0x452   :  { %6330 = vmatpush1.bf16.msra.mxu1 %v8482_v21  ;;  %v8520_v21 = vld [vmem:[#allocation14 + $0xac] ss:$16 sps:$4 sm:$0xff]  }
 0x453   :  { %6331 = vmatprep.subr.bf16.mxu1 %v8487_v27  ;;  %6371 = vmatpush1.bf16.msra.mxu0 %v8557_v34 }
 0x454   :  { %6372 = vmatprep.subr.bf16.mxu0 %v8565_v35 }
 0x456   :  { %6332 = vmatpush1.bf16.msra.mxu1 %v8485_v36  ;;  %v8518_v36 = vld [vmem:[#allocation14 + $0xa8] ss:$16 sps:$4 sm:$0xff]  }
 0x457   :  { %6333 = vmatprep.subr.bf16.mxu1 %v8490_v37  ;;  %6373 = vmatpush1.bf16.msra.mxu0 %v8563_v22  ;;  %v8526_v22 = vld [vmem:[#allocation14 + $0x8c] ss:$16 sps:$4 sm:$0xff]  }
 0x458   :  { %6374 = vmatprep.subr.bf16.mxu0 %v8571_v39 }
 0x45a   :  { %6334 = vmatpush2.bf16.msra.mxu1 %v8488_v63  ;;  %v8524_v63 = vld [vmem:[#allocation14 + $0x88] ss:$16 sps:$4 sm:$0xff]  }
 0x45b   :  { %6335 = vmatprep.subr.bf16.mxu1 %v8493_v3  ;;  %6375 = vmatpush2.bf16.msra.mxu0 %v8569_v41  ;;  %v8532_v3 = vld [vmem:[#allocation14 + $0x6c] ss:$16 sps:$4 sm:$0xff]  }
 0x45c   :  { %6376 = vmatprep.subr.bf16.mxu0 %v8577_v31  ;;  %v8538_v41 = vld [vmem:[#allocation14 + $0x4c] ss:$16 sps:$4 sm:$0xff]   ;;  %v8536_v31 = vld [vmem:[#allocation14 + $0x48] ss:$16 sps:$4 sm:$0xff]  }
 0x45e   :  { %6336 = vmatpush2.bf16.msra.mxu1 %v8491_v25  ;;  %v8544_v25 = vld [vmem:[#allocation14 + $0x2c] ss:$16 sps:$4 sm:$0xff]  }
 0x45f   :  { %6337 = vmatprep.subr.bf16.mxu1 %v8496_v42  ;;  %6377 = vmatpush2.bf16.msra.mxu0 %v8575_v43  ;;  %v8542_v42 = vld [vmem:[#allocation14 + $0x28] ss:$16 sps:$4 sm:$0xff]   ;;  %v8550_v43 = vld [vmem:[#allocation14 + $0xc] ss:$16 sps:$4 sm:$0xff]  }
 0x460   :  { %6378 = vmatprep.subr.bf16.mxu0 %v8583_v44  ;;  %v8548_v44 = vld [vmem:[#allocation14 + $0x8] ss:$16 sps:$4 sm:$0xff]  }
 0x462   :  { %6338 = vmatpush2.bf16.msra.mxu1 %v8494_v18  ;;  %v8556_v18 = vld [vmem:[#allocation14 + $0x1ec] ss:$16 sps:$4 sm:$0xff]  }
 0x463   :  { %6339 = vmatprep.subr.bf16.mxu1 %v8499_v38  ;;  %6379 = vmatpush2.bf16.msra.mxu0 %v8581_v51  ;;  %v8554_v38 = vld [vmem:[#allocation14 + $0x1e8] ss:$16 sps:$4 sm:$0xff]   ;;  %v8562_v51 = vld [vmem:[#allocation14 + $0x1cc] ss:$16 sps:$4 sm:$0xff]  }
 0x464   :  { %6380 = vmatprep.subr.bf16.mxu0 %v8589_v47  ;;  %v8560_v47 = vld [vmem:[#allocation14 + $0x1c8] ss:$16 sps:$4 sm:$0xff]  }
 0x466   :  { %6340 = vmatpush2.bf16.msra.mxu1 %v8497_v48  ;;  %v8568_v48 = vld [vmem:[#allocation14 + $0x1ac] ss:$16 sps:$4 sm:$0xff]  }
 0x467   :  { %6341 = vmatprep.subr.bf16.mxu1 %v8502_v49  ;;  %6381 = vmatpush2.bf16.msra.mxu0 %v8587_v50  ;;  %v8566_v49 = vld [vmem:[#allocation14 + $0x1a8] ss:$16 sps:$4 sm:$0xff]   ;;  %v8574_v50 = vld [vmem:[#allocation14 + $0x18c] ss:$16 sps:$4 sm:$0xff]  }
 0x468   :  { %6382 = vmatprep.subr.bf16.mxu0 %v8595_v54  ;;  %v8572_v54 = vld [vmem:[#allocation14 + $0x188] ss:$16 sps:$4 sm:$0xff]  }
 0x46a   :  { %6342 = vmatpush2.bf16.msra.mxu1 %v8500_v56  ;;  %v8580_v56 = vld [vmem:[#allocation14 + $0x16c] ss:$16 sps:$4 sm:$0xff]  }
 0x46b   :  { %6343 = vmatprep.subr.bf16.mxu1 %v8505_v62  ;;  %6383 = vmatpush2.bf16.msra.mxu0 %v8593_v59  ;;  %v8578_v62 = vld [vmem:[#allocation14 + $0x168] ss:$16 sps:$4 sm:$0xff]   ;;  %v8586_v59 = vld [vmem:[#allocation14 + $0x14c] ss:$16 sps:$4 sm:$0xff]  }
 0x46c   :  { %6384 = vmatprep.subr.bf16.mxu0 %v8601_v4  ;;  %v8584_v4 = vld [vmem:[#allocation14 + $0x148] ss:$16 sps:$4 sm:$0xff]  }
 0x46e   :  { %6344 = vmatpush2.bf16.msra.mxu1 %v8503_v5  ;;  %v8592_v5 = vld [vmem:[#allocation14 + $0x12c] ss:$16 sps:$4 sm:$0xff]  }
 0x46f   :  { %6345 = vmatprep.subr.bf16.mxu1 %v8508_v40  ;;  %6385 = vmatpush2.bf16.msra.mxu0 %v8599_v15  ;;  %v8598_v40 = vld [vmem:[#allocation14 + $0x10c] ss:$16 sps:$4 sm:$0xff]   ;;  %v1432_v15 = vrot.slane %v9458_v7, %v377_v17 }
 0x470   :  { %6386 = vmatprep.subr.bf16.mxu0 %v8607_v8  ;;  %v1436_v8 = vrot.slane %v9458_v7, %v381_v24  ;;  %v8608_v7 = vld [vmem:[#allocation14 + $0x4c8] ss:$16 sps:$4 sm:$0xff]  }
 0x472   :  { %6346 = vmatpush2.bf16.msra.mxu1 %v8506_v9  ;;  %v8596_v9 = vld [vmem:[#allocation14 + $0x108] ss:$16 sps:$4 sm:$0xff]  }
 0x473   :  { %6347 = vmatprep.subr.bf16.mxu1 %v8511_v12  ;;  %6387 = vmatpush2.bf16.msra.mxu0 %v8605_v20 }
 0x474   :  { %6388 = vmatprep.subr.bf16.mxu0 %v8613_v16  ;;  %v8602_v16 = vld [vmem:[#allocation14 + $0x4e8] ss:$16 sps:$4 sm:$0xff]  }
 0x476   :  { %6348 = vmatpush2.bf16.msra.mxu1 %v8509_v19  ;;  %v8610_v19 = vld [vmem:[#allocation14 + $0x4cc] ss:$16 sps:$4 sm:$0xff]  }
 0x477   :  { %6399 = vmatprep.subr.bf16.mxu1 %v8514_v53  ;;  %6389 = vmatpush2.bf16.msra.mxu0 %v8611_v46 }
 0x478   :  { %6440 = vmatprep.subr.bf16.mxu0 %v8619_v60  ;;  %v8616_v60 = vld [vmem:[#allocation14 + $0x4ac] ss:$16 sps:$4 sm:$0xff]  }
 0x479   :  { %v9502_v57 = vpop.f32.mrf.mxu1  ;;  %6350 = vmatmul.mubr.bf16.vlgmr.msra.gmra.mxu1 %v9500_v55 }
 0x47a   :  { %v9505_v6 = vpop.f32.mrf.mxu0  ;;  %6400 = vmatpush1.bf16.msra.mxu1 %v8512_v52  ;;  %6431 = vmatprep.mubr.bf16.mxu1 %v9463_v11  ;;  %v8530_v11 = vld [vmem:[#allocation14 + $0x68] ss:$16 sps:$4 sm:$0xff]   ;;  %v4532_v12 = vadd.f32 %v9502_v57, %v1432_v15  ;;  %v8664_v15 = vld [vmem:[#allocation14 + $0x5ac] ss:$16 sps:$4 sm:$0xff]  }
 0x47b   :  { %v9508_v23 = vpop.f32.mrf.mxu1  ;;  %6401 = vmatprep.subr.bf16.mxu1 %v8517_v26 }
 0x47c   :  { %v9510_v27 = vpop.f32.mrf.mxu0  ;;  %v4534_v20 = vadd.f32 %v9508_v23, %v1436_v8  ;;  %v4573_v14 = vadd.f32 %v9505_v6, %v4532_v12  ;;  %v8659_v8 = vld [vmem:[#allocation14 + $0x208] ss:$16 sps:$4 sm:$0xff]   ;;  %v8670_v12 = vld [vmem:[#allocation14 + $0x58c] ss:$16 sps:$4 sm:$0xff]  }
 0x47d   :  { %v4535_v34 = vpop.f32.mrf.mxu1 }
 0x47e   :  { %v4576_v35 = vpop.f32.mrf.mxu0  ;;  %6402 = vmatpush1.bf16.msra.mxu1 %v8515_v58  ;;  %v4575_v28 = vadd.f32 %v9510_v27, %v4534_v20  ;;  %v8622_v27 = vld [vmem:[#allocation14 + $0x48c] ss:$16 sps:$4 sm:$0xff]   ;;  %v8665_v20 = vld [vmem:[#allocation14 + $0x3e8] ss:$16 sps:$4 sm:$0xff]  }
 0x47f   :  { %v4536_v37 = vpop.f32.mrf.mxu1  ;;  %6403 = vmatprep.subr.bf16.mxu1 %v8520_v21  ;;  %v8614_v21 = vld [vmem:[#allocation14 + $0x4a8] ss:$16 sps:$4 sm:$0xff]  }
 0x480   :  { %v4577_v39 = vpop.f32.mrf.mxu0 }
 0x481   :  { %v8620_v39 = vld [vmem:[#allocation14 + $0x488] ss:$16 sps:$4 sm:$0xff]  }
 0x482   :  { %6404 = vmatpush1.bf16.msra.mxu1 %v8518_v36 }
 0x483   :  { %6405 = vmatprep.subr.bf16.mxu1 %v8526_v22 }
 0x486   :  { %6406 = vmatpush1.bf16.msra.mxu1 %v8524_v63  ;;  %v8625_v63 = vld [vmem:[#allocation14 + $0x2cc] ss:$16 sps:$4 sm:$0xff]  }
 0x487   :  { %6407 = vmatprep.subr.bf16.mxu1 %v8532_v3  ;;  %v8628_v3 = vld [vmem:[#allocation14 + $0x46c] ss:$16 sps:$4 sm:$0xff]  }
 0x48a   :  { %6408 = vmatpush1.bf16.msra.mxu1 %v8530_v11  ;;  %v8623_v11 = vld [vmem:[#allocation14 + $0x2c8] ss:$16 sps:$4 sm:$0xff]  }
 0x48b   :  { %6409 = vmatprep.subr.bf16.mxu1 %v8538_v41  ;;  %v8626_v41 = vld [vmem:[#allocation14 + $0x468] ss:$16 sps:$4 sm:$0xff]  }
 0x48e   :  { %6410 = vmatpush1.bf16.msra.mxu1 %v8536_v31  ;;  %v8631_v31 = vld [vmem:[#allocation14 + $0x2ac] ss:$16 sps:$4 sm:$0xff]  }
 0x48f   :  { %6411 = vmatprep.subr.bf16.mxu1 %v8544_v25  ;;  %v8634_v25 = vld [vmem:[#allocation14 + $0x44c] ss:$16 sps:$4 sm:$0xff]  }
 0x492   :  { %6412 = vmatpush1.bf16.msra.mxu1 %v8542_v42  ;;  %v8629_v42 = vld [vmem:[#allocation14 + $0x2a8] ss:$16 sps:$4 sm:$0xff]  }
 0x493   :  { %6413 = vmatprep.subr.bf16.mxu1 %v8550_v43  ;;  %v8632_v43 = vld [vmem:[#allocation14 + $0x448] ss:$16 sps:$4 sm:$0xff]  }
 0x496   :  { %6414 = vmatpush1.bf16.msra.mxu1 %v8548_v44  ;;  %v8637_v44 = vld [vmem:[#allocation14 + $0x28c] ss:$16 sps:$4 sm:$0xff]  }
 0x497   :  { %6415 = vmatprep.subr.bf16.mxu1 %v8556_v18  ;;  %v8640_v18 = vld [vmem:[#allocation14 + $0x42c] ss:$16 sps:$4 sm:$0xff]  }
 0x49a   :  { %6416 = vmatpush2.bf16.msra.mxu1 %v8554_v38  ;;  %v8635_v38 = vld [vmem:[#allocation14 + $0x288] ss:$16 sps:$4 sm:$0xff]  }
 0x49b   :  { %6417 = vmatprep.subr.bf16.mxu1 %v8562_v51  ;;  %v8643_v51 = vld [vmem:[#allocation14 + $0x26c] ss:$16 sps:$4 sm:$0xff]  }
 0x49e   :  { %6418 = vmatpush2.bf16.msra.mxu1 %v8560_v47  ;;  %v8646_v47 = vld [vmem:[#allocation14 + $0x40c] ss:$16 sps:$4 sm:$0xff]  }
 0x49f   :  { %6419 = vmatprep.subr.bf16.mxu1 %v8568_v48  ;;  %v8641_v48 = vld [vmem:[#allocation14 + $0x268] ss:$16 sps:$4 sm:$0xff]  }
 0x4a2   :  { %6420 = vmatpush2.bf16.msra.mxu1 %v8566_v49  ;;  %v8644_v49 = vld [vmem:[#allocation14 + $0x408] ss:$16 sps:$4 sm:$0xff]  }
 0x4a3   :  { %6421 = vmatprep.subr.bf16.mxu1 %v8574_v50  ;;  %v8649_v50 = vld [vmem:[#allocation14 + $0x24c] ss:$16 sps:$4 sm:$0xff]  }
 0x4a6   :  { %6422 = vmatpush2.bf16.msra.mxu1 %v8572_v54  ;;  %v8652_v54 = vld [vmem:[#allocation14 + $0x5ec] ss:$16 sps:$4 sm:$0xff]  }
 0x4a7   :  { %6423 = vmatprep.subr.bf16.mxu1 %v8580_v56  ;;  %v8647_v56 = vld [vmem:[#allocation14 + $0x248] ss:$16 sps:$4 sm:$0xff]  }
 0x4aa   :  { %6424 = vmatpush2.bf16.msra.mxu1 %v8578_v62  ;;  %v8650_v62 = vld [vmem:[#allocation14 + $0x5e8] ss:$16 sps:$4 sm:$0xff]  }
 0x4ab   :  { %6425 = vmatprep.subr.bf16.mxu1 %v8586_v59  ;;  %v8655_v59 = vld [vmem:[#allocation14 + $0x22c] ss:$16 sps:$4 sm:$0xff]  }
 0x4ae   :  { %6426 = vmatpush2.bf16.msra.mxu1 %v8584_v4  ;;  %v8658_v4 = vld [vmem:[#allocation14 + $0x5cc] ss:$16 sps:$4 sm:$0xff]  }
 0x4af   :  { %6427 = vmatprep.subr.bf16.mxu1 %v8592_v5  ;;  %v8653_v5 = vld [vmem:[#allocation14 + $0x228] ss:$16 sps:$4 sm:$0xff]  }
 0x4b2   :  { %6428 = vmatpush2.bf16.msra.mxu1 %v8590_v61  ;;  %v8656_v61 = vld [vmem:[#allocation14 + $0x5c8] ss:$16 sps:$4 sm:$0xff]  }
 0x4b3   :  { %6429 = vmatprep.subr.bf16.mxu1 %v8598_v40  ;;  %v8661_v40 = vld [vmem:[#allocation14 + $0x20c] ss:$16 sps:$4 sm:$0xff]  }
 0x4b6   :  { %6430 = vmatpush2.bf16.msra.mxu1 %v8596_v9  ;;  %v8662_v9 = vld [vmem:[#allocation14 + $0x5a8] ss:$16 sps:$4 sm:$0xff]  }
 0x4b7   :  { %6481 = vmatprep.subr.bf16.mxu1 %v8604_v2  ;;  %v8667_v2 = vld [vmem:[#allocation14 + $0x3ec] ss:$16 sps:$4 sm:$0xff]  }
 0x4b9   :  { %v4613_v53 = vpop.f32.mrf.mxu1  ;;  %6432 = vmatmul.mubr.bf16.vlgmr.msra.gmra.mxu1 %v9483_v0 }
 0x4ba   :  { %v4614_v24 = vadd.f32 %v4613_v53, %v4573_v14  ;;  %v4654_v17 = vpop.f32.mrf.mxu0  ;;  %6482 = vmatpush1.bf16.msra.mxu1 %v8602_v16  ;;  %6513 = vmatprep.mubr.bf16.mxu1 %v9494_v10  ;;  %v8617_v10 = vld [vmem:[#allocation14 + $0x2e8] ss:$16 sps:$4 sm:$0xff]   ;;  %v8676_v14 = vld [vmem:[#allocation14 + $0x56c] ss:$16 sps:$4 sm:$0xff]  }
 0x4bb   :  { %v4615_v46 = vpop.f32.mrf.mxu1  ;;  %6483 = vmatprep.subr.bf16.mxu1 %v8610_v19  ;;  %v8668_v16 = vld [vmem:[#allocation14 + $0x588] ss:$16 sps:$4 sm:$0xff]   ;;  %v8673_v19 = vld [vmem:[#allocation14 + $0x3cc] ss:$16 sps:$4 sm:$0xff]  }
 0x4bc   :  { %v4655_v52 = vadd.f32 %v4654_v17, %v4614_v24  ;;  %v4616_v26 = vadd.f32 %v4615_v46, %v4575_v28  ;;  %v4656_v57 = vpop.f32.mrf.mxu0  ;;  %v8671_v53 = vld [vmem:[#allocation14 + $0x3c8] ss:$16 sps:$4 sm:$0xff]   ;;  %v8679_v24 = vld [vmem:[#allocation14 + $0x3ac] ss:$16 sps:$4 sm:$0xff]  }
 0x4bd   :  { %v4617_v58 = vpop.f32.mrf.mxu1  ;;  %v8674_v28 = vld [vmem:[#allocation14 + $0x568] ss:$16 sps:$4 sm:$0xff]   ;;  %v8682_v17 = vld [vmem:[#allocation14 + $0x54c] ss:$16 sps:$4 sm:$0xff]  }
 0x4be   :  { %v4657_v23 = vadd.f32 %v4656_v57, %v4616_v26  ;;  %v4658_v6 = vpop.f32.mrf.mxu0  ;;  %6484 = vmatpush1.bf16.msra.mxu1 %v8608_v7  ;;  %v4667_v0 = vmax.f32 %v4655_v52, 0.0  ;;  %v8677_v7 = vld [vmem:[#allocation14 + $0x3a8] ss:$16 sps:$4 sm:$0xff]   ;;  %v8688_v52 = vld [vmem:[#allocation14 + $0x52c] ss:$16 sps:$4 sm:$0xff]  }
 0x4bf   :  { %v4618_v34 = vpop.f32.mrf.mxu1  ;;  %6485 = vmatprep.subr.bf16.mxu1 %v8616_v60  ;;  %v8680_v46 = vld [vmem:[#allocation14 + $0x548] ss:$16 sps:$4 sm:$0xff]   ;;  %v8685_v60 = vld [vmem:[#allocation14 + $0x38c] ss:$16 sps:$4 sm:$0xff]  }
 0x4c0   :  { %v4668_v35 = vmax.f32 %v4657_v23, 0.0  ;;  %v4659_v36 = vpop.f32.mrf.mxu0  ;;  %v9526_v22 = vpack.c.bf16 %v4667_v0, %v4667_v0  ;;  %v8683_v26 = vld [vmem:[#allocation14 + $0x388] ss:$16 sps:$4 sm:$0xff]   ;;  %v8691_v58 = vld [vmem:[#allocation14 + $0x36c] ss:$16 sps:$4 sm:$0xff]  }
 0x4c1   :  { %v8686_v57 = vld [vmem:[#allocation14 + $0x528] ss:$16 sps:$4 sm:$0xff]   ;;  %v8694_v23 = vld [vmem:[#allocation14 + $0x50c] ss:$16 sps:$4 sm:$0xff]   ;;  %v9531_v34 = vld [vmem:[#allocation16] sm:$0xf] }
 0x4c2   :  { %v9524_v37 = vpack.c.bf16 %v4668_v35, %v4668_v35  ;;  %6486 = vmatpush1.bf16.msra.mxu1 %v8614_v21  ;;  %v8689_v6 = vld [vmem:[#allocation14 + $0x368] ss:$16 sps:$4 sm:$0xff]   ;;  %v8697_v0 = vld [vmem:[#allocation14 + $0x34c] ss:$16 sps:$4 sm:$0xff]   ;;  %v4938_v36 = vrot.slane %v9531_v34, %v9328_v29 }
 0x4c3   :  { %6487 = vmatprep.subr.bf16.mxu1 %v8622_v27  ;;  %v8692_v21 = vld [vmem:[#allocation14 + $0x508] ss:$16 sps:$4 sm:$0xff]  }
 0x4c4   :  { %6390 = vmatprep.mubr.bf16.mxu0 %v9524_v37  ;;  %v8754_v27 = vld [vmem:[#allocation17 + $0x74] ss:$8 sps:$4 sm:$0xff]  }
 0x4c5   :  { %6391 = vmatmul.mubr.bf16.vlgmr.msra.gmra.mxu0 %v9526_v22  ;;  %v8695_v35 = vld [vmem:[#allocation14 + $0x348] ss:$16 sps:$4 sm:$0xff]  }
 0x4c6   :  { %6441 = vmatpush1.bf16.msra.mxu0 %v8617_v10  ;;  %6472 = vmatprep.mubr.bf16.mxu0 %v9466_v13  ;;  %v8638_v13 = vld [vmem:[#allocation14 + $0x428] ss:$16 sps:$4 sm:$0xff]   ;;  %v8700_v10 = vld [vmem:[#allocation14 + $0x32c] ss:$16 sps:$4 sm:$0xff]  }
 0x4c7   :  { %6488 = vmatpush1.bf16.msra.mxu1 %v8620_v39  ;;  %6442 = vmatprep.subr.bf16.mxu0 %v8625_v63  ;;  %v8752_v39 = vld [vmem:[#allocation17 + $0x70] ss:$8 sps:$4 sm:$0xff]   ;;  %v4942_v63 = vrot.slane %v9531_v34, %v9336_v32 }
 0x4c8   :  { %6489 = vmatprep.subr.bf16.mxu1 %v8628_v3  ;;  %v8757_v3 = vld [vmem:[#allocation17 + $0x64] ss:$8 sps:$4 sm:$0xff]  }
 0x4ca   :  { %6443 = vmatpush1.bf16.msra.mxu0 %v8623_v11 }
 0x4cb   :  { %6490 = vmatpush1.bf16.msra.mxu1 %v8626_v41  ;;  %6444 = vmatprep.subr.bf16.mxu0 %v8631_v31 }
 0x4cc   :  { %6491 = vmatprep.subr.bf16.mxu1 %v8634_v25  ;;  %v8698_v25 = vld [vmem:[#allocation14 + $0x328] ss:$16 sps:$4 sm:$0xff]  }
 0x4ce   :  { %6445 = vmatpush1.bf16.msra.mxu0 %v8629_v42 }
 0x4cf   :  { %6492 = vmatpush1.bf16.msra.mxu1 %v8632_v43  ;;  %6446 = vmatprep.subr.bf16.mxu0 %v8637_v44  ;;  %v8703_v43 = vld [vmem:[#allocation14 + $0x30c] ss:$16 sps:$4 sm:$0xff]  }
 0x4d0   :  { %6493 = vmatprep.subr.bf16.mxu1 %v8640_v18  ;;  %v8755_v44 = vld [vmem:[#allocation17 + $0x60] ss:$8 sps:$4 sm:$0xff]  }
 0x4d2   :  { %6447 = vmatpush1.bf16.msra.mxu0 %v8635_v38 }
 0x4d3   :  { %6494 = vmatpush1.bf16.msra.mxu1 %v8638_v13  ;;  %6448 = vmatprep.subr.bf16.mxu0 %v8643_v51  ;;  %v8760_v51 = vld [vmem:[#allocation17 + $0x54] ss:$8 sps:$4 sm:$0xff]  }
 0x4d4   :  { %6495 = vmatprep.subr.bf16.mxu1 %v8646_v47 }
 0x4d6   :  { %6449 = vmatpush1.bf16.msra.mxu0 %v8641_v48 }
 0x4d7   :  { %6496 = vmatpush1.bf16.msra.mxu1 %v8644_v49  ;;  %6450 = vmatprep.subr.bf16.mxu0 %v8649_v50  ;;  %v8701_v50 = vld [vmem:[#allocation14 + $0x308] ss:$16 sps:$4 sm:$0xff]  }
 0x4d8   :  { %6497 = vmatprep.subr.bf16.mxu1 %v8652_v54 }
 0x4da   :  { %6451 = vmatpush1.bf16.msra.mxu0 %v8647_v56  ;;  %v8758_v56 = vld [vmem:[#allocation17 + $0x50] ss:$8 sps:$4 sm:$0xff]  }
 0x4db   :  { %6498 = vmatpush2.bf16.msra.mxu1 %v8650_v62  ;;  %6452 = vmatprep.subr.bf16.mxu0 %v8655_v59  ;;  %v8763_v59 = vld [vmem:[#allocation17 + $0x44] ss:$8 sps:$4 sm:$0xff]  }
 0x4dc   :  { %6499 = vmatprep.subr.bf16.mxu1 %v8658_v4  ;;  %v8704_v4 = vld [vmem:[#allocation14 + $0x6e8] ss:$16 sps:$4 sm:$0xff]  }
 0x4de   :  { %6453 = vmatpush1.bf16.msra.mxu0 %v8653_v5  ;;  %v8709_v5 = vld [vmem:[#allocation14 + $0x6cc] ss:$16 sps:$4 sm:$0xff]  }
 0x4df   :  { %6500 = vmatpush2.bf16.msra.mxu1 %v8656_v61  ;;  %6454 = vmatprep.subr.bf16.mxu0 %v8661_v40  ;;  %v8761_v61 = vld [vmem:[#allocation17 + $0x40] ss:$8 sps:$4 sm:$0xff]   ;;  %v8766_v40 = vld [vmem:[#allocation17 + $0x34] ss:$8 sps:$4 sm:$0xff]  }
 0x4e0   :  { %6501 = vmatprep.subr.bf16.mxu1 %v8664_v15  ;;  %v8707_v15 = vld [vmem:[#allocation14 + $0x6c8] ss:$16 sps:$4 sm:$0xff]  }
 0x4e2   :  { %6455 = vmatpush1.bf16.msra.mxu0 %v8659_v8  ;;  %v8712_v8 = vld [vmem:[#allocation14 + $0x6ac] ss:$16 sps:$4 sm:$0xff]  }
 0x4e3   :  { %6502 = vmatpush2.bf16.msra.mxu1 %v8662_v9  ;;  %6456 = vmatprep.subr.bf16.mxu0 %v8667_v2  ;;  %v8764_v9 = vld [vmem:[#allocation17 + $0x30] ss:$8 sps:$4 sm:$0xff]   ;;  %v8769_v2 = vld [vmem:[#allocation17 + $0x24] ss:$8 sps:$4 sm:$0xff]  }
 0x4e4   :  { %6503 = vmatprep.subr.bf16.mxu1 %v8670_v12  ;;  %v8710_v12 = vld [vmem:[#allocation14 + $0x6a8] ss:$16 sps:$4 sm:$0xff]  }
 0x4e6   :  { %6457 = vmatpush2.bf16.msra.mxu0 %v8665_v20  ;;  %v8715_v20 = vld [vmem:[#allocation14 + $0x68c] ss:$16 sps:$4 sm:$0xff]  }
 0x4e7   :  { %6504 = vmatpush2.bf16.msra.mxu1 %v8668_v16  ;;  %6458 = vmatprep.subr.bf16.mxu0 %v8673_v19  ;;  %v8767_v16 = vld [vmem:[#allocation17 + $0x20] ss:$8 sps:$4 sm:$0xff]   ;;  %v8772_v19 = vld [vmem:[#allocation17 + $0x14] ss:$8 sps:$4 sm:$0xff]  }
 0x4e8   :  { %6505 = vmatprep.subr.bf16.mxu1 %v8676_v14  ;;  %v8718_v14 = vld [vmem:[#allocation14 + $0x66c] ss:$16 sps:$4 sm:$0xff]  }
 0x4ea   :  { %6459 = vmatpush2.bf16.msra.mxu0 %v8671_v53  ;;  %v8775_v53 = vld [vmem:[#allocation17 + $0x4] ss:$8 sps:$4 sm:$0xff]  }
 0x4eb   :  { %6506 = vmatpush2.bf16.msra.mxu1 %v8674_v28  ;;  %6460 = vmatprep.subr.bf16.mxu0 %v8679_v24  ;;  %v8716_v28 = vld [vmem:[#allocation14 + $0x668] ss:$16 sps:$4 sm:$0xff]   ;;  %v8721_v24 = vld [vmem:[#allocation14 + $0x64c] ss:$16 sps:$4 sm:$0xff]  }
 0x4ec   :  { %6507 = vmatprep.subr.bf16.mxu1 %v8682_v17  ;;  %v8773_v17 = vld [vmem:[#allocation17] ss:$8 sps:$4 sm:$0xff]  }
 0x4ee   :  { %6461 = vmatpush2.bf16.msra.mxu0 %v8677_v7  ;;  %v8778_v7 = vld [vmem:[#allocation17 + $0xf4] ss:$8 sps:$4 sm:$0xff]  }
 0x4ef   :  { %6508 = vmatpush2.bf16.msra.mxu1 %v8680_v46  ;;  %6462 = vmatprep.subr.bf16.mxu0 %v8685_v60  ;;  %v8719_v46 = vld [vmem:[#allocation14 + $0x648] ss:$16 sps:$4 sm:$0xff]   ;;  %v8724_v60 = vld [vmem:[#allocation14 + $0x62c] ss:$16 sps:$4 sm:$0xff]  }
 0x4f0   :  { %6509 = vmatprep.subr.bf16.mxu1 %v8688_v52  ;;  %v8776_v52 = vld [vmem:[#allocation17 + $0xf0] ss:$8 sps:$4 sm:$0xff]  }
 0x4f2   :  { %6463 = vmatpush2.bf16.msra.mxu0 %v8683_v26  ;;  %v8781_v26 = vld [vmem:[#allocation17 + $0xe4] ss:$8 sps:$4 sm:$0xff]  }
 0x4f3   :  { %6510 = vmatpush2.bf16.msra.mxu1 %v8686_v57  ;;  %6464 = vmatprep.subr.bf16.mxu0 %v8691_v58  ;;  %v8722_v57 = vld [vmem:[#allocation14 + $0x628] ss:$16 sps:$4 sm:$0xff]   ;;  %v8727_v58 = vld [vmem:[#allocation14 + $0x60c] ss:$16 sps:$4 sm:$0xff]  }
 0x4f4   :  { %6511 = vmatprep.subr.bf16.mxu1 %v8694_v23  ;;  %v8779_v23 = vld [vmem:[#allocation17 + $0xe0] ss:$8 sps:$4 sm:$0xff]  }
 0x4f6   :  { %6465 = vmatpush2.bf16.msra.mxu0 %v8689_v6  ;;  %v8784_v6 = vld [vmem:[#allocation17 + $0xd4] ss:$8 sps:$4 sm:$0xff]  }
 0x4f7   :  { %6512 = vmatpush2.bf16.msra.mxu1 %v8692_v21  ;;  %6466 = vmatprep.subr.bf16.mxu0 %v8697_v0  ;;  %v8725_v21 = vld [vmem:[#allocation14 + $0x608] ss:$16 sps:$4 sm:$0xff]   ;;  %v8730_v0 = vld [vmem:[#allocation14 + $0x7ec] ss:$16 sps:$4 sm:$0xff]  }
 0x4f8   :  { %6967 = vmatprep.subr.bf16.mxu1 %v8754_v27  ;;  %v8782_v27 = vld [vmem:[#allocation17 + $0xd0] ss:$8 sps:$4 sm:$0xff]  }
 0x4f9   :  { %v6269_v11 = vpop.f32.mrf.mxu1 }
 0x4fa   :  { %v6270_v41 = vadd.f32 %v6269_v11, %v4938_v36  ;;  %v6310_v31 = vpop.f32.mrf.mxu0  ;;  %6467 = vmatpush2.bf16.msra.mxu0 %v8695_v35  ;;  %6514 = vmatmul.mubr.bf16.vlgmr.msra.gmra.mxu1 %v9500_v55  ;;  %v8706_v55 = vld [vmem:[#allocation14 + $0x6ec] ss:$16 sps:$4 sm:$0xff]   ;;  %v8787_v35 = vld [vmem:[#allocation17 + $0xc4] ss:$8 sps:$4 sm:$0xff]  }
 0x4fb   :  { %v6271_v42 = vpop.f32.mrf.mxu1  ;;  %6468 = vmatprep.subr.bf16.mxu0 %v8700_v10  ;;  %6968 = vmatpush1.bf16.msra.mxu1 %v8752_v39  ;;  %v8728_v36 = vld [vmem:[#allocation14 + $0x7e8] ss:$16 sps:$4 sm:$0xff]   ;;  %v8733_v10 = vld [vmem:[#allocation14 + $0x7cc] ss:$16 sps:$4 sm:$0xff]  }
 0x4fc   :  { %v9538_v18 = vadd.f32 %v6310_v31, %v6270_v41  ;;  %v6272_v38 = vadd.f32 %v6271_v42, %v4942_v63  ;;  %v6312_v13 = vpop.f32.mrf.mxu0  ;;  %6969 = vmatprep.subr.bf16.mxu1 %v8757_v3  ;;  %v8785_v39 = vld [vmem:[#allocation17 + $0xc0] ss:$8 sps:$4 sm:$0xff]   ;;  %v8790_v63 = vld [vmem:[#allocation17 + $0xb4] ss:$8 sps:$4 sm:$0xff]   ;;  %v8788_v41 = vld [vmem:[#allocation17 + $0xb0] ss:$8 sps:$4 sm:$0xff]  }
 0x4fd   :  { %v6273_v47 = vpop.f32.mrf.mxu1  ;;  %v8731_v3 = vld [vmem:[#allocation14 + $0x7c8] ss:$16 sps:$4 sm:$0xff]   ;;  %v8736_v11 = vld [vmem:[#allocation14 + $0x7ac] ss:$16 sps:$4 sm:$0xff]  }
 0x4fe   :  { %v9540_v48 = vadd.f32 %v6312_v13, %v6272_v38  ;;  %v6314_v49 = vpop.f32.mrf.mxu0  ;;  %6469 = vmatpush2.bf16.msra.mxu0 %v8698_v25  ;;  %v8793_v31 = vld [vmem:[#allocation17 + $0xa4] ss:$8 sps:$4 sm:$0xff]   ;;  %v8739_v42 = vld [vmem:[#allocation14 + $0x78c] ss:$16 sps:$4 sm:$0xff]  }
 0x4ff   :  { %v6274_v54 = vpop.f32.mrf.mxu1  ;;  %6470 = vmatprep.subr.bf16.mxu0 %v8703_v43  ;;  %6970 = vmatpush1.bf16.msra.mxu1 %v8755_v44  ;;  %v8734_v25 = vld [vmem:[#allocation14 + $0x7a8] ss:$16 sps:$4 sm:$0xff]   ;;  %v8791_v43 = vld [vmem:[#allocation17 + $0xa0] ss:$8 sps:$4 sm:$0xff]  }
 0x500   :  { %v6315_v62 = vpop.f32.mrf.mxu0  ;;  %6971 = vmatprep.subr.bf16.mxu1 %v8760_v51  ;;  %v8796_v44 = vld [vmem:[#allocation17 + $0x94] ss:$8 sps:$4 sm:$0xff]   ;;  %v8742_v13 = vld [vmem:[#allocation14 + $0x76c] ss:$16 sps:$4 sm:$0xff]   ;;  %v8799_v47 = vld [vmem:[#allocation17 + $0x84] ss:$8 sps:$4 sm:$0xff]  }
 0x501   :  { %v8737_v38 = vld [vmem:[#allocation14 + $0x788] ss:$16 sps:$4 sm:$0xff]   ;;  %v8794_v51 = vld [vmem:[#allocation17 + $0x90] ss:$8 sps:$4 sm:$0xff]   ;;  %v8797_v54 = vld [vmem:[#allocation17 + $0x80] ss:$8 sps:$4 sm:$0xff]  }
 0x502   :  { %6471 = vmatpush2.bf16.msra.mxu0 %v8701_v50  ;;  %v8740_v49 = vld [vmem:[#allocation14 + $0x768] ss:$16 sps:$4 sm:$0xff]   ;;  %v8745_v50 = vld [vmem:[#allocation14 + $0x74c] ss:$16 sps:$4 sm:$0xff]  }
 0x503   :  { %6522 = vmatprep.subr.bf16.mxu0 %v8706_v55  ;;  %6972 = vmatpush1.bf16.msra.mxu1 %v8758_v56  ;;  %v8743_v55 = vld [vmem:[#allocation14 + $0x748] ss:$16 sps:$4 sm:$0xff]   ;;  %v8748_v56 = vld [vmem:[#allocation14 + $0x72c] ss:$16 sps:$4 sm:$0xff]  }
 0x504   :  { %6973 = vmatprep.subr.bf16.mxu1 %v8763_v59 }
 0x505   :  { %6473 = vmatmul.mubr.bf16.vlgmr.msra.gmra.mxu0 %v9485_v45  ;;  %v8713_v45 = vld [vmem:[#allocation14 + $0x688] ss:$16 sps:$4 sm:$0xff]  }
 0x506   :  { %6523 = vmatpush1.bf16.msra.mxu0 %v8704_v4  ;;  %6554 = vmatprep.mubr.bf16.mxu0 %v9524_v37  ;;  %v8770_v37 = vld [vmem:[#allocation17 + $0x10] ss:$8 sps:$4 sm:$0xff]   ;;  %v8746_v4 = vld [vmem:[#allocation14 + $0x728] ss:$16 sps:$4 sm:$0xff]  }
 0x507   :  { %6524 = vmatprep.subr.bf16.mxu0 %v8709_v5  ;;  %6974 = vmatpush1.bf16.msra.mxu1 %v8761_v61  ;;  %v8751_v61 = vld [vmem:[#allocation14 + $0x70c] ss:$16 sps:$4 sm:$0xff]  }
 0x508   :  { %6975 = vmatprep.subr.bf16.mxu1 %v8766_v40 }
 0x50a   :  { %6525 = vmatpush1.bf16.msra.mxu0 %v8707_v15 }
 0x50b   :  { %6526 = vmatprep.subr.bf16.mxu0 %v8712_v8  ;;  %6976 = vmatpush1.bf16.msra.mxu1 %v8764_v9  ;;  %v8749_v8 = vld [vmem:[#allocation14 + $0x708] ss:$16 sps:$4 sm:$0xff]  }
 0x50c   :  { %6977 = vmatprep.subr.bf16.mxu1 %v8769_v2  ;;  %v8800_v2 = vld [vmem:[#allocation17 + $0x170] ss:$8 sps:$4 sm:$0xff]  }
 0x50e   :  { %6527 = vmatpush1.bf16.msra.mxu0 %v8710_v12  ;;  %v8802_v12 = vld [vmem:[#allocation17 + $0x174] ss:$8 sps:$4 sm:$0xff]  }
 0x50f   :  { %6528 = vmatprep.subr.bf16.mxu0 %v8715_v20  ;;  %6978 = vmatpush1.bf16.msra.mxu1 %v8767_v16  ;;  %v8803_v20 = vld [vmem:[#allocation17 + $0x160] ss:$8 sps:$4 sm:$0xff]   ;;  %v8808_v16 = vld [vmem:[#allocation17 + $0x154] ss:$8 sps:$4 sm:$0xff]  }
 0x510   :  { %6979 = vmatprep.subr.bf16.mxu1 %v8772_v19  ;;  %v8806_v19 = vld [vmem:[#allocation17 + $0x150] ss:$8 sps:$4 sm:$0xff]  }
 0x512   :  { %6529 = vmatpush1.bf16.msra.mxu0 %v8713_v45  ;;  %v8809_v45 = vld [vmem:[#allocation17 + $0x140] ss:$8 sps:$4 sm:$0xff]  }
 0x513   :  { %6530 = vmatprep.subr.bf16.mxu0 %v8718_v14  ;;  %6980 = vmatpush1.bf16.msra.mxu1 %v8770_v37  ;;  %v8814_v14 = vld [vmem:[#allocation17 + $0x134] ss:$8 sps:$4 sm:$0xff]   ;;  %v8812_v37 = vld [vmem:[#allocation17 + $0x130] ss:$8 sps:$4 sm:$0xff]  }
 0x514   :  { %6981 = vmatprep.subr.bf16.mxu1 %v8775_v53  ;;  %v8815_v53 = vld [vmem:[#allocation17 + $0x120] ss:$8 sps:$4 sm:$0xff]  }
 0x516   :  { %6531 = vmatpush1.bf16.msra.mxu0 %v8716_v28  ;;  %v8820_v28 = vld [vmem:[#allocation17 + $0x114] ss:$8 sps:$4 sm:$0xff]  }
 0x517   :  { %6532 = vmatprep.subr.bf16.mxu0 %v8721_v24  ;;  %6982 = vmatpush1.bf16.msra.mxu1 %v8773_v17  ;;  %v8818_v24 = vld [vmem:[#allocation17 + $0x110] ss:$8 sps:$4 sm:$0xff]   ;;  %v8823_v17 = vld [vmem:[#allocation17 + $0x104] ss:$8 sps:$4 sm:$0xff]  }
 0x518   :  { %6983 = vmatprep.subr.bf16.mxu1 %v8778_v7  ;;  %v8821_v7 = vld [vmem:[#allocation17 + $0x100] ss:$8 sps:$4 sm:$0xff]  }
 0x51a   :  { %6533 = vmatpush1.bf16.msra.mxu0 %v8719_v46  ;;  %v8826_v46 = vld [vmem:[#allocation17 + $0x1f4] ss:$8 sps:$4 sm:$0xff]  }
 0x51b   :  { %6534 = vmatprep.subr.bf16.mxu0 %v8724_v60  ;;  %6984 = vmatpush2.bf16.msra.mxu1 %v8776_v52  ;;  %v8824_v60 = vld [vmem:[#allocation17 + $0x1f0] ss:$8 sps:$4 sm:$0xff]   ;;  %v8829_v52 = vld [vmem:[#allocation17 + $0x1e4] ss:$8 sps:$4 sm:$0xff]  }
 0x51c   :  { %6985 = vmatprep.subr.bf16.mxu1 %v8781_v26  ;;  %v8827_v26 = vld [vmem:[#allocation17 + $0x1e0] ss:$8 sps:$4 sm:$0xff]  }
 0x51e   :  { %6535 = vmatpush1.bf16.msra.mxu0 %v8722_v57  ;;  %v8832_v57 = vld [vmem:[#allocation17 + $0x1d4] ss:$8 sps:$4 sm:$0xff]  }
 0x51f   :  { %6536 = vmatprep.subr.bf16.mxu0 %v8727_v58  ;;  %6986 = vmatpush2.bf16.msra.mxu1 %v8779_v23  ;;  %v8830_v58 = vld [vmem:[#allocation17 + $0x1d0] ss:$8 sps:$4 sm:$0xff]   ;;  %v8835_v23 = vld [vmem:[#allocation17 + $0x1c4] ss:$8 sps:$4 sm:$0xff]  }
 0x520   :  { %6987 = vmatprep.subr.bf16.mxu1 %v8784_v6  ;;  %v8833_v6 = vld [vmem:[#allocation17 + $0x1c0] ss:$8 sps:$4 sm:$0xff]  }
 0x522   :  { %6537 = vmatpush1.bf16.msra.mxu0 %v8725_v21  ;;  %v8838_v21 = vld [vmem:[#allocation17 + $0x1b4] ss:$8 sps:$4 sm:$0xff]  }
 0x523   :  { %6538 = vmatprep.subr.bf16.mxu0 %v8730_v0  ;;  %6988 = vmatpush2.bf16.msra.mxu1 %v8782_v27  ;;  %v8836_v27 = vld [vmem:[#allocation17 + $0x1b0] ss:$8 sps:$4 sm:$0xff]  }
 0x524   :  { %6989 = vmatprep.subr.bf16.mxu1 %v8787_v35 }
 0x526   :  { %6539 = vmatpush2.bf16.msra.mxu0 %v8728_v36  ;;  %v8841_v36 = vld [vmem:[#allocation17 + $0x1a4] ss:$8 sps:$4 sm:$0xff]  }
 0x527   :  { %6540 = vmatprep.subr.bf16.mxu0 %v8733_v10  ;;  %6990 = vmatpush2.bf16.msra.mxu1 %v8785_v39  ;;  %v8839_v39 = vld [vmem:[#allocation17 + $0x1a0] ss:$8 sps:$4 sm:$0xff]  }
 0x528   :  { %6991 = vmatprep.subr.bf16.mxu1 %v8790_v63 }
 0x52a   :  { %6541 = vmatpush2.bf16.msra.mxu0 %v8731_v3 }
 0x52b   :  { %6542 = vmatprep.subr.bf16.mxu0 %v8736_v11  ;;  %6992 = vmatpush2.bf16.msra.mxu1 %v8788_v41  ;;  %v8844_v41 = vld [vmem:[#allocation17 + $0x194] ss:$8 sps:$4 sm:$0xff]  }
 0x52c   :  { %6993 = vmatprep.subr.bf16.mxu1 %v8793_v31 }
 0x52e   :  { %6543 = vmatpush2.bf16.msra.mxu0 %v8734_v25  ;;  %v8842_v25 = vld [vmem:[#allocation17 + $0x190] ss:$8 sps:$4 sm:$0xff]  }
 0x52f   :  { %6544 = vmatprep.subr.bf16.mxu0 %v8739_v42  ;;  %6994 = vmatpush2.bf16.msra.mxu1 %v8791_v43 }
 0x530   :  { %6995 = vmatprep.subr.bf16.mxu1 %v8796_v44 }
 0x532   :  { %6545 = vmatpush2.bf16.msra.mxu0 %v8737_v38 }
 0x533   :  { %6546 = vmatprep.subr.bf16.mxu0 %v8742_v13  ;;  %6996 = vmatpush2.bf16.msra.mxu1 %v8794_v51  ;;  %v8847_v13 = vld [vmem:[#allocation17 + $0x184] ss:$8 sps:$4 sm:$0xff]  }
 0x534   :  { %6997 = vmatprep.subr.bf16.mxu1 %v8799_v47  ;;  %v8845_v47 = vld [vmem:[#allocation17 + $0x180] ss:$8 sps:$4 sm:$0xff]  }
 0x536   :  { %6547 = vmatpush2.bf16.msra.mxu0 %v8740_v49 }
 0x537   :  { %6548 = vmatprep.subr.bf16.mxu0 %v8745_v50  ;;  %6998 = vmatpush2.bf16.msra.mxu1 %v8797_v54 }
 0x539   :  { %v6351_v62 = vpop.f32.mrf.mxu1 }
 0x53a   :  { %v9545_v59 = vadd.f32 %v6351_v62, %v9538_v18  ;;  %6549 = vmatpush2.bf16.msra.mxu0 %v8743_v55  ;;  %v8805_v18 = vld [vmem:[#allocation17 + $0x164] ss:$8 sps:$4 sm:$0xff]   ;;  %v4946_v62 = vrot.slane %v9531_v34, %v9331_v30  ;;  %v8851_v30 = vld [vmem:[#allocation20 + $0x30] sm:$0xff]  }
 0x53b   :  { %v6353_v5 = vpop.f32.mrf.mxu1  ;;  %6550 = vmatprep.subr.bf16.mxu0 %v8748_v56 }
 0x53c   :  { %v9548_v40 = vadd.f32 %v6353_v5, %v9540_v48  ;;  %v8811_v48 = vld [vmem:[#allocation17 + $0x144] ss:$8 sps:$4 sm:$0xff]  }
 0x53d   :  { %v6355_v15 = vpop.f32.mrf.mxu1 }
 0x53e   :  { %6551 = vmatpush2.bf16.msra.mxu0 %v8746_v4  ;;  %v4950_v4 = vrot.slane %v9531_v34, %v9339_v33  ;;  %v8853_v33 = vld [vmem:[#allocation20 + $0x28] sm:$0xff]   ;;  %v8854_v34 = vld [vmem:[#allocation20 + $0x60] sm:$0xff]  }
 0x53f   :  { %v6356_v9 = vpop.f32.mrf.mxu1  ;;  %6552 = vmatprep.subr.bf16.mxu0 %v8751_v61 }
 0x542   :  { %6553 = vmatpush2.bf16.msra.mxu0 %v8749_v8 }
 0x543   :  { %7008 = vmatprep.subr.bf16.mxu0 %v8802_v12 }
 0x545   :  { %6555 = vmatmul.mubr.bf16.vlgmr.msra.gmra.mxu0 %v9526_v22  ;;  %v8817_v22 = vld [vmem:[#allocation17 + $0x124] ss:$8 sps:$4 sm:$0xff]  }
 0x546   :  { %7009 = vmatpush1.bf16.msra.mxu0 %v8800_v2 }
 0x547   :  { %7010 = vmatprep.subr.bf16.mxu0 %v8805_v18 }
 0x54a   :  { %7011 = vmatpush1.bf16.msra.mxu0 %v8803_v20 }
 0x54b   :  { %7012 = vmatprep.subr.bf16.mxu0 %v8808_v16  ;;  %v8848_v16 = vld [vmem:[#allocation20 + $0x78] sm:$0xff]  }
 0x54c   :  { %8283 = vmatprep.subr.bf16.mxu1 %v8848_v16 }
 0x54e   :  { %7013 = vmatpush1.bf16.msra.mxu0 %v8806_v19  ;;  %v8849_v19 = vld [vmem:[#allocation20 + $0x38] sm:$0xff]  }
 0x54f   :  { %7014 = vmatprep.subr.bf16.mxu0 %v8811_v48  ;;  %v8850_v48 = vld [vmem:[#allocation20 + $0x70] sm:$0xff]  }
 0x552   :  { %7015 = vmatpush1.bf16.msra.mxu0 %v8809_v45  ;;  %v8852_v45 = vld [vmem:[#allocation20 + $0x68] sm:$0xff]  }
 0x553   :  { %7016 = vmatprep.subr.bf16.mxu0 %v8814_v14  ;;  %v8855_v14 = vld [vmem:[#allocation20 + $0x20] sm:$0xff]  }
 0x556   :  { %7017 = vmatpush1.bf16.msra.mxu0 %v8812_v37  ;;  %v8856_v37 = vld [vmem:[#allocation20 + $0x58] sm:$0xff]  }
 0x557   :  { %7018 = vmatprep.subr.bf16.mxu0 %v8817_v22  ;;  %v8857_v22 = vld [vmem:[#allocation20 + $0x18] sm:$0xff]  }
 0x55a   :  { %7019 = vmatpush1.bf16.msra.mxu0 %v8815_v53  ;;  %v8858_v53 = vld [vmem:[#allocation20 + $0x50] sm:$0xff]  }
 0x55b   :  { %7020 = vmatprep.subr.bf16.mxu0 %v8820_v28  ;;  %v8859_v28 = vld [vmem:[#allocation20 + $0x10] sm:$0xff]  }
 0x55e   :  { %7021 = vmatpush1.bf16.msra.mxu0 %v8818_v24 }
 0x55f   :  { %7022 = vmatprep.subr.bf16.mxu0 %v8823_v17 }
 0x562   :  { %7023 = vmatpush1.bf16.msra.mxu0 %v8821_v7 }
 0x563   :  { %7024 = vmatprep.subr.bf16.mxu0 %v8826_v46 }
 0x566   :  { %7025 = vmatpush2.bf16.msra.mxu0 %v8824_v60 }
 0x567   :  { %7026 = vmatprep.subr.bf16.mxu0 %v8829_v52 }
 0x56a   :  { %7027 = vmatpush2.bf16.msra.mxu0 %v8827_v26 }
 0x56b   :  { %7028 = vmatprep.subr.bf16.mxu0 %v8832_v57 }
 0x56e   :  { %7029 = vmatpush2.bf16.msra.mxu0 %v8830_v58 }
 0x56f   :  { %7030 = vmatprep.subr.bf16.mxu0 %v8835_v23 }
 0x572   :  { %7031 = vmatpush2.bf16.msra.mxu0 %v8833_v6 }
 0x573   :  { %7032 = vmatprep.subr.bf16.mxu0 %v8838_v21  ;;  %v8860_v21 = vld [vmem:[#allocation20 + $0x48] sm:$0xff]  }
 0x576   :  { %7033 = vmatpush2.bf16.msra.mxu0 %v8836_v27  ;;  %v8861_v27 = vld [vmem:[#allocation20 + $0x8] sm:$0xff]  }
 0x577   :  { %7034 = vmatprep.subr.bf16.mxu0 %v8841_v36  ;;  %v8862_v36 = vld [vmem:[#allocation20 + $0x40] sm:$0xff]  }
 0x579   :  { %v6433_v0 = vpop.f32.mrf.mxu1 }
 0x57a   :  { %7035 = vmatpush2.bf16.msra.mxu0 %v8839_v39  ;;  %v6434_v5 = vadd.f32 %v6433_v0, %v4946_v62  ;;  %v8863_v39 = vld [vmem:[#allocation20] sm:$0xff]  }
 0x57b   :  { %v6435_v35 = vpop.f32.mrf.mxu1  ;;  %7036 = vmatprep.subr.bf16.mxu0 %v8844_v41  ;;  %v8867_v41 = vld [vmem:[%s9609_s13 + $0x20] sm:$0xff]  }
 0x57d   :  { %v6437_v10 = vpop.f32.mrf.mxu1 }
 0x57e   :  { %7037 = vmatpush2.bf16.msra.mxu0 %v8842_v25  ;;  %v6631_v25 = vld [vmem:[#allocation19] sm:$0x3] }
 0x57f   :  { %v6438_v63 = vpop.f32.mrf.mxu1  ;;  %7038 = vmatprep.subr.bf16.mxu0 %v8847_v13 }
 0x580   :  { %v8864_v63 = vld [vmem:[%s9609_s13 + $0x38] sm:$0xff]  }
 0x582   :  { %7039 = vmatpush2.bf16.msra.mxu0 %v8845_v47 }
 0x583   :  { %8322 = vmatprep.subr.bf16.mxu0 %v9168_v1 }
 0x585   :  { %v6392_v3 = vpop.f32.mrf.mxu0 }
 0x586   :  { %v6393_v11 = vadd.f32 %v6392_v3, %v9545_v59  ;;  %v8865_v3 = vld [vmem:[%s9609_s13 + $0x30] sm:$0xff]  }
 0x587   :  { %v6394_v31 = vpop.f32.mrf.mxu0 }
 0x588   :  { %v6395_v42 = vadd.f32 %v6394_v31, %v9548_v40  ;;  %v6563_v43 = vmax.f32 %v6393_v11, 0.0  ;;  %v6436_v40 = vadd.f32 %v6435_v35, %v4950_v4  ;;  %v8866_v11 = vld [vmem:[%s9609_s13 + $0x28] sm:$0xff]   ;;  %v8868_v31 = vld [vmem:[%s9609_s13 + $0x18] sm:$0xff]   ;;  %v8871_v4 = vld [vmem:[%s9609_s13] sm:$0xff]  }
 0x589   :  { %v6396_v44 = vpop.f32.mrf.mxu0 }
 0x58a   :  { %v6564_v38 = vmax.f32 %v6395_v42, 0.0  ;;  %v6632_v50 = vpack.c.bf16 %v6563_v43, %v6563_v43  ;;  %v6640_v42 = vrot.slane %v6631_v25, %v9328_v29  ;;  %v6644_v43 = vrot.slane %v6631_v25, %v9336_v32  ;;  %v8869_v29 = vld [vmem:[%s9609_s13 + $0x10] sm:$0xff]   ;;  %v8870_v32 = vld [vmem:[%s9609_s13 + $0x8] sm:$0xff]  }
 0x58b   :  { %v6397_v51 = vpop.f32.mrf.mxu0 }
 0x58c   :  { %v6633_v49 = vpack.c.bf16 %v6564_v38, %v6564_v38 }
 0x58e   :  { %6999 = vmatprep.mubr.bf16.mxu1 %v6633_v49 }
 0x58f   :  { %7000 = vmatmul.mubr.bf16.vlgmr.msra.gmra.mxu1 %v6632_v50 }
 0x590   :  { %8284 = vmatpush3.bf16.msra.mxu1 %v8849_v19 }
 0x591   :  { %8285 = vmatprep.subr.bf16.mxu1 %v8850_v48 }
 0x594   :  { %8286 = vmatpush3.bf16.msra.mxu1 %v8851_v30 }
 0x595   :  { %8287 = vmatprep.subr.bf16.mxu1 %v8852_v45 }
 0x598   :  { %8288 = vmatpush3.bf16.msra.mxu1 %v8853_v33 }
 0x599   :  { %8289 = vmatprep.subr.bf16.mxu1 %v8854_v34 }
 0x59c   :  { %8290 = vmatpush3.bf16.msra.mxu1 %v8855_v14 }
 0x59d   :  { %8291 = vmatprep.subr.bf16.mxu1 %v8856_v37 }
 0x5a0   :  { %8292 = vmatpush3.bf16.msra.mxu1 %v8857_v22 }
 0x5a1   :  { %8293 = vmatprep.subr.bf16.mxu1 %v8858_v53 }
 0x5a4   :  { %8294 = vmatpush3.bf16.msra.mxu1 %v8859_v28 }
 0x5a5   :  { %8295 = vmatprep.subr.bf16.mxu1 %v8860_v21 }
 0x5a8   :  { %8296 = vmatpush3.bf16.msra.mxu1 %v8861_v27 }
 0x5a9   :  { %8297 = vmatprep.subr.bf16.mxu1 %v8862_v36 }
 0x5ac   :  { %8298 = vmatpush3.bf16.msra.mxu1 %v8863_v39 }
 0x5ba   :  { %v6515_v54 = vpop.f32.mrf.mxu1 }
 0x5bc   :  { %v6517_v55 = vpop.f32.mrf.mxu1 }
 0x5be   :  { %v6519_v56 = vpop.f32.mrf.mxu1 }
 0x5c0   :  { %v6520_v59 = vpop.f32.mrf.mxu1 }
 0x5c5   :  { %v6474_v61 = vpop.f32.mrf.mxu0 }
 0x5c6   :  { %v6475_v15 = vadd.f32 %v6474_v61, %v6434_v5  ;;  %v8254_v61 = vld [vmem:[#allocation22] ss:$0 sm:$0xff] }
 0x5c7   :  { %v6476_v8 = vpop.f32.mrf.mxu0 }
 0x5c8   :  { %v6477_v9 = vadd.f32 %v6476_v8, %v6436_v40  ;;  %v6516_v2 = vadd.f32 %v6515_v54, %v6475_v15 }
 0x5c9   :  { %v6478_v12 = vpop.f32.mrf.mxu0 }
 0x5ca   :  { %v6518_v18 = vadd.f32 %v6517_v55, %v6477_v9 }
 0x5cb   :  { %v6479_v20 = vpop.f32.mrf.mxu0 }
 0x5cc   :  { %v8271_v20 = vld [vmem:[#allocation2] ss:$0 sm:$0xff] }
 0x605   :  { %v6556_v24 = vpop.f32.mrf.mxu0 }
 0x606   :  { %v6557_v17 = vadd.f32 %v6556_v24, %v6516_v2 }
 0x607   :  { %v6558_v7 = vpop.f32.mrf.mxu0 }
 0x608   :  { %v6559_v46 = vadd.f32 %v6558_v7, %v6518_v18  ;;  %v6565_v60 = vmax.f32 %v6557_v17, 0.0 }
 0x609   :  { %v6560_v52 = vpop.f32.mrf.mxu0 }
 0x60a   :  { %v6566_v26 = vmax.f32 %v6559_v46, 0.0  ;;  %v6634_v23 = vpack.c.bf16 %v6565_v60, %v6565_v60 }
 0x60b   :  { %v6561_v57 = vpop.f32.mrf.mxu0 }
 0x60c   :  { %v6635_v58 = vpack.c.bf16 %v6566_v26, %v6566_v26 }
 0x60e   :  { %7040 = vmatprep.mubr.bf16.mxu0 %v6635_v58 }
 0x60f   :  { %7041 = vmatmul.mubr.bf16.vlgmr.msra.gmra.mxu0 %v6634_v23 }
 0x610   :  { %8338 = vmatprep.mubr.msk.bf16.mxu0 %vm9169_vm0, %v9168_v1  ;;  %8323 = vmatpush3.bf16.msra.mxu0 %v8864_v63 }
 0x611   :  { %8324 = vmatprep.subr.bf16.mxu0 %v9168_v1 }
 0x614   :  { %8325 = vmatpush3.bf16.msra.mxu0 %v8865_v3 }
 0x615   :  { %8326 = vmatprep.subr.bf16.mxu0 %v9168_v1 }
 0x618   :  { %8327 = vmatpush3.bf16.msra.mxu0 %v8866_v11 }
 0x619   :  { %8328 = vmatprep.subr.bf16.mxu0 %v9168_v1 }
 0x61c   :  { %8329 = vmatpush3.bf16.msra.mxu0 %v8867_v41 }
 0x61d   :  { %8330 = vmatprep.subr.bf16.mxu0 %v9168_v1 }
 0x620   :  { %8331 = vmatpush3.bf16.msra.mxu0 %v8868_v31 }
 0x621   :  { %8332 = vmatprep.subr.bf16.mxu0 %v9168_v1 }
 0x624   :  { %8333 = vmatpush3.bf16.msra.mxu0 %v8869_v29 }
 0x625   :  { %8334 = vmatprep.subr.bf16.mxu0 %v9168_v1 }
 0x628   :  { %8335 = vmatpush3.bf16.msra.mxu0 %v8870_v32 }
 0x629   :  { %8336 = vmatprep.subr.bf16.mxu0 %v9168_v1 }
 0x62c   :  { %8337 = vmatpush3.bf16.msra.mxu0 %v8871_v4 }
 0x64f   :  { %v7001_v6 = vpop.f32.mrf.mxu1 }
 0x650   :  { %v7002_v44 = vadd.f32 %v7001_v6, %v6640_v42 }
 0x651   :  { %v7003_v0 = vpop.f32.mrf.mxu1 }
 0x652   :  { %v7004_v13 = vadd.f32 %v7003_v0, %v6644_v43 }
 0x653   :  { %v7005_v35 = vpop.f32.mrf.mxu1 }
 0x655   :  { %v7006_v10 = vpop.f32.mrf.mxu1 }
 0x6cf   :  { %v7042_v38 = vpop.f32.mrf.mxu0 }
 0x6d0   :  { %v7043_v51 = vadd.f32 %v7042_v38, %v7002_v44 }
 0x6d1   :  { %v7044_v47 = vpop.f32.mrf.mxu0 }
 0x6d2   :  { %v7045_v49 = vadd.f32 %v7044_v47, %v7004_v13  ;;  %v7049_v50 = vmax.f32 %v7043_v51, 0.0 }
 0x6d3   :  { %v7046_v54 = vpop.f32.mrf.mxu0 }
 0x6d4   :  { %v7050_v55 = vmax.f32 %v7045_v49, 0.0  ;;  %v7084_v59 = vpack.c.bf16 %v7049_v50, %v7049_v50 }
 0x6d5   :  { %v7047_v56 = vpop.f32.mrf.mxu0 }
 0x6d6   :  { %v7085_v62 = vpack.c.bf16 %v7050_v55, %v7050_v55 }
 0x6d8   :  { %7220 = vmatprep.mubr.bf16.mxu1 %v7085_v62 }
 0x6d9   :  { %7221 = vmatmul.mubr.bf16.vlgmr.msra.gmra.mxu1 %v7084_v59 }
 0x799   :  { %v8299_v5 = vpop.f32.mrf.mxu1 }
 0x79b   :  { %v8300_v40 = vpop.f32.mrf.mxu1 }
 0x79c   :  { %v8301_v15 = vadd.f32 %v8300_v40, %v8299_v5 }
 0x79d   :  { %v8302_v8 = vpop.f32.mrf.mxu1 }
 0x79e   :  { %v7223_v9 = vadd.f32 %v8301_v15, %v8254_v61 }
 0x79f   :  { %v8303_v2 = vpop.f32.mrf.mxu1 }
 0x7a0   :  { %v7228_v12 = vmax.f32 %v7223_v9, 0.0 }
 0x7a2   :  { %v7246_v18 = vpack.c.bf16 %v7228_v12, %v7228_v12 }
 0x7a4   :  { %8339 = vmatmul.mubr.bf16.vlgmr.msra.gmra.mxu0 %v7246_v18 }
 0x864   :  { %v7335_v16 = vpop.f32.mrf.mxu0 }
 0x865   :  { %v7336_v19 = vadd.f32 %v8271_v20, %v7335_v16 }
 0x866   :  { %v8340_v1 = vpop.f32.mrf.mxu0 }
 0x867   :  { %7342 = vst.msk [vmem:[%s9611_s15] sm:$0x3] %vm7341_vm2, %v7336_v19 }
 0x868   :  { %v7338_v48 = vpop.f32.mrf.mxu0 }
 0x86a   :  { %v8341_v30 = vpop.f32.mrf.mxu0 }
 0x86b   :  { %7347 = vsyncpa [#allocation4], 1 }
 0x86c   :  { %7348 = vsyncpa [#allocation6], 1 }
 0x86d   :  { %7349 = vsyncpa [#allocation9], 1 }
 0x86e   :  { %7350 = vsyncpa [#allocation12], 1 }
 0x86f   :  { %7351 = vsyncpa [#allocation15], 1 }
 0x870   :  { %7352 = vsyncpa [#allocation18], 1 }
 0x871   :  { %7353 = vsyncpa [#allocation21], 1 }

</bundles_post_ra>
